<compile_context>
chip_gen: v5e
topology: v5e:2x2
jax: 0.10.0
libtpu: 0.0.40
codegen_flags: <defaults>
</compile_context>

<pallas_src>
import numpy as np
import jax
import jax.numpy as jnp
from jax.experimental import pallas as pl
from jax.experimental.pallas import tpu as pltpu

IN_DIM = 32
MEM_DIM = 32
HIDDEN_DIM = 32
NUM_CLASSES = 5
SEQ = 8            # max sentence length (rows in each embedding matrix)
NC_MAX = 4         # max children per node (padded with the zero slot)
NODE_BATCH = 8     # nodes processed per grid step (one level, both trees)

# State slab layout: slots [0, SEQ) = left-tree nodes, [SEQ, 2*SEQ) = right-tree nodes,
# GARBAGE_SLOT = dump for padding nodes, ZERO_SLOT = permanent zero state (padding child).
GARBAGE_SLOT = 2 * SEQ
ZERO_SLOT = 2 * SEQ + 1
NSLOTS = 24        # >= 2*SEQ + 2, rounded up to a multiple of 8


# ----------------------------------------------------------------------------
# Fused kernel: whole forward pass (both trees + similarity head)
# ----------------------------------------------------------------------------
def _tree_sim_kernel(emb_idx_ref, state_idx_ref, child_idx_ref, root_ref,   # SMEM (prefetch)
                     embs_ref, wx_ref, wh_ref, b_ref, whf_ref, bf_ref,      # VMEM inputs
                     wh1_ref, wh2_ref, bh_ref, wp_ref, bp_ref,
                     out_ref,                                               # VMEM output
                     state_c, state_h, xbuf, hsum_buf, chh_buf, chc_buf):   # VMEM scratch
    step = pl.program_id(0)
    nsteps = pl.num_programs(0)

    # Zero the persistent state slab once (also establishes the permanent ZERO_SLOT).
    @pl.when(step == 0)
    def _():
        state_c[...] = jnp.zeros_like(state_c)
        state_h[...] = jnp.zeros_like(state_h)

    node_base = step * NODE_BATCH
    child_base = step * (NODE_BATCH * NC_MAX)

    # ---- gather: embeddings, per-child states, child-h sums (dynamic row indexing) ----
    for k in range(NODE_BATCH):
        eidx = emb_idx_ref[node_base + k]
        xbuf[k:k + 1, :] = embs_ref[pl.ds(eidx, 1), :]
        hs = jnp.zeros((1, MEM_DIM), jnp.float32)
        for j in range(NC_MAX):
            cslot = child_idx_ref[child_base + k * NC_MAX + j]
            hj = state_h[pl.ds(cslot, 1), :]
            cj = state_c[pl.ds(cslot, 1), :]
            chh_buf[k * NC_MAX + j:k * NC_MAX + j + 1, :] = hj
            chc_buf[k * NC_MAX + j:k * NC_MAX + j + 1, :] = cj
            hs = hs + hj
        hsum_buf[k:k + 1, :] = hs

    # ---- fused gate matmuls: one 128-lane pass each for x and child_h_sum ----
    gx = jnp.dot(xbuf[...], wx_ref[...], preferred_element_type=jnp.float32)      # (8,128)
    gh = jnp.dot(hsum_buf[...], wh_ref[...], preferred_element_type=jnp.float32)  # (8,128)
    g = gx + gh + b_ref[...]                                                       # (8,128)

    i_g = jax.nn.sigmoid(g[:, 0:MEM_DIM])                       # (8,32)
    o_g = jax.nn.sigmoid(g[:, MEM_DIM:2 * MEM_DIM])             # (8,32)
    u_g = jnp.tanh(g[:, 2 * MEM_DIM:3 * MEM_DIM])               # (8,32)
    fx = gx[:, 3 * MEM_DIM:4 * MEM_DIM]                         # (8,32), no bias yet

    # per-child forget-gate pre-activation for all children of all nodes at once
    fh_all = jnp.dot(chh_buf[...], whf_ref[...],
                     preferred_element_type=jnp.float32)        # (32,32)
    cc_all = chc_buf[...]                                       # (32,32)
    bf = bf_ref[...]                                            # (1,32)

    # ---- per node: fc, cell, hidden; scatter to the persistent state slab ----
    for k in range(NODE_BATCH):
        f_k = jax.nn.sigmoid(fh_all[k * NC_MAX:(k + 1) * NC_MAX, :]
                             + fx[k:k + 1, :] + bf)                               # (4,32)
        fc_k = jnp.sum(f_k * cc_all[k * NC_MAX:(k + 1) * NC_MAX, :],
                       axis=0, keepdims=True)                                     # (1,32)
        c_k = i_g[k:k + 1, :] * u_g[k:k + 1, :] + fc_k
        h_k = o_g[k:k + 1, :] * jnp.tanh(c_k)
        dst = state_idx_ref[node_base + k]
        state_c[pl.ds(dst, 1), :] = c_k
        state_h[pl.ds(dst, 1), :] = h_k

    # ---- similarity head on the last step (roots are in the last level) ----
    @pl.when(step == nsteps - 1)
    def _():
        lh = state_h[pl.ds(root_ref[0], 1), :]                  # (1,32)
        rh = state_h[pl.ds(root_ref[1], 1), :]                  # (1,32)
        mult_dist = lh * rh
        abs_dist = jnp.abs(lh - rh)
        hidden = jax.nn.sigmoid(
            jnp.dot(mult_dist, wh1_ref[...], preferred_element_type=jnp.float32)
            + jnp.dot(abs_dist, wh2_ref[...], preferred_element_type=jnp.float32)
            + bh_ref[...])                                      # (1,HIDDEN_DIM)
        logits = (jnp.dot(hidden, wp_ref[...], preferred_element_type=jnp.float32)
                  + bp_ref[...])                                # (1,NUM_CLASSES)
        m = jnp.max(logits, axis=1, keepdims=True)
        z = logits - m
        lse = jnp.log(jnp.sum(jnp.exp(z), axis=1, keepdims=True))
        out_ref[...] = z - lse


# ----------------------------------------------------------------------------
# Host-side tree plumbing: trees -> levelized schedule (int32 arrays)
# ----------------------------------------------------------------------------
class Tree:
    def __init__(self, idx, children=()):
        self.idx = idx                     # 1-based, like the reference
        self.children = list(children)

    @property
    def num_children(self):
        return len(self.children)


def _collect(tree, base, entries):
    """Post-order walk; returns node level (leaves = 0). Appends (level, slot, child_slots)."""
    lv = 0
    for ch in tree.children:
        lv = max(lv, _collect(ch, base, entries) + 1)
    assert tree.num_children <= NC_MAX, "increase NC_MAX"
    assert 1 <= tree.idx <= SEQ
    cslots = [base + (ch.idx - 1) for ch in tree.children]
    cslots += [ZERO_SLOT] * (NC_MAX - len(cslots))
    entries.append((lv, base + (tree.idx - 1), cslots))
    return lv


def build_schedule(ltree, rtree):
    entries = []
    _collect(ltree, 0, entries)
    _collect(rtree, SEQ, entries)

    max_lv = max(e[0] for e in entries)
    step_groups = []
    for lv in range(max_lv + 1):                       # children strictly before parents
        lv_nodes = [e for e in entries if e[0] == lv]
        for s in range(0, len(lv_nodes), NODE_BATCH):
            step_groups.append(lv_nodes[s:s + NODE_BATCH])
    nsteps = len(step_groups)

    emb_idx = np.zeros((nsteps, NODE_BATCH), np.int32)            # padding -> row 0 (ignored)
    st_idx = np.full((nsteps, NODE_BATCH), GARBAGE_SLOT, np.int32)  # padding writes go here
    ch_idx = np.full((nsteps, NODE_BATCH, NC_MAX), ZERO_SLOT, np.int32)
    for s, grp in enumerate(step_groups):
        for k, (_, slot, cslots) in enumerate(grp):
            emb_idx[s, k] = slot          # emb row == state slot by construction
            st_idx[s, k] = slot
            ch_idx[s, k, :] = cslots
    roots = np.array([ltree.idx - 1, SEQ + rtree.idx - 1], np.int32)
    return (jnp.asarray(emb_idx.reshape(-1)),
            jnp.asarray(st_idx.reshape(-1)),
            jnp.asarray(ch_idx.reshape(-1)),
            jnp.asarray(roots),
            nsteps)


def similarity_tree_lstm_forward(ltree, linputs, rtree, rinputs, node_params, sim_params):
    wx_f, wh_f, b_f, whf_w, bf_b = node_params
    wh1, wh2, bh, wp, bp = sim_params
    embs_all = jnp.concatenate([linputs, rinputs], axis=0)        # (2*SEQ, IN_DIM)
    emb_idx, st_idx, ch_idx, roots, nsteps = build_schedule(ltree, rtree)

    const2d = lambda s, *_: (0, 0)     # weights / embeddings: resident, DMA'd once
    grid_spec = pltpu.PrefetchScalarGridSpec(
        num_scalar_prefetch=4,
        grid=(nsteps,),
        in_specs=[
            pl.BlockSpec((2 * SEQ, IN_DIM), const2d),             # embeddings
            pl.BlockSpec((IN_DIM, 4 * MEM_DIM), const2d),         # Wx fused (32,128)
            pl.BlockSpec((MEM_DIM, 4 * MEM_DIM), const2d),        # Wh fused (32,128)
            pl.BlockSpec((1, 4 * MEM_DIM), const2d),              # bias fused (1,128)
            pl.BlockSpec((MEM_DIM, MEM_DIM), const2d),            # Whf (per-child forget)
            pl.BlockSpec((1, MEM_DIM), const2d),                  # bf
            pl.BlockSpec((MEM_DIM, HIDDEN_DIM), const2d),         # wh (mult half)
            pl.BlockSpec((MEM_DIM, HIDDEN_DIM), const2d),         # wh (abs half)
            pl.BlockSpec((1, HIDDEN_DIM), const2d),               # bh
            pl.BlockSpec((HIDDEN_DIM, NUM_CLASSES), const2d),     # wp
            pl.BlockSpec((1, NUM_CLASSES), const2d),              # bp
        ],
        out_specs=pl.BlockSpec((1, NUM_CLASSES), const2d),
        scratch_shapes=[
            pltpu.VMEM((NSLOTS, MEM_DIM), jnp.float32),                 # state_c slab
            pltpu.VMEM((NSLOTS, MEM_DIM), jnp.float32),                 # state_h slab
            pltpu.VMEM((NODE_BATCH, IN_DIM), jnp.float32),              # x batch
            pltpu.VMEM((NODE_BATCH, MEM_DIM), jnp.float32),             # child_h sums
            pltpu.VMEM((NODE_BATCH * NC_MAX, MEM_DIM), jnp.float32),    # gathered child h
            pltpu.VMEM((NODE_BATCH * NC_MAX, MEM_DIM), jnp.float32),    # gathered child c
        ],
    )
    return pl.pallas_call(
        _tree_sim_kernel,
        grid_spec=grid_spec,
        out_shape=jax.ShapeDtypeStruct((1, NUM_CLASSES), jnp.float32),
        compiler_params=pltpu.CompilerParams(dimension_semantics=("arbitrary",)),
    )(emb_idx, st_idx, ch_idx, roots,
      embs_all, wx_f, wh_f, b_f, whf_w, bf_b, wh1, wh2, bh, wp, bp)


# ----------------------------------------------------------------------------
# Deterministic parameter init (nn.Linear-style uniform(-1/sqrt(fan_in), +...))
# Gate linears are fused into (in, 4*MEM_DIM) matrices, gate order [i, o, u, f];
# per-gate bias folds (bx + bh) into one term, matching sigmoid(ix(x)+ih(h)).
# ----------------------------------------------------------------------------
def _linear(key, fan_in, fan_out):
    kw, kb = jax.random.split(key)
    bound = 1.0 / (fan_in ** 0.5)
    w = jax.random.uniform(kw, (fan_in, fan_out), jnp.float32, -bound, bound)
    b = jax.random.uniform(kb, (1, fan_out), jnp.float32, -bound, bound)
    return w, b


def init_params(key):
    keys = jax.random.split(key, 10)
    wxi, bxi = _linear(keys[0], IN_DIM, MEM_DIM)
    whi, bhi = _linear(keys[1], MEM_DIM, MEM_DIM)
    wxo, bxo = _linear(keys[2], IN_DIM, MEM_DIM)
    who, bho = _linear(keys[3], MEM_DIM, MEM_DIM)
    wxu, bxu = _linear(keys[4], IN_DIM, MEM_DIM)
    whu, bhu = _linear(keys[5], MEM_DIM, MEM_DIM)
    wxf, bxf = _linear(keys[6], IN_DIM, MEM_DIM)
    whf, bhf = _linear(keys[7], MEM_DIM, MEM_DIM)
    wx_fused = jnp.concatenate([wxi, wxo, wxu, wxf], axis=1)          # (32,128)
    wh_fused = jnp.concatenate([whi, who, whu, whf], axis=1)          # (32,128)
    b_fused = jnp.concatenate([bxi + bhi, bxo + bho, bxu + bhu, bxf + bhf], axis=1)
    node_params = (wx_fused, wh_fused, b_fused, whf, bxf + bhf)

    wh_full, bh = _linear(keys[8], 2 * MEM_DIM, HIDDEN_DIM)
    wp, bp = _linear(keys[9], HIDDEN_DIM, NUM_CLASSES)
    sim_params = (wh_full[:MEM_DIM], wh_full[MEM_DIM:], bh, wp, bp)
    return node_params, sim_params


# ----------------------------------------------------------------------------
# Pure-JAX reference (host recursion, mirrors the torch module) for validation
# ----------------------------------------------------------------------------
def _ref_tree_forward(tree, embs, node_params):
    wx_f, wh_f, b_f, whf_w, bf_b = node_params

    def rec(t):
        child_states = [rec(ch) for ch in t.children]
        if child_states:
            child_c = jnp.concatenate([c for c, _ in child_states], axis=0)
            child_h = jnp.concatenate([h for _, h in child_states], axis=0)
        else:
            child_c = jnp.zeros((1, MEM_DIM), jnp.float32)
            child_h = jnp.zeros((1, MEM_DIM), jnp.float32)
        x = embs[t.idx - 1][None, :]
        h_sum = jnp.sum(child_h, axis=0, keepdims=True)
        i = jax.nn.sigmoid(x @ wx_f[:, 0:32] + h_sum @ wh_f[:, 0:32] + b_f[:, 0:32])
        o = jax.nn.sigmoid(x @ wx_f[:, 32:64] + h_sum @ wh_f[:, 32:64] + b_f[:, 32:64])
        u = jnp.tanh(x @ wx_f[:, 64:96] + h_sum @ wh_f[:, 64:96] + b_f[:, 64:96])
        f = jax.nn.sigmoid(child_h @ whf_w + x @ wx_f[:, 96:128] + bf_b)
        fc = jnp.sum(f * child_c, axis=0, keepdims=True)
        c = i * u + fc
        h = o * jnp.tanh(c)
        return c, h

    return rec(tree)


def _ref_forward(ltree, linputs, rtree, rinputs, node_params, sim_params):
    wh1, wh2, bh, wp, bp = sim_params
    _, lh = _ref_tree_forward(ltree, linputs, node_params)
    _, rh = _ref_tree_forward(rtree, rinputs, node_params)
    mult = lh * rh
    absd = jnp.abs(lh - rh)
    hidden = jax.nn.sigmoid(mult @ wh1 + absd @ wh2 + bh)
    logits = hidden @ wp + bp
    return jax.nn.log_softmax(logits, axis=-1)


# ----------------------------------------------------------------------------
if __name__ == "__main__":
    key = jax.random.PRNGKey(0)
    kp, kl, kr = jax.random.split(key, 3)

    node_params, sim_params = init_params(kp)

    # Small example sentence embeddings: (SEQ, IN_DIM)
    linputs = jax.random.normal(kl, (SEQ, IN_DIM), jnp.float32)
    rinputs = jax.random.normal(kr, (SEQ, IN_DIM), jnp.float32)

    # Small example dependency trees (1-based node indices into the SEQ axis).
    #   left : 1 <- {2, 3 <- {4}}
    #   right: 2 <- {1, 3 <- {4, 5}}
    ltree = Tree(1, [Tree(2), Tree(3, [Tree(4)])])
    rtree = Tree(2, [Tree(1), Tree(3, [Tree(4), Tree(5)])])

    out = similarity_tree_lstm_forward(ltree, linputs, rtree, rinputs,
                                       node_params, sim_params)
    out = jax.block_until_ready(out)

    assert out.shape == (1, NUM_CLASSES)
    assert bool(jnp.all(jnp.isfinite(out)))
    # log-softmax row must exp-sum to ~1
    assert abs(float(jnp.sum(jnp.exp(out))) - 1.0) < 1e-4
    # match the pure-JAX reference of the torch module
    ref = _ref_forward(ltree, linputs, rtree, rinputs, node_params, sim_params)
    assert bool(jnp.allclose(out, ref, atol=1e-3, rtol=1e-3))

    print("KERNEL_OK")
</pallas_src>

<mosaic_0001>
module attributes {stable_mosaic.version = 11 : i64} {
  func.func @_tree_sim_kernel(%arg0: i32, %arg1: memref<24xi32, #tpu.memory_space<smem>>, %arg2: memref<24xi32, #tpu.memory_space<smem>>, %arg3: memref<96xi32, #tpu.memory_space<smem>>, %arg4: memref<2xi32, #tpu.memory_space<smem>>, %arg5: memref<16x32xf32, #tpu.memory_space<vmem>>, %arg6: memref<32x128xf32, #tpu.memory_space<vmem>>, %arg7: memref<32x128xf32, #tpu.memory_space<vmem>>, %arg8: memref<1x128xf32, #tpu.memory_space<vmem>>, %arg9: memref<32x32xf32, #tpu.memory_space<vmem>>, %arg10: memref<1x32xf32, #tpu.memory_space<vmem>>, %arg11: memref<32x32xf32, #tpu.memory_space<vmem>>, %arg12: memref<32x32xf32, #tpu.memory_space<vmem>>, %arg13: memref<1x32xf32, #tpu.memory_space<vmem>>, %arg14: memref<32x5xf32, #tpu.memory_space<vmem>>, %arg15: memref<1x5xf32, #tpu.memory_space<vmem>>, %arg16: memref<1x5xf32, #tpu.memory_space<vmem>>, %arg17: memref<24x32xf32, #tpu.memory_space<vmem>>, %arg18: memref<24x32xf32, #tpu.memory_space<vmem>>, %arg19: memref<8x32xf32, #tpu.memory_space<vmem>>, %arg20: memref<8x32xf32, #tpu.memory_space<vmem>>, %arg21: memref<32x32xf32, #tpu.memory_space<vmem>>, %arg22: memref<32x32xf32, #tpu.memory_space<vmem>>) attributes {dimension_semantics = [#tpu.dimension_semantics<arbitrary>], iteration_bounds = array<i64: 3>, scalar_prefetch = 4 : i64, scratch_operands = 6 : i64, tpu.core_type = #tpu.core_type<tc>, window_params = [{pipeline_mode = #tpu.pipeline_mode<synchronous>, transform_indices = @transform_0, window_bounds = array<i64: 16, 32>}, {pipeline_mode = #tpu.pipeline_mode<synchronous>, transform_indices = @transform_1, window_bounds = array<i64: 32, 128>}, {pipeline_mode = #tpu.pipeline_mode<synchronous>, transform_indices = @transform_2, window_bounds = array<i64: 32, 128>}, {pipeline_mode = #tpu.pipeline_mode<synchronous>, transform_indices = @transform_3, window_bounds = array<i64: 1, 128>}, {pipeline_mode = #tpu.pipeline_mode<synchronous>, transform_indices = @transform_4, window_bounds = array<i64: 32, 32>}, {pipeline_mode = #tpu.pipeline_mode<synchronous>, transform_indices = @transform_5, window_bounds = array<i64: 1, 32>}, {pipeline_mode = #tpu.pipeline_mode<synchronous>, transform_indices = @transform_6, window_bounds = array<i64: 32, 32>}, {pipeline_mode = #tpu.pipeline_mode<synchronous>, transform_indices = @transform_7, window_bounds = array<i64: 32, 32>}, {pipeline_mode = #tpu.pipeline_mode<synchronous>, transform_indices = @transform_8, window_bounds = array<i64: 1, 32>}, {pipeline_mode = #tpu.pipeline_mode<synchronous>, transform_indices = @transform_9, window_bounds = array<i64: 32, 5>}, {pipeline_mode = #tpu.pipeline_mode<synchronous>, transform_indices = @transform_10, window_bounds = array<i64: 1, 5>}, {pipeline_mode = #tpu.pipeline_mode<synchronous>, transform_indices = @transform_11, window_bounds = array<i64: 1, 5>}]} {
    %c0_i32 = arith.constant 0 : i32
    %0 = arith.cmpi eq, %arg0, %c0_i32 : i32
    %1 = arith.extui %0 : i1 to i32
    %c0_i32_0 = arith.constant 0 : i32
    %2 = arith.cmpi ne, %1, %c0_i32_0 : i32
    scf.if %2 {
      %cst_333 = arith.constant 0.000000e+00 : f32
      %686 = vector.broadcast %cst_333 : f32 to vector<24x32xf32>
      %c0_334 = arith.constant 0 : index
      %c0_335 = arith.constant 0 : index
      %687 = vector.load %arg17[%c0_334, %c0_335] : memref<24x32xf32, #tpu.memory_space<vmem>>, vector<24x32xf32>
      tpu.vector_store %arg17[%c0_334, %c0_335], %686 {strides = array<i32>} : memref<24x32xf32, #tpu.memory_space<vmem>>, vector<24x32xf32>,
      %cst_336 = arith.constant 0.000000e+00 : f32
      %688 = vector.broadcast %cst_336 : f32 to vector<24x32xf32>
      %c0_337 = arith.constant 0 : index
      %c0_338 = arith.constant 0 : index
      %689 = vector.load %arg18[%c0_337, %c0_338] : memref<24x32xf32, #tpu.memory_space<vmem>>, vector<24x32xf32>
      tpu.vector_store %arg18[%c0_337, %c0_338], %688 {strides = array<i32>} : memref<24x32xf32, #tpu.memory_space<vmem>>, vector<24x32xf32>,
    } else {
    }
    %c8_i32 = arith.constant 8 : i32
    %3 = arith.muli %arg0, %c8_i32 : i32
    %c32_i32 = arith.constant 32 : i32
    %4 = arith.muli %arg0, %c32_i32 : i32
    %c0_i32_1 = arith.constant 0 : i32
    %5 = arith.addi %3, %c0_i32_1 : i32
    %6 = arith.index_cast %5 : i32 to index
    %7 = memref.load %arg1[%6] : memref<24xi32, #tpu.memory_space<smem>>
    %8 = arith.index_cast %7 : i32 to index
    %c0 = arith.constant 0 : index
    %9 = vector.load %arg5[%8, %c0] : memref<16x32xf32, #tpu.memory_space<vmem>>, vector<1x32xf32>
    %c0_2 = arith.constant 0 : index
    %c0_3 = arith.constant 0 : index
    %10 = vector.load %arg19[%c0_2, %c0_3] : memref<8x32xf32, #tpu.memory_space<vmem>>, vector<1x32xf32>
    tpu.vector_store %arg19[%c0_2, %c0_3], %9 {strides = array<i32>} : memref<8x32xf32, #tpu.memory_space<vmem>>, vector<1x32xf32>,
    %cst = arith.constant 0.000000e+00 : f32
    %11 = vector.broadcast %cst : f32 to vector<1x32xf32>
    %c0_i32_4 = arith.constant 0 : i32
    %12 = arith.addi %4, %c0_i32_4 : i32
    %c0_i32_5 = arith.constant 0 : i32
    %13 = arith.addi %12, %c0_i32_5 : i32
    %14 = arith.index_cast %13 : i32 to index
    %15 = memref.load %arg3[%14] : memref<96xi32, #tpu.memory_space<smem>>
    %16 = arith.index_cast %15 : i32 to index
    %c0_6 = arith.constant 0 : index
    %17 = vector.load %arg18[%16, %c0_6] : memref<24x32xf32, #tpu.memory_space<vmem>>, vector<1x32xf32>
    %18 = arith.index_cast %15 : i32 to index
    %c0_7 = arith.constant 0 : index
    %19 = vector.load %arg17[%18, %c0_7] : memref<24x32xf32, #tpu.memory_space<vmem>>, vector<1x32xf32>
    %c0_8 = arith.constant 0 : index
    %c0_9 = arith.constant 0 : index
    %20 = vector.load %arg21[%c0_8, %c0_9] : memref<32x32xf32, #tpu.memory_space<vmem>>, vector<1x32xf32>
    tpu.vector_store %arg21[%c0_8, %c0_9], %17 {strides = array<i32>} : memref<32x32xf32, #tpu.memory_space<vmem>>, vector<1x32xf32>,
    %c0_10 = arith.constant 0 : index
    %c0_11 = arith.constant 0 : index
    %21 = vector.load %arg22[%c0_10, %c0_11] : memref<32x32xf32, #tpu.memory_space<vmem>>, vector<1x32xf32>
    tpu.vector_store %arg22[%c0_10, %c0_11], %19 {strides = array<i32>} : memref<32x32xf32, #tpu.memory_space<vmem>>, vector<1x32xf32>,
    %22 = arith.addf %11, %17 : vector<1x32xf32>
    %c0_i32_12 = arith.constant 0 : i32
    %23 = arith.addi %4, %c0_i32_12 : i32
    %c1_i32 = arith.constant 1 : i32
    %24 = arith.addi %23, %c1_i32 : i32
    %25 = arith.index_cast %24 : i32 to index
    %26 = memref.load %arg3[%25] : memref<96xi32, #tpu.memory_space<smem>>
    %27 = arith.index_cast %26 : i32 to index
    %c0_13 = arith.constant 0 : index
    %28 = vector.load %arg18[%27, %c0_13] : memref<24x32xf32, #tpu.memory_space<vmem>>, vector<1x32xf32>
    %29 = arith.index_cast %26 : i32 to index
    %c0_14 = arith.constant 0 : index
    %30 = vector.load %arg17[%29, %c0_14] : memref<24x32xf32, #tpu.memory_space<vmem>>, vector<1x32xf32>
    %c1 = arith.constant 1 : index
    %c0_15 = arith.constant 0 : index
    %31 = vector.load %arg21[%c1, %c0_15] : memref<32x32xf32, #tpu.memory_space<vmem>>, vector<1x32xf32>
    tpu.vector_store %arg21[%c1, %c0_15], %28 {strides = array<i32>} : memref<32x32xf32, #tpu.memory_space<vmem>>, vector<1x32xf32>,
    %c1_16 = arith.constant 1 : index
    %c0_17 = arith.constant 0 : index
    %32 = vector.load %arg22[%c1_16, %c0_17] : memref<32x32xf32, #tpu.memory_space<vmem>>, vector<1x32xf32>
    tpu.vector_store %arg22[%c1_16, %c0_17], %30 {strides = array<i32>} : memref<32x32xf32, #tpu.memory_space<vmem>>, vector<1x32xf32>,
    %33 = arith.addf %22, %28 : vector<1x32xf32>
    %c0_i32_18 = arith.constant 0 : i32
    %34 = arith.addi %4, %c0_i32_18 : i32
    %c2_i32 = arith.constant 2 : i32
    %35 = arith.addi %34, %c2_i32 : i32
    %36 = arith.index_cast %35 : i32 to index
    %37 = memref.load %arg3[%36] : memref<96xi32, #tpu.memory_space<smem>>
    %38 = arith.index_cast %37 : i32 to index
    %c0_19 = arith.constant 0 : index
    %39 = vector.load %arg18[%38, %c0_19] : memref<24x32xf32, #tpu.memory_space<vmem>>, vector<1x32xf32>
    %40 = arith.index_cast %37 : i32 to index
    %c0_20 = arith.constant 0 : index
    %41 = vector.load %arg17[%40, %c0_20] : memref<24x32xf32, #tpu.memory_space<vmem>>, vector<1x32xf32>
    %c2 = arith.constant 2 : index
    %c0_21 = arith.constant 0 : index
    %42 = vector.load %arg21[%c2, %c0_21] : memref<32x32xf32, #tpu.memory_space<vmem>>, vector<1x32xf32>
    tpu.vector_store %arg21[%c2, %c0_21], %39 {strides = array<i32>} : memref<32x32xf32, #tpu.memory_space<vmem>>, vector<1x32xf32>,
    %c2_22 = arith.constant 2 : index
    %c0_23 = arith.constant 0 : index
    %43 = vector.load %arg22[%c2_22, %c0_23] : memref<32x32xf32, #tpu.memory_space<vmem>>, vector<1x32xf32>
    tpu.vector_store %arg22[%c2_22, %c0_23], %41 {strides = array<i32>} : memref<32x32xf32, #tpu.memory_space<vmem>>, vector<1x32xf32>,
    %44 = arith.addf %33, %39 : vector<1x32xf32>
    %c0_i32_24 = arith.constant 0 : i32
    %45 = arith.addi %4, %c0_i32_24 : i32
    %c3_i32 = arith.constant 3 : i32
    %46 = arith.addi %45, %c3_i32 : i32
    %47 = arith.index_cast %46 : i32 to index
    %48 = memref.load %arg3[%47] : memref<96xi32, #tpu.memory_space<smem>>
    %49 = arith.index_cast %48 : i32 to index
    %c0_25 = arith.constant 0 : index
    %50 = vector.load %arg18[%49, %c0_25] : memref<24x32xf32, #tpu.memory_space<vmem>>, vector<1x32xf32>
    %51 = arith.index_cast %48 : i32 to index
    %c0_26 = arith.constant 0 : index
    %52 = vector.load %arg17[%51, %c0_26] : memref<24x32xf32, #tpu.memory_space<vmem>>, vector<1x32xf32>
    %c3 = arith.constant 3 : index
    %c0_27 = arith.constant 0 : index
    %53 = vector.load %arg21[%c3, %c0_27] : memref<32x32xf32, #tpu.memory_space<vmem>>, vector<1x32xf32>
    tpu.vector_store %arg21[%c3, %c0_27], %50 {strides = array<i32>} : memref<32x32xf32, #tpu.memory_space<vmem>>, vector<1x32xf32>,
    %c3_28 = arith.constant 3 : index
    %c0_29 = arith.constant 0 : index
    %54 = vector.load %arg22[%c3_28, %c0_29] : memref<32x32xf32, #tpu.memory_space<vmem>>, vector<1x32xf32>
    tpu.vector_store %arg22[%c3_28, %c0_29], %52 {strides = array<i32>} : memref<32x32xf32, #tpu.memory_space<vmem>>, vector<1x32xf32>,
    %55 = arith.addf %44, %50 : vector<1x32xf32>
    %c0_30 = arith.constant 0 : index
    %c0_31 = arith.constant 0 : index
    %56 = vector.load %arg20[%c0_30, %c0_31] : memref<8x32xf32, #tpu.memory_space<vmem>>, vector<1x32xf32>
    tpu.vector_store %arg20[%c0_30, %c0_31], %55 {strides = array<i32>} : memref<8x32xf32, #tpu.memory_space<vmem>>, vector<1x32xf32>,
    %c1_i32_32 = arith.constant 1 : i32
    %57 = arith.addi %3, %c1_i32_32 : i32
    %58 = arith.index_cast %57 : i32 to index
    %59 = memref.load %arg1[%58] : memref<24xi32, #tpu.memory_space<smem>>
    %60 = arith.index_cast %59 : i32 to index
    %c0_33 = arith.constant 0 : index
    %61 = vector.load %arg5[%60, %c0_33] : memref<16x32xf32, #tpu.memory_space<vmem>>, vector<1x32xf32>
    %c1_34 = arith.constant 1 : index
    %c0_35 = arith.constant 0 : index
    %62 = vector.load %arg19[%c1_34, %c0_35] : memref<8x32xf32, #tpu.memory_space<vmem>>, vector<1x32xf32>
    tpu.vector_store %arg19[%c1_34, %c0_35], %61 {strides = array<i32>} : memref<8x32xf32, #tpu.memory_space<vmem>>, vector<1x32xf32>,
    %cst_36 = arith.constant 0.000000e+00 : f32
    %63 = vector.broadcast %cst_36 : f32 to vector<1x32xf32>
    %c4_i32 = arith.constant 4 : i32
    %64 = arith.addi %4, %c4_i32 : i32
    %c0_i32_37 = arith.constant 0 : i32
    %65 = arith.addi %64, %c0_i32_37 : i32
    %66 = arith.index_cast %65 : i32 to index
    %67 = memref.load %arg3[%66] : memref<96xi32, #tpu.memory_space<smem>>
    %68 = arith.index_cast %67 : i32 to index
    %c0_38 = arith.constant 0 : index
    %69 = vector.load %arg18[%68, %c0_38] : memref<24x32xf32, #tpu.memory_space<vmem>>, vector<1x32xf32>
    %70 = arith.index_cast %67 : i32 to index
    %c0_39 = arith.constant 0 : index
    %71 = vector.load %arg17[%70, %c0_39] : memref<24x32xf32, #tpu.memory_space<vmem>>, vector<1x32xf32>
    %c4 = arith.constant 4 : index
    %c0_40 = arith.constant 0 : index
    %72 = vector.load %arg21[%c4, %c0_40] : memref<32x32xf32, #tpu.memory_space<vmem>>, vector<1x32xf32>
    tpu.vector_store %arg21[%c4, %c0_40], %69 {strides = array<i32>} : memref<32x32xf32, #tpu.memory_space<vmem>>, vector<1x32xf32>,
    %c4_41 = arith.constant 4 : index
    %c0_42 = arith.constant 0 : index
    %73 = vector.load %arg22[%c4_41, %c0_42] : memref<32x32xf32, #tpu.memory_space<vmem>>, vector<1x32xf32>
    tpu.vector_store %arg22[%c4_41, %c0_42], %71 {strides = array<i32>} : memref<32x32xf32, #tpu.memory_space<vmem>>, vector<1x32xf32>,
    %74 = arith.addf %63, %69 : vector<1x32xf32>
    %c4_i32_43 = arith.constant 4 : i32
    %75 = arith.addi %4, %c4_i32_43 : i32
    %c1_i32_44 = arith.constant 1 : i32
    %76 = arith.addi %75, %c1_i32_44 : i32
    %77 = arith.index_cast %76 : i32 to index
    %78 = memref.load %arg3[%77] : memref<96xi32, #tpu.memory_space<smem>>
    %79 = arith.index_cast %78 : i32 to index
    %c0_45 = arith.constant 0 : index
    %80 = vector.load %arg18[%79, %c0_45] : memref<24x32xf32, #tpu.memory_space<vmem>>, vector<1x32xf32>
    %81 = arith.index_cast %78 : i32 to index
    %c0_46 = arith.constant 0 : index
    %82 = vector.load %arg17[%81, %c0_46] : memref<24x32xf32, #tpu.memory_space<vmem>>, vector<1x32xf32>
    %c5 = arith.constant 5 : index
    %c0_47 = arith.constant 0 : index
    %83 = vector.load %arg21[%c5, %c0_47] : memref<32x32xf32, #tpu.memory_space<vmem>>, vector<1x32xf32>
    tpu.vector_store %arg21[%c5, %c0_47], %80 {strides = array<i32>} : memref<32x32xf32, #tpu.memory_space<vmem>>, vector<1x32xf32>,
    %c5_48 = arith.constant 5 : index
    %c0_49 = arith.constant 0 : index
    %84 = vector.load %arg22[%c5_48, %c0_49] : memref<32x32xf32, #tpu.memory_space<vmem>>, vector<1x32xf32>
    tpu.vector_store %arg22[%c5_48, %c0_49], %82 {strides = array<i32>} : memref<32x32xf32, #tpu.memory_space<vmem>>, vector<1x32xf32>,
    %85 = arith.addf %74, %80 : vector<1x32xf32>
    %c4_i32_50 = arith.constant 4 : i32
    %86 = arith.addi %4, %c4_i32_50 : i32
    %c2_i32_51 = arith.constant 2 : i32
    %87 = arith.addi %86, %c2_i32_51 : i32
    %88 = arith.index_cast %87 : i32 to index
    %89 = memref.load %arg3[%88] : memref<96xi32, #tpu.memory_space<smem>>
    %90 = arith.index_cast %89 : i32 to index
    %c0_52 = arith.constant 0 : index
    %91 = vector.load %arg18[%90, %c0_52] : memref<24x32xf32, #tpu.memory_space<vmem>>, vector<1x32xf32>
    %92 = arith.index_cast %89 : i32 to index
    %c0_53 = arith.constant 0 : index
    %93 = vector.load %arg17[%92, %c0_53] : memref<24x32xf32, #tpu.memory_space<vmem>>, vector<1x32xf32>
    %c6 = arith.constant 6 : index
    %c0_54 = arith.constant 0 : index
    %94 = vector.load %arg21[%c6, %c0_54] : memref<32x32xf32, #tpu.memory_space<vmem>>, vector<1x32xf32>
    tpu.vector_store %arg21[%c6, %c0_54], %91 {strides = array<i32>} : memref<32x32xf32, #tpu.memory_space<vmem>>, vector<1x32xf32>,
    %c6_55 = arith.constant 6 : index
    %c0_56 = arith.constant 0 : index
    %95 = vector.load %arg22[%c6_55, %c0_56] : memref<32x32xf32, #tpu.memory_space<vmem>>, vector<1x32xf32>
    tpu.vector_store %arg22[%c6_55, %c0_56], %93 {strides = array<i32>} : memref<32x32xf32, #tpu.memory_space<vmem>>, vector<1x32xf32>,
    %96 = arith.addf %85, %91 : vector<1x32xf32>
    %c4_i32_57 = arith.constant 4 : i32
    %97 = arith.addi %4, %c4_i32_57 : i32
    %c3_i32_58 = arith.constant 3 : i32
    %98 = arith.addi %97, %c3_i32_58 : i32
    %99 = arith.index_cast %98 : i32 to index
    %100 = memref.load %arg3[%99] : memref<96xi32, #tpu.memory_space<smem>>
    %101 = arith.index_cast %100 : i32 to index
    %c0_59 = arith.constant 0 : index
    %102 = vector.load %arg18[%101, %c0_59] : memref<24x32xf32, #tpu.memory_space<vmem>>, vector<1x32xf32>
    %103 = arith.index_cast %100 : i32 to index
    %c0_60 = arith.constant 0 : index
    %104 = vector.load %arg17[%103, %c0_60] : memref<24x32xf32, #tpu.memory_space<vmem>>, vector<1x32xf32>
    %c7 = arith.constant 7 : index
    %c0_61 = arith.constant 0 : index
    %105 = vector.load %arg21[%c7, %c0_61] : memref<32x32xf32, #tpu.memory_space<vmem>>, vector<1x32xf32>
    tpu.vector_store %arg21[%c7, %c0_61], %102 {strides = array<i32>} : memref<32x32xf32, #tpu.memory_space<vmem>>, vector<1x32xf32>,
    %c7_62 = arith.constant 7 : index
    %c0_63 = arith.constant 0 : index
    %106 = vector.load %arg22[%c7_62, %c0_63] : memref<32x32xf32, #tpu.memory_space<vmem>>, vector<1x32xf32>
    tpu.vector_store %arg22[%c7_62, %c0_63], %104 {strides = array<i32>} : memref<32x32xf32, #tpu.memory_space<vmem>>, vector<1x32xf32>,
    %107 = arith.addf %96, %102 : vector<1x32xf32>
    %c1_64 = arith.constant 1 : index
    %c0_65 = arith.constant 0 : index
    %108 = vector.load %arg20[%c1_64, %c0_65] : memref<8x32xf32, #tpu.memory_space<vmem>>, vector<1x32xf32>
    tpu.vector_store %arg20[%c1_64, %c0_65], %107 {strides = array<i32>} : memref<8x32xf32, #tpu.memory_space<vmem>>, vector<1x32xf32>,
    %c2_i32_66 = arith.constant 2 : i32
    %109 = arith.addi %3, %c2_i32_66 : i32
    %110 = arith.index_cast %109 : i32 to index
    %111 = memref.load %arg1[%110] : memref<24xi32, #tpu.memory_space<smem>>
    %112 = arith.index_cast %111 : i32 to index
    %c0_67 = arith.constant 0 : index
    %113 = vector.load %arg5[%112, %c0_67] : memref<16x32xf32, #tpu.memory_space<vmem>>, vector<1x32xf32>
    %c2_68 = arith.constant 2 : index
    %c0_69 = arith.constant 0 : index
    %114 = vector.load %arg19[%c2_68, %c0_69] : memref<8x32xf32, #tpu.memory_space<vmem>>, vector<1x32xf32>
    tpu.vector_store %arg19[%c2_68, %c0_69], %113 {strides = array<i32>} : memref<8x32xf32, #tpu.memory_space<vmem>>, vector<1x32xf32>,
    %cst_70 = arith.constant 0.000000e+00 : f32
    %115 = vector.broadcast %cst_70 : f32 to vector<1x32xf32>
    %c8_i32_71 = arith.constant 8 : i32
    %116 = arith.addi %4, %c8_i32_71 : i32
    %c0_i32_72 = arith.constant 0 : i32
    %117 = arith.addi %116, %c0_i32_72 : i32
    %118 = arith.index_cast %117 : i32 to index
    %119 = memref.load %arg3[%118] : memref<96xi32, #tpu.memory_space<smem>>
    %120 = arith.index_cast %119 : i32 to index
    %c0_73 = arith.constant 0 : index
    %121 = vector.load %arg18[%120, %c0_73] : memref<24x32xf32, #tpu.memory_space<vmem>>, vector<1x32xf32>
    %122 = arith.index_cast %119 : i32 to index
    %c0_74 = arith.constant 0 : index
    %123 = vector.load %arg17[%122, %c0_74] : memref<24x32xf32, #tpu.memory_space<vmem>>, vector<1x32xf32>
    %c8 = arith.constant 8 : index
    %c0_75 = arith.constant 0 : index
    %124 = vector.load %arg21[%c8, %c0_75] : memref<32x32xf32, #tpu.memory_space<vmem>>, vector<1x32xf32>
    tpu.vector_store %arg21[%c8, %c0_75], %121 {strides = array<i32>} : memref<32x32xf32, #tpu.memory_space<vmem>>, vector<1x32xf32>,
    %c8_76 = arith.constant 8 : index
    %c0_77 = arith.constant 0 : index
    %125 = vector.load %arg22[%c8_76, %c0_77] : memref<32x32xf32, #tpu.memory_space<vmem>>, vector<1x32xf32>
    tpu.vector_store %arg22[%c8_76, %c0_77], %123 {strides = array<i32>} : memref<32x32xf32, #tpu.memory_space<vmem>>, vector<1x32xf32>,
    %126 = arith.addf %115, %121 : vector<1x32xf32>
    %c8_i32_78 = arith.constant 8 : i32
    %127 = arith.addi %4, %c8_i32_78 : i32
    %c1_i32_79 = arith.constant 1 : i32
    %128 = arith.addi %127, %c1_i32_79 : i32
    %129 = arith.index_cast %128 : i32 to index
    %130 = memref.load %arg3[%129] : memref<96xi32, #tpu.memory_space<smem>>
    %131 = arith.index_cast %130 : i32 to index
    %c0_80 = arith.constant 0 : index
    %132 = vector.load %arg18[%131, %c0_80] : memref<24x32xf32, #tpu.memory_space<vmem>>, vector<1x32xf32>
    %133 = arith.index_cast %130 : i32 to index
    %c0_81 = arith.constant 0 : index
    %134 = vector.load %arg17[%133, %c0_81] : memref<24x32xf32, #tpu.memory_space<vmem>>, vector<1x32xf32>
    %c9 = arith.constant 9 : index
    %c0_82 = arith.constant 0 : index
    %135 = vector.load %arg21[%c9, %c0_82] : memref<32x32xf32, #tpu.memory_space<vmem>>, vector<1x32xf32>
    tpu.vector_store %arg21[%c9, %c0_82], %132 {strides = array<i32>} : memref<32x32xf32, #tpu.memory_space<vmem>>, vector<1x32xf32>,
    %c9_83 = arith.constant 9 : index
    %c0_84 = arith.constant 0 : index
    %136 = vector.load %arg22[%c9_83, %c0_84] : memref<32x32xf32, #tpu.memory_space<vmem>>, vector<1x32xf32>
    tpu.vector_store %arg22[%c9_83, %c0_84], %134 {strides = array<i32>} : memref<32x32xf32, #tpu.memory_space<vmem>>, vector<1x32xf32>,
    %137 = arith.addf %126, %132 : vector<1x32xf32>
    %c8_i32_85 = arith.constant 8 : i32
    %138 = arith.addi %4, %c8_i32_85 : i32
    %c2_i32_86 = arith.constant 2 : i32
    %139 = arith.addi %138, %c2_i32_86 : i32
    %140 = arith.index_cast %139 : i32 to index
    %141 = memref.load %arg3[%140] : memref<96xi32, #tpu.memory_space<smem>>
    %142 = arith.index_cast %141 : i32 to index
    %c0_87 = arith.constant 0 : index
    %143 = vector.load %arg18[%142, %c0_87] : memref<24x32xf32, #tpu.memory_space<vmem>>, vector<1x32xf32>
    %144 = arith.index_cast %141 : i32 to index
    %c0_88 = arith.constant 0 : index
    %145 = vector.load %arg17[%144, %c0_88] : memref<24x32xf32, #tpu.memory_space<vmem>>, vector<1x32xf32>
    %c10 = arith.constant 10 : index
    %c0_89 = arith.constant 0 : index
    %146 = vector.load %arg21[%c10, %c0_89] : memref<32x32xf32, #tpu.memory_space<vmem>>, vector<1x32xf32>
    tpu.vector_store %arg21[%c10, %c0_89], %143 {strides = array<i32>} : memref<32x32xf32, #tpu.memory_space<vmem>>, vector<1x32xf32>,
    %c10_90 = arith.constant 10 : index
    %c0_91 = arith.constant 0 : index
    %147 = vector.load %arg22[%c10_90, %c0_91] : memref<32x32xf32, #tpu.memory_space<vmem>>, vector<1x32xf32>
    tpu.vector_store %arg22[%c10_90, %c0_91], %145 {strides = array<i32>} : memref<32x32xf32, #tpu.memory_space<vmem>>, vector<1x32xf32>,
    %148 = arith.addf %137, %143 : vector<1x32xf32>
    %c8_i32_92 = arith.constant 8 : i32
    %149 = arith.addi %4, %c8_i32_92 : i32
    %c3_i32_93 = arith.constant 3 : i32
    %150 = arith.addi %149, %c3_i32_93 : i32
    %151 = arith.index_cast %150 : i32 to index
    %152 = memref.load %arg3[%151] : memref<96xi32, #tpu.memory_space<smem>>
    %153 = arith.index_cast %152 : i32 to index
    %c0_94 = arith.constant 0 : index
    %154 = vector.load %arg18[%153, %c0_94] : memref<24x32xf32, #tpu.memory_space<vmem>>, vector<1x32xf32>
    %155 = arith.index_cast %152 : i32 to index
    %c0_95 = arith.constant 0 : index
    %156 = vector.load %arg17[%155, %c0_95] : memref<24x32xf32, #tpu.memory_space<vmem>>, vector<1x32xf32>
    %c11 = arith.constant 11 : index
    %c0_96 = arith.constant 0 : index
    %157 = vector.load %arg21[%c11, %c0_96] : memref<32x32xf32, #tpu.memory_space<vmem>>, vector<1x32xf32>
    tpu.vector_store %arg21[%c11, %c0_96], %154 {strides = array<i32>} : memref<32x32xf32, #tpu.memory_space<vmem>>, vector<1x32xf32>,
    %c11_97 = arith.constant 11 : index
    %c0_98 = arith.constant 0 : index
    %158 = vector.load %arg22[%c11_97, %c0_98] : memref<32x32xf32, #tpu.memory_space<vmem>>, vector<1x32xf32>
    tpu.vector_store %arg22[%c11_97, %c0_98], %156 {strides = array<i32>} : memref<32x32xf32, #tpu.memory_space<vmem>>, vector<1x32xf32>,
    %159 = arith.addf %148, %154 : vector<1x32xf32>
    %c2_99 = arith.constant 2 : index
    %c0_100 = arith.constant 0 : index
    %160 = vector.load %arg20[%c2_99, %c0_100] : memref<8x32xf32, #tpu.memory_space<vmem>>, vector<1x32xf32>
    tpu.vector_store %arg20[%c2_99, %c0_100], %159 {strides = array<i32>} : memref<8x32xf32, #tpu.memory_space<vmem>>, vector<1x32xf32>,
    %c3_i32_101 = arith.constant 3 : i32
    %161 = arith.addi %3, %c3_i32_101 : i32
    %162 = arith.index_cast %161 : i32 to index
    %163 = memref.load %arg1[%162] : memref<24xi32, #tpu.memory_space<smem>>
    %164 = arith.index_cast %163 : i32 to index
    %c0_102 = arith.constant 0 : index
    %165 = vector.load %arg5[%164, %c0_102] : memref<16x32xf32, #tpu.memory_space<vmem>>, vector<1x32xf32>
    %c3_103 = arith.constant 3 : index
    %c0_104 = arith.constant 0 : index
    %166 = vector.load %arg19[%c3_103, %c0_104] : memref<8x32xf32, #tpu.memory_space<vmem>>, vector<1x32xf32>
    tpu.vector_store %arg19[%c3_103, %c0_104], %165 {strides = array<i32>} : memref<8x32xf32, #tpu.memory_space<vmem>>, vector<1x32xf32>,
    %cst_105 = arith.constant 0.000000e+00 : f32
    %167 = vector.broadcast %cst_105 : f32 to vector<1x32xf32>
    %c12_i32 = arith.constant 12 : i32
    %168 = arith.addi %4, %c12_i32 : i32
    %c0_i32_106 = arith.constant 0 : i32
    %169 = arith.addi %168, %c0_i32_106 : i32
    %170 = arith.index_cast %169 : i32 to index
    %171 = memref.load %arg3[%170] : memref<96xi32, #tpu.memory_space<smem>>
    %172 = arith.index_cast %171 : i32 to index
    %c0_107 = arith.constant 0 : index
    %173 = vector.load %arg18[%172, %c0_107] : memref<24x32xf32, #tpu.memory_space<vmem>>, vector<1x32xf32>
    %174 = arith.index_cast %171 : i32 to index
    %c0_108 = arith.constant 0 : index
    %175 = vector.load %arg17[%174, %c0_108] : memref<24x32xf32, #tpu.memory_space<vmem>>, vector<1x32xf32>
    %c12 = arith.constant 12 : index
    %c0_109 = arith.constant 0 : index
    %176 = vector.load %arg21[%c12, %c0_109] : memref<32x32xf32, #tpu.memory_space<vmem>>, vector<1x32xf32>
    tpu.vector_store %arg21[%c12, %c0_109], %173 {strides = array<i32>} : memref<32x32xf32, #tpu.memory_space<vmem>>, vector<1x32xf32>,
    %c12_110 = arith.constant 12 : index
    %c0_111 = arith.constant 0 : index
    %177 = vector.load %arg22[%c12_110, %c0_111] : memref<32x32xf32, #tpu.memory_space<vmem>>, vector<1x32xf32>
    tpu.vector_store %arg22[%c12_110, %c0_111], %175 {strides = array<i32>} : memref<32x32xf32, #tpu.memory_space<vmem>>, vector<1x32xf32>,
    %178 = arith.addf %167, %173 : vector<1x32xf32>
    %c12_i32_112 = arith.constant 12 : i32
    %179 = arith.addi %4, %c12_i32_112 : i32
    %c1_i32_113 = arith.constant 1 : i32
    %180 = arith.addi %179, %c1_i32_113 : i32
    %181 = arith.index_cast %180 : i32 to index
    %182 = memref.load %arg3[%181] : memref<96xi32, #tpu.memory_space<smem>>
    %183 = arith.index_cast %182 : i32 to index
    %c0_114 = arith.constant 0 : index
    %184 = vector.load %arg18[%183, %c0_114] : memref<24x32xf32, #tpu.memory_space<vmem>>, vector<1x32xf32>
    %185 = arith.index_cast %182 : i32 to index
    %c0_115 = arith.constant 0 : index
    %186 = vector.load %arg17[%185, %c0_115] : memref<24x32xf32, #tpu.memory_space<vmem>>, vector<1x32xf32>
    %c13 = arith.constant 13 : index
    %c0_116 = arith.constant 0 : index
    %187 = vector.load %arg21[%c13, %c0_116] : memref<32x32xf32, #tpu.memory_space<vmem>>, vector<1x32xf32>
    tpu.vector_store %arg21[%c13, %c0_116], %184 {strides = array<i32>} : memref<32x32xf32, #tpu.memory_space<vmem>>, vector<1x32xf32>,
    %c13_117 = arith.constant 13 : index
    %c0_118 = arith.constant 0 : index
    %188 = vector.load %arg22[%c13_117, %c0_118] : memref<32x32xf32, #tpu.memory_space<vmem>>, vector<1x32xf32>
    tpu.vector_store %arg22[%c13_117, %c0_118], %186 {strides = array<i32>} : memref<32x32xf32, #tpu.memory_space<vmem>>, vector<1x32xf32>,
    %189 = arith.addf %178, %184 : vector<1x32xf32>
    %c12_i32_119 = arith.constant 12 : i32
    %190 = arith.addi %4, %c12_i32_119 : i32
    %c2_i32_120 = arith.constant 2 : i32
    %191 = arith.addi %190, %c2_i32_120 : i32
    %192 = arith.index_cast %191 : i32 to index
    %193 = memref.load %arg3[%192] : memref<96xi32, #tpu.memory_space<smem>>
    %194 = arith.index_cast %193 : i32 to index
    %c0_121 = arith.constant 0 : index
    %195 = vector.load %arg18[%194, %c0_121] : memref<24x32xf32, #tpu.memory_space<vmem>>, vector<1x32xf32>
    %196 = arith.index_cast %193 : i32 to index
    %c0_122 = arith.constant 0 : index
    %197 = vector.load %arg17[%196, %c0_122] : memref<24x32xf32, #tpu.memory_space<vmem>>, vector<1x32xf32>
    %c14 = arith.constant 14 : index
    %c0_123 = arith.constant 0 : index
    %198 = vector.load %arg21[%c14, %c0_123] : memref<32x32xf32, #tpu.memory_space<vmem>>, vector<1x32xf32>
    tpu.vector_store %arg21[%c14, %c0_123], %195 {strides = array<i32>} : memref<32x32xf32, #tpu.memory_space<vmem>>, vector<1x32xf32>,
    %c14_124 = arith.constant 14 : index
    %c0_125 = arith.constant 0 : index
    %199 = vector.load %arg22[%c14_124, %c0_125] : memref<32x32xf32, #tpu.memory_space<vmem>>, vector<1x32xf32>
    tpu.vector_store %arg22[%c14_124, %c0_125], %197 {strides = array<i32>} : memref<32x32xf32, #tpu.memory_space<vmem>>, vector<1x32xf32>,
    %200 = arith.addf %189, %195 : vector<1x32xf32>
    %c12_i32_126 = arith.constant 12 : i32
    %201 = arith.addi %4, %c12_i32_126 : i32
    %c3_i32_127 = arith.constant 3 : i32
    %202 = arith.addi %201, %c3_i32_127 : i32
    %203 = arith.index_cast %202 : i32 to index
    %204 = memref.load %arg3[%203] : memref<96xi32, #tpu.memory_space<smem>>
    %205 = arith.index_cast %204 : i32 to index
    %c0_128 = arith.constant 0 : index
    %206 = vector.load %arg18[%205, %c0_128] : memref<24x32xf32, #tpu.memory_space<vmem>>, vector<1x32xf32>
    %207 = arith.index_cast %204 : i32 to index
    %c0_129 = arith.constant 0 : index
    %208 = vector.load %arg17[%207, %c0_129] : memref<24x32xf32, #tpu.memory_space<vmem>>, vector<1x32xf32>
    %c15 = arith.constant 15 : index
    %c0_130 = arith.constant 0 : index
    %209 = vector.load %arg21[%c15, %c0_130] : memref<32x32xf32, #tpu.memory_space<vmem>>, vector<1x32xf32>
    tpu.vector_store %arg21[%c15, %c0_130], %206 {strides = array<i32>} : memref<32x32xf32, #tpu.memory_space<vmem>>, vector<1x32xf32>,
    %c15_131 = arith.constant 15 : index
    %c0_132 = arith.constant 0 : index
    %210 = vector.load %arg22[%c15_131, %c0_132] : memref<32x32xf32, #tpu.memory_space<vmem>>, vector<1x32xf32>
    tpu.vector_store %arg22[%c15_131, %c0_132], %208 {strides = array<i32>} : memref<32x32xf32, #tpu.memory_space<vmem>>, vector<1x32xf32>,
    %211 = arith.addf %200, %206 : vector<1x32xf32>
    %c3_133 = arith.constant 3 : index
    %c0_134 = arith.constant 0 : index
    %212 = vector.load %arg20[%c3_133, %c0_134] : memref<8x32xf32, #tpu.memory_space<vmem>>, vector<1x32xf32>
    tpu.vector_store %arg20[%c3_133, %c0_134], %211 {strides = array<i32>} : memref<8x32xf32, #tpu.memory_space<vmem>>, vector<1x32xf32>,
    %c4_i32_135 = arith.constant 4 : i32
    %213 = arith.addi %3, %c4_i32_135 : i32
    %214 = arith.index_cast %213 : i32 to index
    %215 = memref.load %arg1[%214] : memref<24xi32, #tpu.memory_space<smem>>
    %216 = arith.index_cast %215 : i32 to index
    %c0_136 = arith.constant 0 : index
    %217 = vector.load %arg5[%216, %c0_136] : memref<16x32xf32, #tpu.memory_space<vmem>>, vector<1x32xf32>
    %c4_137 = arith.constant 4 : index
    %c0_138 = arith.constant 0 : index
    %218 = vector.load %arg19[%c4_137, %c0_138] : memref<8x32xf32, #tpu.memory_space<vmem>>, vector<1x32xf32>
    tpu.vector_store %arg19[%c4_137, %c0_138], %217 {strides = array<i32>} : memref<8x32xf32, #tpu.memory_space<vmem>>, vector<1x32xf32>,
    %cst_139 = arith.constant 0.000000e+00 : f32
    %219 = vector.broadcast %cst_139 : f32 to vector<1x32xf32>
    %c16_i32 = arith.constant 16 : i32
    %220 = arith.addi %4, %c16_i32 : i32
    %c0_i32_140 = arith.constant 0 : i32
    %221 = arith.addi %220, %c0_i32_140 : i32
    %222 = arith.index_cast %221 : i32 to index
    %223 = memref.load %arg3[%222] : memref<96xi32, #tpu.memory_space<smem>>
    %224 = arith.index_cast %223 : i32 to index
    %c0_141 = arith.constant 0 : index
    %225 = vector.load %arg18[%224, %c0_141] : memref<24x32xf32, #tpu.memory_space<vmem>>, vector<1x32xf32>
    %226 = arith.index_cast %223 : i32 to index
    %c0_142 = arith.constant 0 : index
    %227 = vector.load %arg17[%226, %c0_142] : memref<24x32xf32, #tpu.memory_space<vmem>>, vector<1x32xf32>
    %c16 = arith.constant 16 : index
    %c0_143 = arith.constant 0 : index
    %228 = vector.load %arg21[%c16, %c0_143] : memref<32x32xf32, #tpu.memory_space<vmem>>, vector<1x32xf32>
    tpu.vector_store %arg21[%c16, %c0_143], %225 {strides = array<i32>} : memref<32x32xf32, #tpu.memory_space<vmem>>, vector<1x32xf32>,
    %c16_144 = arith.constant 16 : index
    %c0_145 = arith.constant 0 : index
    %229 = vector.load %arg22[%c16_144, %c0_145] : memref<32x32xf32, #tpu.memory_space<vmem>>, vector<1x32xf32>
    tpu.vector_store %arg22[%c16_144, %c0_145], %227 {strides = array<i32>} : memref<32x32xf32, #tpu.memory_space<vmem>>, vector<1x32xf32>,
    %230 = arith.addf %219, %225 : vector<1x32xf32>
    %c16_i32_146 = arith.constant 16 : i32
    %231 = arith.addi %4, %c16_i32_146 : i32
    %c1_i32_147 = arith.constant 1 : i32
    %232 = arith.addi %231, %c1_i32_147 : i32
    %233 = arith.index_cast %232 : i32 to index
    %234 = memref.load %arg3[%233] : memref<96xi32, #tpu.memory_space<smem>>
    %235 = arith.index_cast %234 : i32 to index
    %c0_148 = arith.constant 0 : index
    %236 = vector.load %arg18[%235, %c0_148] : memref<24x32xf32, #tpu.memory_space<vmem>>, vector<1x32xf32>
    %237 = arith.index_cast %234 : i32 to index
    %c0_149 = arith.constant 0 : index
    %238 = vector.load %arg17[%237, %c0_149] : memref<24x32xf32, #tpu.memory_space<vmem>>, vector<1x32xf32>
    %c17 = arith.constant 17 : index
    %c0_150 = arith.constant 0 : index
    %239 = vector.load %arg21[%c17, %c0_150] : memref<32x32xf32, #tpu.memory_space<vmem>>, vector<1x32xf32>
    tpu.vector_store %arg21[%c17, %c0_150], %236 {strides = array<i32>} : memref<32x32xf32, #tpu.memory_space<vmem>>, vector<1x32xf32>,
    %c17_151 = arith.constant 17 : index
    %c0_152 = arith.constant 0 : index
    %240 = vector.load %arg22[%c17_151, %c0_152] : memref<32x32xf32, #tpu.memory_space<vmem>>, vector<1x32xf32>
    tpu.vector_store %arg22[%c17_151, %c0_152], %238 {strides = array<i32>} : memref<32x32xf32, #tpu.memory_space<vmem>>, vector<1x32xf32>,
    %241 = arith.addf %230, %236 : vector<1x32xf32>
    %c16_i32_153 = arith.constant 16 : i32
    %242 = arith.addi %4, %c16_i32_153 : i32
    %c2_i32_154 = arith.constant 2 : i32
    %243 = arith.addi %242, %c2_i32_154 : i32
    %244 = arith.index_cast %243 : i32 to index
    %245 = memref.load %arg3[%244] : memref<96xi32, #tpu.memory_space<smem>>
    %246 = arith.index_cast %245 : i32 to index
    %c0_155 = arith.constant 0 : index
    %247 = vector.load %arg18[%246, %c0_155] : memref<24x32xf32, #tpu.memory_space<vmem>>, vector<1x32xf32>
    %248 = arith.index_cast %245 : i32 to index
    %c0_156 = arith.constant 0 : index
    %249 = vector.load %arg17[%248, %c0_156] : memref<24x32xf32, #tpu.memory_space<vmem>>, vector<1x32xf32>
    %c18 = arith.constant 18 : index
    %c0_157 = arith.constant 0 : index
    %250 = vector.load %arg21[%c18, %c0_157] : memref<32x32xf32, #tpu.memory_space<vmem>>, vector<1x32xf32>
    tpu.vector_store %arg21[%c18, %c0_157], %247 {strides = array<i32>} : memref<32x32xf32, #tpu.memory_space<vmem>>, vector<1x32xf32>,
    %c18_158 = arith.constant 18 : index
    %c0_159 = arith.constant 0 : index
    %251 = vector.load %arg22[%c18_158, %c0_159] : memref<32x32xf32, #tpu.memory_space<vmem>>, vector<1x32xf32>
    tpu.vector_store %arg22[%c18_158, %c0_159], %249 {strides = array<i32>} : memref<32x32xf32, #tpu.memory_space<vmem>>, vector<1x32xf32>,
    %252 = arith.addf %241, %247 : vector<1x32xf32>
    %c16_i32_160 = arith.constant 16 : i32
    %253 = arith.addi %4, %c16_i32_160 : i32
    %c3_i32_161 = arith.constant 3 : i32
    %254 = arith.addi %253, %c3_i32_161 : i32
    %255 = arith.index_cast %254 : i32 to index
    %256 = memref.load %arg3[%255] : memref<96xi32, #tpu.memory_space<smem>>
    %257 = arith.index_cast %256 : i32 to index
    %c0_162 = arith.constant 0 : index
    %258 = vector.load %arg18[%257, %c0_162] : memref<24x32xf32, #tpu.memory_space<vmem>>, vector<1x32xf32>
    %259 = arith.index_cast %256 : i32 to index
    %c0_163 = arith.constant 0 : index
    %260 = vector.load %arg17[%259, %c0_163] : memref<24x32xf32, #tpu.memory_space<vmem>>, vector<1x32xf32>
    %c19 = arith.constant 19 : index
    %c0_164 = arith.constant 0 : index
    %261 = vector.load %arg21[%c19, %c0_164] : memref<32x32xf32, #tpu.memory_space<vmem>>, vector<1x32xf32>
    tpu.vector_store %arg21[%c19, %c0_164], %258 {strides = array<i32>} : memref<32x32xf32, #tpu.memory_space<vmem>>, vector<1x32xf32>,
    %c19_165 = arith.constant 19 : index
    %c0_166 = arith.constant 0 : index
    %262 = vector.load %arg22[%c19_165, %c0_166] : memref<32x32xf32, #tpu.memory_space<vmem>>, vector<1x32xf32>
    tpu.vector_store %arg22[%c19_165, %c0_166], %260 {strides = array<i32>} : memref<32x32xf32, #tpu.memory_space<vmem>>, vector<1x32xf32>,
    %263 = arith.addf %252, %258 : vector<1x32xf32>
    %c4_167 = arith.constant 4 : index
    %c0_168 = arith.constant 0 : index
    %264 = vector.load %arg20[%c4_167, %c0_168] : memref<8x32xf32, #tpu.memory_space<vmem>>, vector<1x32xf32>
    tpu.vector_store %arg20[%c4_167, %c0_168], %263 {strides = array<i32>} : memref<8x32xf32, #tpu.memory_space<vmem>>, vector<1x32xf32>,
    %c5_i32 = arith.constant 5 : i32
    %265 = arith.addi %3, %c5_i32 : i32
    %266 = arith.index_cast %265 : i32 to index
    %267 = memref.load %arg1[%266] : memref<24xi32, #tpu.memory_space<smem>>
    %268 = arith.index_cast %267 : i32 to index
    %c0_169 = arith.constant 0 : index
    %269 = vector.load %arg5[%268, %c0_169] : memref<16x32xf32, #tpu.memory_space<vmem>>, vector<1x32xf32>
    %c5_170 = arith.constant 5 : index
    %c0_171 = arith.constant 0 : index
    %270 = vector.load %arg19[%c5_170, %c0_171] : memref<8x32xf32, #tpu.memory_space<vmem>>, vector<1x32xf32>
    tpu.vector_store %arg19[%c5_170, %c0_171], %269 {strides = array<i32>} : memref<8x32xf32, #tpu.memory_space<vmem>>, vector<1x32xf32>,
    %cst_172 = arith.constant 0.000000e+00 : f32
    %271 = vector.broadcast %cst_172 : f32 to vector<1x32xf32>
    %c20_i32 = arith.constant 20 : i32
    %272 = arith.addi %4, %c20_i32 : i32
    %c0_i32_173 = arith.constant 0 : i32
    %273 = arith.addi %272, %c0_i32_173 : i32
    %274 = arith.index_cast %273 : i32 to index
    %275 = memref.load %arg3[%274] : memref<96xi32, #tpu.memory_space<smem>>
    %276 = arith.index_cast %275 : i32 to index
    %c0_174 = arith.constant 0 : index
    %277 = vector.load %arg18[%276, %c0_174] : memref<24x32xf32, #tpu.memory_space<vmem>>, vector<1x32xf32>
    %278 = arith.index_cast %275 : i32 to index
    %c0_175 = arith.constant 0 : index
    %279 = vector.load %arg17[%278, %c0_175] : memref<24x32xf32, #tpu.memory_space<vmem>>, vector<1x32xf32>
    %c20 = arith.constant 20 : index
    %c0_176 = arith.constant 0 : index
    %280 = vector.load %arg21[%c20, %c0_176] : memref<32x32xf32, #tpu.memory_space<vmem>>, vector<1x32xf32>
    tpu.vector_store %arg21[%c20, %c0_176], %277 {strides = array<i32>} : memref<32x32xf32, #tpu.memory_space<vmem>>, vector<1x32xf32>,
    %c20_177 = arith.constant 20 : index
    %c0_178 = arith.constant 0 : index
    %281 = vector.load %arg22[%c20_177, %c0_178] : memref<32x32xf32, #tpu.memory_space<vmem>>, vector<1x32xf32>
    tpu.vector_store %arg22[%c20_177, %c0_178], %279 {strides = array<i32>} : memref<32x32xf32, #tpu.memory_space<vmem>>, vector<1x32xf32>,
    %282 = arith.addf %271, %277 : vector<1x32xf32>
    %c20_i32_179 = arith.constant 20 : i32
    %283 = arith.addi %4, %c20_i32_179 : i32
    %c1_i32_180 = arith.constant 1 : i32
    %284 = arith.addi %283, %c1_i32_180 : i32
    %285 = arith.index_cast %284 : i32 to index
    %286 = memref.load %arg3[%285] : memref<96xi32, #tpu.memory_space<smem>>
    %287 = arith.index_cast %286 : i32 to index
    %c0_181 = arith.constant 0 : index
    %288 = vector.load %arg18[%287, %c0_181] : memref<24x32xf32, #tpu.memory_space<vmem>>, vector<1x32xf32>
    %289 = arith.index_cast %286 : i32 to index
    %c0_182 = arith.constant 0 : index
    %290 = vector.load %arg17[%289, %c0_182] : memref<24x32xf32, #tpu.memory_space<vmem>>, vector<1x32xf32>
    %c21 = arith.constant 21 : index
    %c0_183 = arith.constant 0 : index
    %291 = vector.load %arg21[%c21, %c0_183] : memref<32x32xf32, #tpu.memory_space<vmem>>, vector<1x32xf32>
    tpu.vector_store %arg21[%c21, %c0_183], %288 {strides = array<i32>} : memref<32x32xf32, #tpu.memory_space<vmem>>, vector<1x32xf32>,
    %c21_184 = arith.constant 21 : index
    %c0_185 = arith.constant 0 : index
    %292 = vector.load %arg22[%c21_184, %c0_185] : memref<32x32xf32, #tpu.memory_space<vmem>>, vector<1x32xf32>
    tpu.vector_store %arg22[%c21_184, %c0_185], %290 {strides = array<i32>} : memref<32x32xf32, #tpu.memory_space<vmem>>, vector<1x32xf32>,
    %293 = arith.addf %282, %288 : vector<1x32xf32>
    %c20_i32_186 = arith.constant 20 : i32
    %294 = arith.addi %4, %c20_i32_186 : i32
    %c2_i32_187 = arith.constant 2 : i32
    %295 = arith.addi %294, %c2_i32_187 : i32
    %296 = arith.index_cast %295 : i32 to index
    %297 = memref.load %arg3[%296] : memref<96xi32, #tpu.memory_space<smem>>
    %298 = arith.index_cast %297 : i32 to index
    %c0_188 = arith.constant 0 : index
    %299 = vector.load %arg18[%298, %c0_188] : memref<24x32xf32, #tpu.memory_space<vmem>>, vector<1x32xf32>
    %300 = arith.index_cast %297 : i32 to index
    %c0_189 = arith.constant 0 : index
    %301 = vector.load %arg17[%300, %c0_189] : memref<24x32xf32, #tpu.memory_space<vmem>>, vector<1x32xf32>
    %c22 = arith.constant 22 : index
    %c0_190 = arith.constant 0 : index
    %302 = vector.load %arg21[%c22, %c0_190] : memref<32x32xf32, #tpu.memory_space<vmem>>, vector<1x32xf32>
    tpu.vector_store %arg21[%c22, %c0_190], %299 {strides = array<i32>} : memref<32x32xf32, #tpu.memory_space<vmem>>, vector<1x32xf32>,
    %c22_191 = arith.constant 22 : index
    %c0_192 = arith.constant 0 : index
    %303 = vector.load %arg22[%c22_191, %c0_192] : memref<32x32xf32, #tpu.memory_space<vmem>>, vector<1x32xf32>
    tpu.vector_store %arg22[%c22_191, %c0_192], %301 {strides = array<i32>} : memref<32x32xf32, #tpu.memory_space<vmem>>, vector<1x32xf32>,
    %304 = arith.addf %293, %299 : vector<1x32xf32>
    %c20_i32_193 = arith.constant 20 : i32
    %305 = arith.addi %4, %c20_i32_193 : i32
    %c3_i32_194 = arith.constant 3 : i32
    %306 = arith.addi %305, %c3_i32_194 : i32
    %307 = arith.index_cast %306 : i32 to index
    %308 = memref.load %arg3[%307] : memref<96xi32, #tpu.memory_space<smem>>
    %309 = arith.index_cast %308 : i32 to index
    %c0_195 = arith.constant 0 : index
    %310 = vector.load %arg18[%309, %c0_195] : memref<24x32xf32, #tpu.memory_space<vmem>>, vector<1x32xf32>
    %311 = arith.index_cast %308 : i32 to index
    %c0_196 = arith.constant 0 : index
    %312 = vector.load %arg17[%311, %c0_196] : memref<24x32xf32, #tpu.memory_space<vmem>>, vector<1x32xf32>
    %c23 = arith.constant 23 : index
    %c0_197 = arith.constant 0 : index
    %313 = vector.load %arg21[%c23, %c0_197] : memref<32x32xf32, #tpu.memory_space<vmem>>, vector<1x32xf32>
    tpu.vector_store %arg21[%c23, %c0_197], %310 {strides = array<i32>} : memref<32x32xf32, #tpu.memory_space<vmem>>, vector<1x32xf32>,
    %c23_198 = arith.constant 23 : index
    %c0_199 = arith.constant 0 : index
    %314 = vector.load %arg22[%c23_198, %c0_199] : memref<32x32xf32, #tpu.memory_space<vmem>>, vector<1x32xf32>
    tpu.vector_store %arg22[%c23_198, %c0_199], %312 {strides = array<i32>} : memref<32x32xf32, #tpu.memory_space<vmem>>, vector<1x32xf32>,
    %315 = arith.addf %304, %310 : vector<1x32xf32>
    %c5_200 = arith.constant 5 : index
    %c0_201 = arith.constant 0 : index
    %316 = vector.load %arg20[%c5_200, %c0_201] : memref<8x32xf32, #tpu.memory_space<vmem>>, vector<1x32xf32>
    tpu.vector_store %arg20[%c5_200, %c0_201], %315 {strides = array<i32>} : memref<8x32xf32, #tpu.memory_space<vmem>>, vector<1x32xf32>,
    %c6_i32 = arith.constant 6 : i32
    %317 = arith.addi %3, %c6_i32 : i32
    %318 = arith.index_cast %317 : i32 to index
    %319 = memref.load %arg1[%318] : memref<24xi32, #tpu.memory_space<smem>>
    %320 = arith.index_cast %319 : i32 to index
    %c0_202 = arith.constant 0 : index
    %321 = vector.load %arg5[%320, %c0_202] : memref<16x32xf32, #tpu.memory_space<vmem>>, vector<1x32xf32>
    %c6_203 = arith.constant 6 : index
    %c0_204 = arith.constant 0 : index
    %322 = vector.load %arg19[%c6_203, %c0_204] : memref<8x32xf32, #tpu.memory_space<vmem>>, vector<1x32xf32>
    tpu.vector_store %arg19[%c6_203, %c0_204], %321 {strides = array<i32>} : memref<8x32xf32, #tpu.memory_space<vmem>>, vector<1x32xf32>,
    %cst_205 = arith.constant 0.000000e+00 : f32
    %323 = vector.broadcast %cst_205 : f32 to vector<1x32xf32>
    %c24_i32 = arith.constant 24 : i32
    %324 = arith.addi %4, %c24_i32 : i32
    %c0_i32_206 = arith.constant 0 : i32
    %325 = arith.addi %324, %c0_i32_206 : i32
    %326 = arith.index_cast %325 : i32 to index
    %327 = memref.load %arg3[%326] : memref<96xi32, #tpu.memory_space<smem>>
    %328 = arith.index_cast %327 : i32 to index
    %c0_207 = arith.constant 0 : index
    %329 = vector.load %arg18[%328, %c0_207] : memref<24x32xf32, #tpu.memory_space<vmem>>, vector<1x32xf32>
    %330 = arith.index_cast %327 : i32 to index
    %c0_208 = arith.constant 0 : index
    %331 = vector.load %arg17[%330, %c0_208] : memref<24x32xf32, #tpu.memory_space<vmem>>, vector<1x32xf32>
    %c24 = arith.constant 24 : index
    %c0_209 = arith.constant 0 : index
    %332 = vector.load %arg21[%c24, %c0_209] : memref<32x32xf32, #tpu.memory_space<vmem>>, vector<1x32xf32>
    tpu.vector_store %arg21[%c24, %c0_209], %329 {strides = array<i32>} : memref<32x32xf32, #tpu.memory_space<vmem>>, vector<1x32xf32>,
    %c24_210 = arith.constant 24 : index
    %c0_211 = arith.constant 0 : index
    %333 = vector.load %arg22[%c24_210, %c0_211] : memref<32x32xf32, #tpu.memory_space<vmem>>, vector<1x32xf32>
    tpu.vector_store %arg22[%c24_210, %c0_211], %331 {strides = array<i32>} : memref<32x32xf32, #tpu.memory_space<vmem>>, vector<1x32xf32>,
    %334 = arith.addf %323, %329 : vector<1x32xf32>
    %c24_i32_212 = arith.constant 24 : i32
    %335 = arith.addi %4, %c24_i32_212 : i32
    %c1_i32_213 = arith.constant 1 : i32
    %336 = arith.addi %335, %c1_i32_213 : i32
    %337 = arith.index_cast %336 : i32 to index
    %338 = memref.load %arg3[%337] : memref<96xi32, #tpu.memory_space<smem>>
    %339 = arith.index_cast %338 : i32 to index
    %c0_214 = arith.constant 0 : index
    %340 = vector.load %arg18[%339, %c0_214] : memref<24x32xf32, #tpu.memory_space<vmem>>, vector<1x32xf32>
    %341 = arith.index_cast %338 : i32 to index
    %c0_215 = arith.constant 0 : index
    %342 = vector.load %arg17[%341, %c0_215] : memref<24x32xf32, #tpu.memory_space<vmem>>, vector<1x32xf32>
    %c25 = arith.constant 25 : index
    %c0_216 = arith.constant 0 : index
    %343 = vector.load %arg21[%c25, %c0_216] : memref<32x32xf32, #tpu.memory_space<vmem>>, vector<1x32xf32>
    tpu.vector_store %arg21[%c25, %c0_216], %340 {strides = array<i32>} : memref<32x32xf32, #tpu.memory_space<vmem>>, vector<1x32xf32>,
    %c25_217 = arith.constant 25 : index
    %c0_218 = arith.constant 0 : index
    %344 = vector.load %arg22[%c25_217, %c0_218] : memref<32x32xf32, #tpu.memory_space<vmem>>, vector<1x32xf32>
    tpu.vector_store %arg22[%c25_217, %c0_218], %342 {strides = array<i32>} : memref<32x32xf32, #tpu.memory_space<vmem>>, vector<1x32xf32>,
    %345 = arith.addf %334, %340 : vector<1x32xf32>
    %c24_i32_219 = arith.constant 24 : i32
    %346 = arith.addi %4, %c24_i32_219 : i32
    %c2_i32_220 = arith.constant 2 : i32
    %347 = arith.addi %346, %c2_i32_220 : i32
    %348 = arith.index_cast %347 : i32 to index
    %349 = memref.load %arg3[%348] : memref<96xi32, #tpu.memory_space<smem>>
    %350 = arith.index_cast %349 : i32 to index
    %c0_221 = arith.constant 0 : index
    %351 = vector.load %arg18[%350, %c0_221] : memref<24x32xf32, #tpu.memory_space<vmem>>, vector<1x32xf32>
    %352 = arith.index_cast %349 : i32 to index
    %c0_222 = arith.constant 0 : index
    %353 = vector.load %arg17[%352, %c0_222] : memref<24x32xf32, #tpu.memory_space<vmem>>, vector<1x32xf32>
    %c26 = arith.constant 26 : index
    %c0_223 = arith.constant 0 : index
    %354 = vector.load %arg21[%c26, %c0_223] : memref<32x32xf32, #tpu.memory_space<vmem>>, vector<1x32xf32>
    tpu.vector_store %arg21[%c26, %c0_223], %351 {strides = array<i32>} : memref<32x32xf32, #tpu.memory_space<vmem>>, vector<1x32xf32>,
    %c26_224 = arith.constant 26 : index
    %c0_225 = arith.constant 0 : index
    %355 = vector.load %arg22[%c26_224, %c0_225] : memref<32x32xf32, #tpu.memory_space<vmem>>, vector<1x32xf32>
    tpu.vector_store %arg22[%c26_224, %c0_225], %353 {strides = array<i32>} : memref<32x32xf32, #tpu.memory_space<vmem>>, vector<1x32xf32>,
    %356 = arith.addf %345, %351 : vector<1x32xf32>
    %c24_i32_226 = arith.constant 24 : i32
    %357 = arith.addi %4, %c24_i32_226 : i32
    %c3_i32_227 = arith.constant 3 : i32
    %358 = arith.addi %357, %c3_i32_227 : i32
    %359 = arith.index_cast %358 : i32 to index
    %360 = memref.load %arg3[%359] : memref<96xi32, #tpu.memory_space<smem>>
    %361 = arith.index_cast %360 : i32 to index
    %c0_228 = arith.constant 0 : index
    %362 = vector.load %arg18[%361, %c0_228] : memref<24x32xf32, #tpu.memory_space<vmem>>, vector<1x32xf32>
    %363 = arith.index_cast %360 : i32 to index
    %c0_229 = arith.constant 0 : index
    %364 = vector.load %arg17[%363, %c0_229] : memref<24x32xf32, #tpu.memory_space<vmem>>, vector<1x32xf32>
    %c27 = arith.constant 27 : index
    %c0_230 = arith.constant 0 : index
    %365 = vector.load %arg21[%c27, %c0_230] : memref<32x32xf32, #tpu.memory_space<vmem>>, vector<1x32xf32>
    tpu.vector_store %arg21[%c27, %c0_230], %362 {strides = array<i32>} : memref<32x32xf32, #tpu.memory_space<vmem>>, vector<1x32xf32>,
    %c27_231 = arith.constant 27 : index
    %c0_232 = arith.constant 0 : index
    %366 = vector.load %arg22[%c27_231, %c0_232] : memref<32x32xf32, #tpu.memory_space<vmem>>, vector<1x32xf32>
    tpu.vector_store %arg22[%c27_231, %c0_232], %364 {strides = array<i32>} : memref<32x32xf32, #tpu.memory_space<vmem>>, vector<1x32xf32>,
    %367 = arith.addf %356, %362 : vector<1x32xf32>
    %c6_233 = arith.constant 6 : index
    %c0_234 = arith.constant 0 : index
    %368 = vector.load %arg20[%c6_233, %c0_234] : memref<8x32xf32, #tpu.memory_space<vmem>>, vector<1x32xf32>
    tpu.vector_store %arg20[%c6_233, %c0_234], %367 {strides = array<i32>} : memref<8x32xf32, #tpu.memory_space<vmem>>, vector<1x32xf32>,
    %c7_i32 = arith.constant 7 : i32
    %369 = arith.addi %3, %c7_i32 : i32
    %370 = arith.index_cast %369 : i32 to index
    %371 = memref.load %arg1[%370] : memref<24xi32, #tpu.memory_space<smem>>
    %372 = arith.index_cast %371 : i32 to index
    %c0_235 = arith.constant 0 : index
    %373 = vector.load %arg5[%372, %c0_235] : memref<16x32xf32, #tpu.memory_space<vmem>>, vector<1x32xf32>
    %c7_236 = arith.constant 7 : index
    %c0_237 = arith.constant 0 : index
    %374 = vector.load %arg19[%c7_236, %c0_237] : memref<8x32xf32, #tpu.memory_space<vmem>>, vector<1x32xf32>
    tpu.vector_store %arg19[%c7_236, %c0_237], %373 {strides = array<i32>} : memref<8x32xf32, #tpu.memory_space<vmem>>, vector<1x32xf32>,
    %cst_238 = arith.constant 0.000000e+00 : f32
    %375 = vector.broadcast %cst_238 : f32 to vector<1x32xf32>
    %c28_i32 = arith.constant 28 : i32
    %376 = arith.addi %4, %c28_i32 : i32
    %c0_i32_239 = arith.constant 0 : i32
    %377 = arith.addi %376, %c0_i32_239 : i32
    %378 = arith.index_cast %377 : i32 to index
    %379 = memref.load %arg3[%378] : memref<96xi32, #tpu.memory_space<smem>>
    %380 = arith.index_cast %379 : i32 to index
    %c0_240 = arith.constant 0 : index
    %381 = vector.load %arg18[%380, %c0_240] : memref<24x32xf32, #tpu.memory_space<vmem>>, vector<1x32xf32>
    %382 = arith.index_cast %379 : i32 to index
    %c0_241 = arith.constant 0 : index
    %383 = vector.load %arg17[%382, %c0_241] : memref<24x32xf32, #tpu.memory_space<vmem>>, vector<1x32xf32>
    %c28 = arith.constant 28 : index
    %c0_242 = arith.constant 0 : index
    %384 = vector.load %arg21[%c28, %c0_242] : memref<32x32xf32, #tpu.memory_space<vmem>>, vector<1x32xf32>
    tpu.vector_store %arg21[%c28, %c0_242], %381 {strides = array<i32>} : memref<32x32xf32, #tpu.memory_space<vmem>>, vector<1x32xf32>,
    %c28_243 = arith.constant 28 : index
    %c0_244 = arith.constant 0 : index
    %385 = vector.load %arg22[%c28_243, %c0_244] : memref<32x32xf32, #tpu.memory_space<vmem>>, vector<1x32xf32>
    tpu.vector_store %arg22[%c28_243, %c0_244], %383 {strides = array<i32>} : memref<32x32xf32, #tpu.memory_space<vmem>>, vector<1x32xf32>,
    %386 = arith.addf %375, %381 : vector<1x32xf32>
    %c28_i32_245 = arith.constant 28 : i32
    %387 = arith.addi %4, %c28_i32_245 : i32
    %c1_i32_246 = arith.constant 1 : i32
    %388 = arith.addi %387, %c1_i32_246 : i32
    %389 = arith.index_cast %388 : i32 to index
    %390 = memref.load %arg3[%389] : memref<96xi32, #tpu.memory_space<smem>>
    %391 = arith.index_cast %390 : i32 to index
    %c0_247 = arith.constant 0 : index
    %392 = vector.load %arg18[%391, %c0_247] : memref<24x32xf32, #tpu.memory_space<vmem>>, vector<1x32xf32>
    %393 = arith.index_cast %390 : i32 to index
    %c0_248 = arith.constant 0 : index
    %394 = vector.load %arg17[%393, %c0_248] : memref<24x32xf32, #tpu.memory_space<vmem>>, vector<1x32xf32>
    %c29 = arith.constant 29 : index
    %c0_249 = arith.constant 0 : index
    %395 = vector.load %arg21[%c29, %c0_249] : memref<32x32xf32, #tpu.memory_space<vmem>>, vector<1x32xf32>
    tpu.vector_store %arg21[%c29, %c0_249], %392 {strides = array<i32>} : memref<32x32xf32, #tpu.memory_space<vmem>>, vector<1x32xf32>,
    %c29_250 = arith.constant 29 : index
    %c0_251 = arith.constant 0 : index
    %396 = vector.load %arg22[%c29_250, %c0_251] : memref<32x32xf32, #tpu.memory_space<vmem>>, vector<1x32xf32>
    tpu.vector_store %arg22[%c29_250, %c0_251], %394 {strides = array<i32>} : memref<32x32xf32, #tpu.memory_space<vmem>>, vector<1x32xf32>,
    %397 = arith.addf %386, %392 : vector<1x32xf32>
    %c28_i32_252 = arith.constant 28 : i32
    %398 = arith.addi %4, %c28_i32_252 : i32
    %c2_i32_253 = arith.constant 2 : i32
    %399 = arith.addi %398, %c2_i32_253 : i32
    %400 = arith.index_cast %399 : i32 to index
    %401 = memref.load %arg3[%400] : memref<96xi32, #tpu.memory_space<smem>>
    %402 = arith.index_cast %401 : i32 to index
    %c0_254 = arith.constant 0 : index
    %403 = vector.load %arg18[%402, %c0_254] : memref<24x32xf32, #tpu.memory_space<vmem>>, vector<1x32xf32>
    %404 = arith.index_cast %401 : i32 to index
    %c0_255 = arith.constant 0 : index
    %405 = vector.load %arg17[%404, %c0_255] : memref<24x32xf32, #tpu.memory_space<vmem>>, vector<1x32xf32>
    %c30 = arith.constant 30 : index
    %c0_256 = arith.constant 0 : index
    %406 = vector.load %arg21[%c30, %c0_256] : memref<32x32xf32, #tpu.memory_space<vmem>>, vector<1x32xf32>
    tpu.vector_store %arg21[%c30, %c0_256], %403 {strides = array<i32>} : memref<32x32xf32, #tpu.memory_space<vmem>>, vector<1x32xf32>,
    %c30_257 = arith.constant 30 : index
    %c0_258 = arith.constant 0 : index
    %407 = vector.load %arg22[%c30_257, %c0_258] : memref<32x32xf32, #tpu.memory_space<vmem>>, vector<1x32xf32>
    tpu.vector_store %arg22[%c30_257, %c0_258], %405 {strides = array<i32>} : memref<32x32xf32, #tpu.memory_space<vmem>>, vector<1x32xf32>,
    %408 = arith.addf %397, %403 : vector<1x32xf32>
    %c28_i32_259 = arith.constant 28 : i32
    %409 = arith.addi %4, %c28_i32_259 : i32
    %c3_i32_260 = arith.constant 3 : i32
    %410 = arith.addi %409, %c3_i32_260 : i32
    %411 = arith.index_cast %410 : i32 to index
    %412 = memref.load %arg3[%411] : memref<96xi32, #tpu.memory_space<smem>>
    %413 = arith.index_cast %412 : i32 to index
    %c0_261 = arith.constant 0 : index
    %414 = vector.load %arg18[%413, %c0_261] : memref<24x32xf32, #tpu.memory_space<vmem>>, vector<1x32xf32>
    %415 = arith.index_cast %412 : i32 to index
    %c0_262 = arith.constant 0 : index
    %416 = vector.load %arg17[%415, %c0_262] : memref<24x32xf32, #tpu.memory_space<vmem>>, vector<1x32xf32>
    %c31 = arith.constant 31 : index
    %c0_263 = arith.constant 0 : index
    %417 = vector.load %arg21[%c31, %c0_263] : memref<32x32xf32, #tpu.memory_space<vmem>>, vector<1x32xf32>
    tpu.vector_store %arg21[%c31, %c0_263], %414 {strides = array<i32>} : memref<32x32xf32, #tpu.memory_space<vmem>>, vector<1x32xf32>,
    %c31_264 = arith.constant 31 : index
    %c0_265 = arith.constant 0 : index
    %418 = vector.load %arg22[%c31_264, %c0_265] : memref<32x32xf32, #tpu.memory_space<vmem>>, vector<1x32xf32>
    tpu.vector_store %arg22[%c31_264, %c0_265], %416 {strides = array<i32>} : memref<32x32xf32, #tpu.memory_space<vmem>>, vector<1x32xf32>,
    %419 = arith.addf %408, %414 : vector<1x32xf32>
    %c7_266 = arith.constant 7 : index
    %c0_267 = arith.constant 0 : index
    %420 = vector.load %arg20[%c7_266, %c0_267] : memref<8x32xf32, #tpu.memory_space<vmem>>, vector<1x32xf32>
    tpu.vector_store %arg20[%c7_266, %c0_267], %419 {strides = array<i32>} : memref<8x32xf32, #tpu.memory_space<vmem>>, vector<1x32xf32>,
    %c0_268 = arith.constant 0 : index
    %c0_269 = arith.constant 0 : index
    %421 = vector.load %arg19[%c0_268, %c0_269] : memref<8x32xf32, #tpu.memory_space<vmem>>, vector<8x32xf32>
    %c0_270 = arith.constant 0 : index
    %c0_271 = arith.constant 0 : index
    %422 = vector.load %arg6[%c0_270, %c0_271] : memref<32x128xf32, #tpu.memory_space<vmem>>, vector<32x128xf32>
    %cst_272 = arith.constant dense<0.000000e+00> : vector<8x128xf32>
    %423 = tpu.matmul %421, %422, %cst_272 {dimension_numbers = #tpu.dot_dimension_numbers<[1], [0], [0], [1], [0, 0, 1, 1], [], []>} : vector<8x32xf32>, vector<32x128xf32>, vector<8x128xf32> -> vector<8x128xf32>
    %c0_273 = arith.constant 0 : index
    %c0_274 = arith.constant 0 : index
    %424 = vector.load %arg20[%c0_273, %c0_274] : memref<8x32xf32, #tpu.memory_space<vmem>>, vector<8x32xf32>
    %c0_275 = arith.constant 0 : index
    %c0_276 = arith.constant 0 : index
    %425 = vector.load %arg7[%c0_275, %c0_276] : memref<32x128xf32, #tpu.memory_space<vmem>>, vector<32x128xf32>
    %cst_277 = arith.constant dense<0.000000e+00> : vector<8x128xf32>
    %426 = tpu.matmul %424, %425, %cst_277 {dimension_numbers = #tpu.dot_dimension_numbers<[1], [0], [0], [1], [0, 0, 1, 1], [], []>} : vector<8x32xf32>, vector<32x128xf32>, vector<8x128xf32> -> vector<8x128xf32>
    %427 = arith.addf %423, %426 : vector<8x128xf32>
    %c0_278 = arith.constant 0 : index
    %c0_279 = arith.constant 0 : index
    %428 = vector.load %arg8[%c0_278, %c0_279] : memref<1x128xf32, #tpu.memory_space<vmem>>, vector<1x128xf32>
    %429 = vector.broadcast %428 : vector<1x128xf32> to vector<8x128xf32>
    %430 = arith.addf %427, %429 : vector<8x128xf32>
    %431 = vector.extract_strided_slice %430 {offsets = [0, 0], sizes = [8, 32], strides = [1, 1]} : vector<8x128xf32> to vector<8x32xf32>
    %432 = arith.negf %431 : vector<8x32xf32>
    %433 = math.exp %432 : vector<8x32xf32>
    %cst_280 = arith.constant 1.000000e+00 : f32
    %434 = vector.broadcast %cst_280 : f32 to vector<8x32xf32>
    %435 = arith.addf %434, %433 : vector<8x32xf32>
    %436 = arith.divf %434, %435 : vector<8x32xf32>
    %437 = vector.extract_strided_slice %430 {offsets = [0, 32], sizes = [8, 32], strides = [1, 1]} : vector<8x128xf32> to vector<8x32xf32>
    %438 = arith.negf %437 : vector<8x32xf32>
    %439 = math.exp %438 : vector<8x32xf32>
    %cst_281 = arith.constant 1.000000e+00 : f32
    %440 = vector.broadcast %cst_281 : f32 to vector<8x32xf32>
    %441 = arith.addf %440, %439 : vector<8x32xf32>
    %442 = arith.divf %440, %441 : vector<8x32xf32>
    %443 = vector.extract_strided_slice %430 {offsets = [0, 64], sizes = [8, 32], strides = [1, 1]} : vector<8x128xf32> to vector<8x32xf32>
    %444 = math.tanh %443 : vector<8x32xf32>
    %445 = vector.extract_strided_slice %423 {offsets = [0, 96], sizes = [8, 32], strides = [1, 1]} : vector<8x128xf32> to vector<8x32xf32>
    %c0_282 = arith.constant 0 : index
    %c0_283 = arith.constant 0 : index
    %446 = vector.load %arg21[%c0_282, %c0_283] : memref<32x32xf32, #tpu.memory_space<vmem>>, vector<32x32xf32>
    %c0_284 = arith.constant 0 : index
    %c0_285 = arith.constant 0 : index
    %447 = vector.load %arg9[%c0_284, %c0_285] : memref<32x32xf32, #tpu.memory_space<vmem>>, vector<32x32xf32>
    %cst_286 = arith.constant dense<0.000000e+00> : vector<32x32xf32>
    %448 = tpu.matmul %446, %447, %cst_286 {dimension_numbers = #tpu.dot_dimension_numbers<[1], [0], [0], [1], [0, 0, 1, 1], [], []>} : vector<32x32xf32>, vector<32x32xf32>, vector<32x32xf32> -> vector<32x32xf32>
    %c0_287 = arith.constant 0 : index
    %c0_288 = arith.constant 0 : index
    %449 = vector.load %arg22[%c0_287, %c0_288] : memref<32x32xf32, #tpu.memory_space<vmem>>, vector<32x32xf32>
    %c0_289 = arith.constant 0 : index
    %c0_290 = arith.constant 0 : index
    %450 = vector.load %arg10[%c0_289, %c0_290] : memref<1x32xf32, #tpu.memory_space<vmem>>, vector<1x32xf32>
    %451 = vector.extract_strided_slice %448 {offsets = [0, 0], sizes = [4, 32], strides = [1, 1]} : vector<32x32xf32> to vector<4x32xf32>
    %452 = vector.extract_strided_slice %445 {offsets = [0, 0], sizes = [1, 32], strides = [1, 1]} : vector<8x32xf32> to vector<1x32xf32>
    %453 = vector.broadcast %452 : vector<1x32xf32> to vector<4x32xf32>
    %454 = arith.addf %451, %453 : vector<4x32xf32>
    %455 = vector.broadcast %450 : vector<1x32xf32> to vector<4x32xf32>
    %456 = arith.addf %454, %455 : vector<4x32xf32>
    %457 = arith.negf %456 : vector<4x32xf32>
    %458 = math.exp %457 : vector<4x32xf32>
    %cst_291 = arith.constant 1.000000e+00 : f32
    %459 = vector.broadcast %cst_291 : f32 to vector<4x32xf32>
    %460 = arith.addf %459, %458 : vector<4x32xf32>
    %461 = arith.divf %459, %460 : vector<4x32xf32>
    %462 = vector.extract_strided_slice %449 {offsets = [0, 0], sizes = [4, 32], strides = [1, 1]} : vector<32x32xf32> to vector<4x32xf32>
    %463 = arith.mulf %461, %462 : vector<4x32xf32>
    %cst_292 = arith.constant dense<0.000000e+00> : vector<32xf32>
    %464 = vector.multi_reduction <add>, %463, %cst_292 [0] : vector<4x32xf32> to vector<32xf32>
    %465 = vector.shape_cast %464 : vector<32xf32> to vector<1x32xf32>
    %466 = vector.extract_strided_slice %436 {offsets = [0, 0], sizes = [1, 32], strides = [1, 1]} : vector<8x32xf32> to vector<1x32xf32>
    %467 = vector.extract_strided_slice %444 {offsets = [0, 0], sizes = [1, 32], strides = [1, 1]} : vector<8x32xf32> to vector<1x32xf32>
    %468 = arith.mulf %466, %467 : vector<1x32xf32>
    %469 = arith.addf %468, %465 : vector<1x32xf32>
    %470 = vector.extract_strided_slice %442 {offsets = [0, 0], sizes = [1, 32], strides = [1, 1]} : vector<8x32xf32> to vector<1x32xf32>
    %471 = math.tanh %469 : vector<1x32xf32>
    %472 = arith.mulf %470, %471 : vector<1x32xf32>
    %c0_i32_293 = arith.constant 0 : i32
    %473 = arith.addi %3, %c0_i32_293 : i32
    %474 = arith.index_cast %473 : i32 to index
    %475 = memref.load %arg2[%474] : memref<24xi32, #tpu.memory_space<smem>>
    %476 = arith.index_cast %475 : i32 to index
    %c0_294 = arith.constant 0 : index
    %477 = vector.load %arg17[%476, %c0_294] : memref<24x32xf32, #tpu.memory_space<vmem>>, vector<1x32xf32>
    tpu.vector_store %arg17[%476, %c0_294], %469 {strides = array<i32>} : memref<24x32xf32, #tpu.memory_space<vmem>>, vector<1x32xf32>,
    %478 = arith.index_cast %475 : i32 to index
    %c0_295 = arith.constant 0 : index
    %479 = vector.load %arg18[%478, %c0_295] : memref<24x32xf32, #tpu.memory_space<vmem>>, vector<1x32xf32>
    tpu.vector_store %arg18[%478, %c0_295], %472 {strides = array<i32>} : memref<24x32xf32, #tpu.memory_space<vmem>>, vector<1x32xf32>,
    %480 = vector.extract_strided_slice %448 {offsets = [4, 0], sizes = [4, 32], strides = [1, 1]} : vector<32x32xf32> to vector<4x32xf32>
    %481 = vector.extract_strided_slice %445 {offsets = [1, 0], sizes = [1, 32], strides = [1, 1]} : vector<8x32xf32> to vector<1x32xf32>
    %482 = vector.broadcast %481 : vector<1x32xf32> to vector<4x32xf32>
    %483 = arith.addf %480, %482 : vector<4x32xf32>
    %484 = vector.broadcast %450 : vector<1x32xf32> to vector<4x32xf32>
    %485 = arith.addf %483, %484 : vector<4x32xf32>
    %486 = arith.negf %485 : vector<4x32xf32>
    %487 = math.exp %486 : vector<4x32xf32>
    %cst_296 = arith.constant 1.000000e+00 : f32
    %488 = vector.broadcast %cst_296 : f32 to vector<4x32xf32>
    %489 = arith.addf %488, %487 : vector<4x32xf32>
    %490 = arith.divf %488, %489 : vector<4x32xf32>
    %491 = vector.extract_strided_slice %449 {offsets = [4, 0], sizes = [4, 32], strides = [1, 1]} : vector<32x32xf32> to vector<4x32xf32>
    %492 = arith.mulf %490, %491 : vector<4x32xf32>
    %cst_297 = arith.constant dense<0.000000e+00> : vector<32xf32>
    %493 = vector.multi_reduction <add>, %492, %cst_297 [0] : vector<4x32xf32> to vector<32xf32>
    %494 = vector.shape_cast %493 : vector<32xf32> to vector<1x32xf32>
    %495 = vector.extract_strided_slice %436 {offsets = [1, 0], sizes = [1, 32], strides = [1, 1]} : vector<8x32xf32> to vector<1x32xf32>
    %496 = vector.extract_strided_slice %444 {offsets = [1, 0], sizes = [1, 32], strides = [1, 1]} : vector<8x32xf32> to vector<1x32xf32>
    %497 = arith.mulf %495, %496 : vector<1x32xf32>
    %498 = arith.addf %497, %494 : vector<1x32xf32>
    %499 = vector.extract_strided_slice %442 {offsets = [1, 0], sizes = [1, 32], strides = [1, 1]} : vector<8x32xf32> to vector<1x32xf32>
    %500 = math.tanh %498 : vector<1x32xf32>
    %501 = arith.mulf %499, %500 : vector<1x32xf32>
    %c1_i32_298 = arith.constant 1 : i32
    %502 = arith.addi %3, %c1_i32_298 : i32
    %503 = arith.index_cast %502 : i32 to index
    %504 = memref.load %arg2[%503] : memref<24xi32, #tpu.memory_space<smem>>
    %505 = arith.index_cast %504 : i32 to index
    %c0_299 = arith.constant 0 : index
    %506 = vector.load %arg17[%505, %c0_299] : memref<24x32xf32, #tpu.memory_space<vmem>>, vector<1x32xf32>
    tpu.vector_store %arg17[%505, %c0_299], %498 {strides = array<i32>} : memref<24x32xf32, #tpu.memory_space<vmem>>, vector<1x32xf32>,
    %507 = arith.index_cast %504 : i32 to index
    %c0_300 = arith.constant 0 : index
    %508 = vector.load %arg18[%507, %c0_300] : memref<24x32xf32, #tpu.memory_space<vmem>>, vector<1x32xf32>
    tpu.vector_store %arg18[%507, %c0_300], %501 {strides = array<i32>} : memref<24x32xf32, #tpu.memory_space<vmem>>, vector<1x32xf32>,
    %509 = vector.extract_strided_slice %448 {offsets = [8, 0], sizes = [4, 32], strides = [1, 1]} : vector<32x32xf32> to vector<4x32xf32>
    %510 = vector.extract_strided_slice %445 {offsets = [2, 0], sizes = [1, 32], strides = [1, 1]} : vector<8x32xf32> to vector<1x32xf32>
    %511 = vector.broadcast %510 : vector<1x32xf32> to vector<4x32xf32>
    %512 = arith.addf %509, %511 : vector<4x32xf32>
    %513 = vector.broadcast %450 : vector<1x32xf32> to vector<4x32xf32>
    %514 = arith.addf %512, %513 : vector<4x32xf32>
    %515 = arith.negf %514 : vector<4x32xf32>
    %516 = math.exp %515 : vector<4x32xf32>
    %cst_301 = arith.constant 1.000000e+00 : f32
    %517 = vector.broadcast %cst_301 : f32 to vector<4x32xf32>
    %518 = arith.addf %517, %516 : vector<4x32xf32>
    %519 = arith.divf %517, %518 : vector<4x32xf32>
    %520 = vector.extract_strided_slice %449 {offsets = [8, 0], sizes = [4, 32], strides = [1, 1]} : vector<32x32xf32> to vector<4x32xf32>
    %521 = arith.mulf %519, %520 : vector<4x32xf32>
    %cst_302 = arith.constant dense<0.000000e+00> : vector<32xf32>
    %522 = vector.multi_reduction <add>, %521, %cst_302 [0] : vector<4x32xf32> to vector<32xf32>
    %523 = vector.shape_cast %522 : vector<32xf32> to vector<1x32xf32>
    %524 = vector.extract_strided_slice %436 {offsets = [2, 0], sizes = [1, 32], strides = [1, 1]} : vector<8x32xf32> to vector<1x32xf32>
    %525 = vector.extract_strided_slice %444 {offsets = [2, 0], sizes = [1, 32], strides = [1, 1]} : vector<8x32xf32> to vector<1x32xf32>
    %526 = arith.mulf %524, %525 : vector<1x32xf32>
    %527 = arith.addf %526, %523 : vector<1x32xf32>
    %528 = vector.extract_strided_slice %442 {offsets = [2, 0], sizes = [1, 32], strides = [1, 1]} : vector<8x32xf32> to vector<1x32xf32>
    %529 = math.tanh %527 : vector<1x32xf32>
    %530 = arith.mulf %528, %529 : vector<1x32xf32>
    %c2_i32_303 = arith.constant 2 : i32
    %531 = arith.addi %3, %c2_i32_303 : i32
    %532 = arith.index_cast %531 : i32 to index
    %533 = memref.load %arg2[%532] : memref<24xi32, #tpu.memory_space<smem>>
    %534 = arith.index_cast %533 : i32 to index
    %c0_304 = arith.constant 0 : index
    %535 = vector.load %arg17[%534, %c0_304] : memref<24x32xf32, #tpu.memory_space<vmem>>, vector<1x32xf32>
    tpu.vector_store %arg17[%534, %c0_304], %527 {strides = array<i32>} : memref<24x32xf32, #tpu.memory_space<vmem>>, vector<1x32xf32>,
    %536 = arith.index_cast %533 : i32 to index
    %c0_305 = arith.constant 0 : index
    %537 = vector.load %arg18[%536, %c0_305] : memref<24x32xf32, #tpu.memory_space<vmem>>, vector<1x32xf32>
    tpu.vector_store %arg18[%536, %c0_305], %530 {strides = array<i32>} : memref<24x32xf32, #tpu.memory_space<vmem>>, vector<1x32xf32>,
    %538 = vector.extract_strided_slice %448 {offsets = [12, 0], sizes = [4, 32], strides = [1, 1]} : vector<32x32xf32> to vector<4x32xf32>
    %539 = vector.extract_strided_slice %445 {offsets = [3, 0], sizes = [1, 32], strides = [1, 1]} : vector<8x32xf32> to vector<1x32xf32>
    %540 = vector.broadcast %539 : vector<1x32xf32> to vector<4x32xf32>
    %541 = arith.addf %538, %540 : vector<4x32xf32>
    %542 = vector.broadcast %450 : vector<1x32xf32> to vector<4x32xf32>
    %543 = arith.addf %541, %542 : vector<4x32xf32>
    %544 = arith.negf %543 : vector<4x32xf32>
    %545 = math.exp %544 : vector<4x32xf32>
    %cst_306 = arith.constant 1.000000e+00 : f32
    %546 = vector.broadcast %cst_306 : f32 to vector<4x32xf32>
    %547 = arith.addf %546, %545 : vector<4x32xf32>
    %548 = arith.divf %546, %547 : vector<4x32xf32>
    %549 = vector.extract_strided_slice %449 {offsets = [12, 0], sizes = [4, 32], strides = [1, 1]} : vector<32x32xf32> to vector<4x32xf32>
    %550 = arith.mulf %548, %549 : vector<4x32xf32>
    %cst_307 = arith.constant dense<0.000000e+00> : vector<32xf32>
    %551 = vector.multi_reduction <add>, %550, %cst_307 [0] : vector<4x32xf32> to vector<32xf32>
    %552 = vector.shape_cast %551 : vector<32xf32> to vector<1x32xf32>
    %553 = vector.extract_strided_slice %436 {offsets = [3, 0], sizes = [1, 32], strides = [1, 1]} : vector<8x32xf32> to vector<1x32xf32>
    %554 = vector.extract_strided_slice %444 {offsets = [3, 0], sizes = [1, 32], strides = [1, 1]} : vector<8x32xf32> to vector<1x32xf32>
    %555 = arith.mulf %553, %554 : vector<1x32xf32>
    %556 = arith.addf %555, %552 : vector<1x32xf32>
    %557 = vector.extract_strided_slice %442 {offsets = [3, 0], sizes = [1, 32], strides = [1, 1]} : vector<8x32xf32> to vector<1x32xf32>
    %558 = math.tanh %556 : vector<1x32xf32>
    %559 = arith.mulf %557, %558 : vector<1x32xf32>
    %c3_i32_308 = arith.constant 3 : i32
    %560 = arith.addi %3, %c3_i32_308 : i32
    %561 = arith.index_cast %560 : i32 to index
    %562 = memref.load %arg2[%561] : memref<24xi32, #tpu.memory_space<smem>>
    %563 = arith.index_cast %562 : i32 to index
    %c0_309 = arith.constant 0 : index
    %564 = vector.load %arg17[%563, %c0_309] : memref<24x32xf32, #tpu.memory_space<vmem>>, vector<1x32xf32>
    tpu.vector_store %arg17[%563, %c0_309], %556 {strides = array<i32>} : memref<24x32xf32, #tpu.memory_space<vmem>>, vector<1x32xf32>,
    %565 = arith.index_cast %562 : i32 to index
    %c0_310 = arith.constant 0 : index
    %566 = vector.load %arg18[%565, %c0_310] : memref<24x32xf32, #tpu.memory_space<vmem>>, vector<1x32xf32>
    tpu.vector_store %arg18[%565, %c0_310], %559 {strides = array<i32>} : memref<24x32xf32, #tpu.memory_space<vmem>>, vector<1x32xf32>,
    %567 = vector.extract_strided_slice %448 {offsets = [16, 0], sizes = [4, 32], strides = [1, 1]} : vector<32x32xf32> to vector<4x32xf32>
    %568 = vector.extract_strided_slice %445 {offsets = [4, 0], sizes = [1, 32], strides = [1, 1]} : vector<8x32xf32> to vector<1x32xf32>
    %569 = vector.broadcast %568 : vector<1x32xf32> to vector<4x32xf32>
    %570 = arith.addf %567, %569 : vector<4x32xf32>
    %571 = vector.broadcast %450 : vector<1x32xf32> to vector<4x32xf32>
    %572 = arith.addf %570, %571 : vector<4x32xf32>
    %573 = arith.negf %572 : vector<4x32xf32>
    %574 = math.exp %573 : vector<4x32xf32>
    %cst_311 = arith.constant 1.000000e+00 : f32
    %575 = vector.broadcast %cst_311 : f32 to vector<4x32xf32>
    %576 = arith.addf %575, %574 : vector<4x32xf32>
    %577 = arith.divf %575, %576 : vector<4x32xf32>
    %578 = vector.extract_strided_slice %449 {offsets = [16, 0], sizes = [4, 32], strides = [1, 1]} : vector<32x32xf32> to vector<4x32xf32>
    %579 = arith.mulf %577, %578 : vector<4x32xf32>
    %cst_312 = arith.constant dense<0.000000e+00> : vector<32xf32>
    %580 = vector.multi_reduction <add>, %579, %cst_312 [0] : vector<4x32xf32> to vector<32xf32>
    %581 = vector.shape_cast %580 : vector<32xf32> to vector<1x32xf32>
    %582 = vector.extract_strided_slice %436 {offsets = [4, 0], sizes = [1, 32], strides = [1, 1]} : vector<8x32xf32> to vector<1x32xf32>
    %583 = vector.extract_strided_slice %444 {offsets = [4, 0], sizes = [1, 32], strides = [1, 1]} : vector<8x32xf32> to vector<1x32xf32>
    %584 = arith.mulf %582, %583 : vector<1x32xf32>
    %585 = arith.addf %584, %581 : vector<1x32xf32>
    %586 = vector.extract_strided_slice %442 {offsets = [4, 0], sizes = [1, 32], strides = [1, 1]} : vector<8x32xf32> to vector<1x32xf32>
    %587 = math.tanh %585 : vector<1x32xf32>
    %588 = arith.mulf %586, %587 : vector<1x32xf32>
    %c4_i32_313 = arith.constant 4 : i32
    %589 = arith.addi %3, %c4_i32_313 : i32
    %590 = arith.index_cast %589 : i32 to index
    %591 = memref.load %arg2[%590] : memref<24xi32, #tpu.memory_space<smem>>
    %592 = arith.index_cast %591 : i32 to index
    %c0_314 = arith.constant 0 : index
    %593 = vector.load %arg17[%592, %c0_314] : memref<24x32xf32, #tpu.memory_space<vmem>>, vector<1x32xf32>
    tpu.vector_store %arg17[%592, %c0_314], %585 {strides = array<i32>} : memref<24x32xf32, #tpu.memory_space<vmem>>, vector<1x32xf32>,
    %594 = arith.index_cast %591 : i32 to index
    %c0_315 = arith.constant 0 : index
    %595 = vector.load %arg18[%594, %c0_315] : memref<24x32xf32, #tpu.memory_space<vmem>>, vector<1x32xf32>
    tpu.vector_store %arg18[%594, %c0_315], %588 {strides = array<i32>} : memref<24x32xf32, #tpu.memory_space<vmem>>, vector<1x32xf32>,
    %596 = vector.extract_strided_slice %448 {offsets = [20, 0], sizes = [4, 32], strides = [1, 1]} : vector<32x32xf32> to vector<4x32xf32>
    %597 = vector.extract_strided_slice %445 {offsets = [5, 0], sizes = [1, 32], strides = [1, 1]} : vector<8x32xf32> to vector<1x32xf32>
    %598 = vector.broadcast %597 : vector<1x32xf32> to vector<4x32xf32>
    %599 = arith.addf %596, %598 : vector<4x32xf32>
    %600 = vector.broadcast %450 : vector<1x32xf32> to vector<4x32xf32>
    %601 = arith.addf %599, %600 : vector<4x32xf32>
    %602 = arith.negf %601 : vector<4x32xf32>
    %603 = math.exp %602 : vector<4x32xf32>
    %cst_316 = arith.constant 1.000000e+00 : f32
    %604 = vector.broadcast %cst_316 : f32 to vector<4x32xf32>
    %605 = arith.addf %604, %603 : vector<4x32xf32>
    %606 = arith.divf %604, %605 : vector<4x32xf32>
    %607 = vector.extract_strided_slice %449 {offsets = [20, 0], sizes = [4, 32], strides = [1, 1]} : vector<32x32xf32> to vector<4x32xf32>
    %608 = arith.mulf %606, %607 : vector<4x32xf32>
    %cst_317 = arith.constant dense<0.000000e+00> : vector<32xf32>
    %609 = vector.multi_reduction <add>, %608, %cst_317 [0] : vector<4x32xf32> to vector<32xf32>
    %610 = vector.shape_cast %609 : vector<32xf32> to vector<1x32xf32>
    %611 = vector.extract_strided_slice %436 {offsets = [5, 0], sizes = [1, 32], strides = [1, 1]} : vector<8x32xf32> to vector<1x32xf32>
    %612 = vector.extract_strided_slice %444 {offsets = [5, 0], sizes = [1, 32], strides = [1, 1]} : vector<8x32xf32> to vector<1x32xf32>
    %613 = arith.mulf %611, %612 : vector<1x32xf32>
    %614 = arith.addf %613, %610 : vector<1x32xf32>
    %615 = vector.extract_strided_slice %442 {offsets = [5, 0], sizes = [1, 32], strides = [1, 1]} : vector<8x32xf32> to vector<1x32xf32>
    %616 = math.tanh %614 : vector<1x32xf32>
    %617 = arith.mulf %615, %616 : vector<1x32xf32>
    %c5_i32_318 = arith.constant 5 : i32
    %618 = arith.addi %3, %c5_i32_318 : i32
    %619 = arith.index_cast %618 : i32 to index
    %620 = memref.load %arg2[%619] : memref<24xi32, #tpu.memory_space<smem>>
    %621 = arith.index_cast %620 : i32 to index
    %c0_319 = arith.constant 0 : index
    %622 = vector.load %arg17[%621, %c0_319] : memref<24x32xf32, #tpu.memory_space<vmem>>, vector<1x32xf32>
    tpu.vector_store %arg17[%621, %c0_319], %614 {strides = array<i32>} : memref<24x32xf32, #tpu.memory_space<vmem>>, vector<1x32xf32>,
    %623 = arith.index_cast %620 : i32 to index
    %c0_320 = arith.constant 0 : index
    %624 = vector.load %arg18[%623, %c0_320] : memref<24x32xf32, #tpu.memory_space<vmem>>, vector<1x32xf32>
    tpu.vector_store %arg18[%623, %c0_320], %617 {strides = array<i32>} : memref<24x32xf32, #tpu.memory_space<vmem>>, vector<1x32xf32>,
    %625 = vector.extract_strided_slice %448 {offsets = [24, 0], sizes = [4, 32], strides = [1, 1]} : vector<32x32xf32> to vector<4x32xf32>
    %626 = vector.extract_strided_slice %445 {offsets = [6, 0], sizes = [1, 32], strides = [1, 1]} : vector<8x32xf32> to vector<1x32xf32>
    %627 = vector.broadcast %626 : vector<1x32xf32> to vector<4x32xf32>
    %628 = arith.addf %625, %627 : vector<4x32xf32>
    %629 = vector.broadcast %450 : vector<1x32xf32> to vector<4x32xf32>
    %630 = arith.addf %628, %629 : vector<4x32xf32>
    %631 = arith.negf %630 : vector<4x32xf32>
    %632 = math.exp %631 : vector<4x32xf32>
    %cst_321 = arith.constant 1.000000e+00 : f32
    %633 = vector.broadcast %cst_321 : f32 to vector<4x32xf32>
    %634 = arith.addf %633, %632 : vector<4x32xf32>
    %635 = arith.divf %633, %634 : vector<4x32xf32>
    %636 = vector.extract_strided_slice %449 {offsets = [24, 0], sizes = [4, 32], strides = [1, 1]} : vector<32x32xf32> to vector<4x32xf32>
    %637 = arith.mulf %635, %636 : vector<4x32xf32>
    %cst_322 = arith.constant dense<0.000000e+00> : vector<32xf32>
    %638 = vector.multi_reduction <add>, %637, %cst_322 [0] : vector<4x32xf32> to vector<32xf32>
    %639 = vector.shape_cast %638 : vector<32xf32> to vector<1x32xf32>
    %640 = vector.extract_strided_slice %436 {offsets = [6, 0], sizes = [1, 32], strides = [1, 1]} : vector<8x32xf32> to vector<1x32xf32>
    %641 = vector.extract_strided_slice %444 {offsets = [6, 0], sizes = [1, 32], strides = [1, 1]} : vector<8x32xf32> to vector<1x32xf32>
    %642 = arith.mulf %640, %641 : vector<1x32xf32>
    %643 = arith.addf %642, %639 : vector<1x32xf32>
    %644 = vector.extract_strided_slice %442 {offsets = [6, 0], sizes = [1, 32], strides = [1, 1]} : vector<8x32xf32> to vector<1x32xf32>
    %645 = math.tanh %643 : vector<1x32xf32>
    %646 = arith.mulf %644, %645 : vector<1x32xf32>
    %c6_i32_323 = arith.constant 6 : i32
    %647 = arith.addi %3, %c6_i32_323 : i32
    %648 = arith.index_cast %647 : i32 to index
    %649 = memref.load %arg2[%648] : memref<24xi32, #tpu.memory_space<smem>>
    %650 = arith.index_cast %649 : i32 to index
    %c0_324 = arith.constant 0 : index
    %651 = vector.load %arg17[%650, %c0_324] : memref<24x32xf32, #tpu.memory_space<vmem>>, vector<1x32xf32>
    tpu.vector_store %arg17[%650, %c0_324], %643 {strides = array<i32>} : memref<24x32xf32, #tpu.memory_space<vmem>>, vector<1x32xf32>,
    %652 = arith.index_cast %649 : i32 to index
    %c0_325 = arith.constant 0 : index
    %653 = vector.load %arg18[%652, %c0_325] : memref<24x32xf32, #tpu.memory_space<vmem>>, vector<1x32xf32>
    tpu.vector_store %arg18[%652, %c0_325], %646 {strides = array<i32>} : memref<24x32xf32, #tpu.memory_space<vmem>>, vector<1x32xf32>,
    %654 = vector.extract_strided_slice %448 {offsets = [28, 0], sizes = [4, 32], strides = [1, 1]} : vector<32x32xf32> to vector<4x32xf32>
    %655 = vector.extract_strided_slice %445 {offsets = [7, 0], sizes = [1, 32], strides = [1, 1]} : vector<8x32xf32> to vector<1x32xf32>
    %656 = vector.broadcast %655 : vector<1x32xf32> to vector<4x32xf32>
    %657 = arith.addf %654, %656 : vector<4x32xf32>
    %658 = vector.broadcast %450 : vector<1x32xf32> to vector<4x32xf32>
    %659 = arith.addf %657, %658 : vector<4x32xf32>
    %660 = arith.negf %659 : vector<4x32xf32>
    %661 = math.exp %660 : vector<4x32xf32>
    %cst_326 = arith.constant 1.000000e+00 : f32
    %662 = vector.broadcast %cst_326 : f32 to vector<4x32xf32>
    %663 = arith.addf %662, %661 : vector<4x32xf32>
    %664 = arith.divf %662, %663 : vector<4x32xf32>
    %665 = vector.extract_strided_slice %449 {offsets = [28, 0], sizes = [4, 32], strides = [1, 1]} : vector<32x32xf32> to vector<4x32xf32>
    %666 = arith.mulf %664, %665 : vector<4x32xf32>
    %cst_327 = arith.constant dense<0.000000e+00> : vector<32xf32>
    %667 = vector.multi_reduction <add>, %666, %cst_327 [0] : vector<4x32xf32> to vector<32xf32>
    %668 = vector.shape_cast %667 : vector<32xf32> to vector<1x32xf32>
    %669 = vector.extract_strided_slice %436 {offsets = [7, 0], sizes = [1, 32], strides = [1, 1]} : vector<8x32xf32> to vector<1x32xf32>
    %670 = vector.extract_strided_slice %444 {offsets = [7, 0], sizes = [1, 32], strides = [1, 1]} : vector<8x32xf32> to vector<1x32xf32>
    %671 = arith.mulf %669, %670 : vector<1x32xf32>
    %672 = arith.addf %671, %668 : vector<1x32xf32>
    %673 = vector.extract_strided_slice %442 {offsets = [7, 0], sizes = [1, 32], strides = [1, 1]} : vector<8x32xf32> to vector<1x32xf32>
    %674 = math.tanh %672 : vector<1x32xf32>
    %675 = arith.mulf %673, %674 : vector<1x32xf32>
    %c7_i32_328 = arith.constant 7 : i32
    %676 = arith.addi %3, %c7_i32_328 : i32
    %677 = arith.index_cast %676 : i32 to index
    %678 = memref.load %arg2[%677] : memref<24xi32, #tpu.memory_space<smem>>
    %679 = arith.index_cast %678 : i32 to index
    %c0_329 = arith.constant 0 : index
    %680 = vector.load %arg17[%679, %c0_329] : memref<24x32xf32, #tpu.memory_space<vmem>>, vector<1x32xf32>
    tpu.vector_store %arg17[%679, %c0_329], %672 {strides = array<i32>} : memref<24x32xf32, #tpu.memory_space<vmem>>, vector<1x32xf32>,
    %681 = arith.index_cast %678 : i32 to index
    %c0_330 = arith.constant 0 : index
    %682 = vector.load %arg18[%681, %c0_330] : memref<24x32xf32, #tpu.memory_space<vmem>>, vector<1x32xf32>
    tpu.vector_store %arg18[%681, %c0_330], %675 {strides = array<i32>} : memref<24x32xf32, #tpu.memory_space<vmem>>, vector<1x32xf32>,
    %c2_i32_331 = arith.constant 2 : i32
    %683 = arith.cmpi eq, %arg0, %c2_i32_331 : i32
    %684 = arith.extui %683 : i1 to i32
    %c0_i32_332 = arith.constant 0 : i32
    %685 = arith.cmpi ne, %684, %c0_i32_332 : i32
    scf.if %685 {
      %c0_333 = arith.constant 0 : index
      %686 = memref.load %arg4[%c0_333] : memref<2xi32, #tpu.memory_space<smem>>
      %687 = arith.index_cast %686 : i32 to index
      %c0_334 = arith.constant 0 : index
      %688 = vector.load %arg18[%687, %c0_334] : memref<24x32xf32, #tpu.memory_space<vmem>>, vector<1x32xf32>
      %c1_335 = arith.constant 1 : index
      %689 = memref.load %arg4[%c1_335] : memref<2xi32, #tpu.memory_space<smem>>
      %690 = arith.index_cast %689 : i32 to index
      %c0_336 = arith.constant 0 : index
      %691 = vector.load %arg18[%690, %c0_336] : memref<24x32xf32, #tpu.memory_space<vmem>>, vector<1x32xf32>
      %692 = arith.mulf %688, %691 : vector<1x32xf32>
      %693 = arith.subf %688, %691 : vector<1x32xf32>
      %694 = math.absf %693 : vector<1x32xf32>
      %c0_337 = arith.constant 0 : index
      %c0_338 = arith.constant 0 : index
      %695 = vector.load %arg11[%c0_337, %c0_338] : memref<32x32xf32, #tpu.memory_space<vmem>>, vector<32x32xf32>
      %cst_339 = arith.constant dense<0.000000e+00> : vector<1x32xf32>
      %696 = tpu.matmul %692, %695, %cst_339 {dimension_numbers = #tpu.dot_dimension_numbers<[1], [0], [0], [1], [0, 0, 1, 1], [], []>} : vector<1x32xf32>, vector<32x32xf32>, vector<1x32xf32> -> vector<1x32xf32>
      %c0_340 = arith.constant 0 : index
      %c0_341 = arith.constant 0 : index
      %697 = vector.load %arg12[%c0_340, %c0_341] : memref<32x32xf32, #tpu.memory_space<vmem>>, vector<32x32xf32>
      %cst_342 = arith.constant dense<0.000000e+00> : vector<1x32xf32>
      %698 = tpu.matmul %694, %697, %cst_342 {dimension_numbers = #tpu.dot_dimension_numbers<[1], [0], [0], [1], [0, 0, 1, 1], [], []>} : vector<1x32xf32>, vector<32x32xf32>, vector<1x32xf32> -> vector<1x32xf32>
      %699 = arith.addf %696, %698 : vector<1x32xf32>
      %c0_343 = arith.constant 0 : index
      %c0_344 = arith.constant 0 : index
      %700 = vector.load %arg13[%c0_343, %c0_344] : memref<1x32xf32, #tpu.memory_space<vmem>>, vector<1x32xf32>
      %701 = arith.addf %699, %700 : vector<1x32xf32>
      %702 = arith.negf %701 : vector<1x32xf32>
      %703 = math.exp %702 : vector<1x32xf32>
      %cst_345 = arith.constant 1.000000e+00 : f32
      %704 = vector.broadcast %cst_345 : f32 to vector<1x32xf32>
      %705 = arith.addf %704, %703 : vector<1x32xf32>
      %706 = arith.divf %704, %705 : vector<1x32xf32>
      %c0_346 = arith.constant 0 : index
      %c0_347 = arith.constant 0 : index
      %707 = vector.load %arg14[%c0_346, %c0_347] : memref<32x5xf32, #tpu.memory_space<vmem>>, vector<32x5xf32>
      %cst_348 = arith.constant dense<0.000000e+00> : vector<1x5xf32>
      %708 = tpu.matmul %706, %707, %cst_348 {dimension_numbers = #tpu.dot_dimension_numbers<[1], [0], [0], [1], [0, 0, 1, 1], [], []>} : vector<1x32xf32>, vector<32x5xf32>, vector<1x5xf32> -> vector<1x5xf32>
      %c0_349 = arith.constant 0 : index
      %c0_350 = arith.constant 0 : index
      %709 = vector.load %arg15[%c0_349, %c0_350] : memref<1x5xf32, #tpu.memory_space<vmem>>, vector<1x5xf32>
      %710 = arith.addf %708, %709 : vector<1x5xf32>
      %cst_351 = arith.constant dense<0xFF800000> : vector<1xf32>
      %711 = vector.multi_reduction <maximumf>, %710, %cst_351 [1] : vector<1x5xf32> to vector<1xf32>
      %712 = vector.shape_cast %711 : vector<1xf32> to vector<1x1xf32>
      %713 = vector.broadcast %712 : vector<1x1xf32> to vector<1x5xf32>
      %714 = arith.subf %710, %713 : vector<1x5xf32>
      %715 = math.exp %714 : vector<1x5xf32>
      %cst_352 = arith.constant dense<0.000000e+00> : vector<1xf32>
      %716 = vector.multi_reduction <add>, %715, %cst_352 [1] : vector<1x5xf32> to vector<1xf32>
      %717 = vector.shape_cast %716 : vector<1xf32> to vector<1x1xf32>
      %718 = math.log %717 : vector<1x1xf32>
      %719 = vector.broadcast %718 : vector<1x1xf32> to vector<1x5xf32>
      %720 = arith.subf %714, %719 : vector<1x5xf32>
      %c0_353 = arith.constant 0 : index
      %c0_354 = arith.constant 0 : index
      %721 = vector.load %arg16[%c0_353, %c0_354] : memref<1x5xf32, #tpu.memory_space<vmem>>, vector<1x5xf32>
      tpu.vector_store %arg16[%c0_353, %c0_354], %720 {strides = array<i32>} : memref<1x5xf32, #tpu.memory_space<vmem>>, vector<1x5xf32>,
    } else {
    }
    return
  }
  func.func @transform_0(%arg0: i32, %arg1: memref<24xi32, #tpu.memory_space<smem>>, %arg2: memref<24xi32, #tpu.memory_space<smem>>, %arg3: memref<96xi32, #tpu.memory_space<smem>>, %arg4: memref<2xi32, #tpu.memory_space<smem>>) -> (i32, i32) {
    %c0_i32 = arith.constant 0 : i32
    %c0_i32_0 = arith.constant 0 : i32
    %c0_i32_1 = arith.constant 0 : i32
    return %c0_i32, %c0_i32_0 : i32, i32
  }
  func.func @transform_1(%arg0: i32, %arg1: memref<24xi32, #tpu.memory_space<smem>>, %arg2: memref<24xi32, #tpu.memory_space<smem>>, %arg3: memref<96xi32, #tpu.memory_space<smem>>, %arg4: memref<2xi32, #tpu.memory_space<smem>>) -> (i32, i32) {
    %c0_i32 = arith.constant 0 : i32
    %c0_i32_0 = arith.constant 0 : i32
    %c0_i32_1 = arith.constant 0 : i32
    return %c0_i32, %c0_i32_0 : i32, i32
  }
  func.func @transform_2(%arg0: i32, %arg1: memref<24xi32, #tpu.memory_space<smem>>, %arg2: memref<24xi32, #tpu.memory_space<smem>>, %arg3: memref<96xi32, #tpu.memory_space<smem>>, %arg4: memref<2xi32, #tpu.memory_space<smem>>) -> (i32, i32) {
    %c0_i32 = arith.constant 0 : i32
    %c0_i32_0 = arith.constant 0 : i32
    %c0_i32_1 = arith.constant 0 : i32
    return %c0_i32, %c0_i32_0 : i32, i32
  }
  func.func @transform_3(%arg0: i32, %arg1: memref<24xi32, #tpu.memory_space<smem>>, %arg2: memref<24xi32, #tpu.memory_space<smem>>, %arg3: memref<96xi32, #tpu.memory_space<smem>>, %arg4: memref<2xi32, #tpu.memory_space<smem>>) -> (i32, i32) {
    %c0_i32 = arith.constant 0 : i32
    %c0_i32_0 = arith.constant 0 : i32
    %c0_i32_1 = arith.constant 0 : i32
    return %c0_i32, %c0_i32_0 : i32, i32
  }
  func.func @transform_4(%arg0: i32, %arg1: memref<24xi32, #tpu.memory_space<smem>>, %arg2: memref<24xi32, #tpu.memory_space<smem>>, %arg3: memref<96xi32, #tpu.memory_space<smem>>, %arg4: memref<2xi32, #tpu.memory_space<smem>>) -> (i32, i32) {
    %c0_i32 = arith.constant 0 : i32
    %c0_i32_0 = arith.constant 0 : i32
    %c0_i32_1 = arith.constant 0 : i32
    return %c0_i32, %c0_i32_0 : i32, i32
  }
  func.func @transform_5(%arg0: i32, %arg1: memref<24xi32, #tpu.memory_space<smem>>, %arg2: memref<24xi32, #tpu.memory_space<smem>>, %arg3: memref<96xi32, #tpu.memory_space<smem>>, %arg4: memref<2xi32, #tpu.memory_space<smem>>) -> (i32, i32) {
    %c0_i32 = arith.constant 0 : i32
    %c0_i32_0 = arith.constant 0 : i32
    %c0_i32_1 = arith.constant 0 : i32
    return %c0_i32, %c0_i32_0 : i32, i32
  }
  func.func @transform_6(%arg0: i32, %arg1: memref<24xi32, #tpu.memory_space<smem>>, %arg2: memref<24xi32, #tpu.memory_space<smem>>, %arg3: memref<96xi32, #tpu.memory_space<smem>>, %arg4: memref<2xi32, #tpu.memory_space<smem>>) -> (i32, i32) {
    %c0_i32 = arith.constant 0 : i32
    %c0_i32_0 = arith.constant 0 : i32
    %c0_i32_1 = arith.constant 0 : i32
    return %c0_i32, %c0_i32_0 : i32, i32
  }
  func.func @transform_7(%arg0: i32, %arg1: memref<24xi32, #tpu.memory_space<smem>>, %arg2: memref<24xi32, #tpu.memory_space<smem>>, %arg3: memref<96xi32, #tpu.memory_space<smem>>, %arg4: memref<2xi32, #tpu.memory_space<smem>>) -> (i32, i32) {
    %c0_i32 = arith.constant 0 : i32
    %c0_i32_0 = arith.constant 0 : i32
    %c0_i32_1 = arith.constant 0 : i32
    return %c0_i32, %c0_i32_0 : i32, i32
  }
  func.func @transform_8(%arg0: i32, %arg1: memref<24xi32, #tpu.memory_space<smem>>, %arg2: memref<24xi32, #tpu.memory_space<smem>>, %arg3: memref<96xi32, #tpu.memory_space<smem>>, %arg4: memref<2xi32, #tpu.memory_space<smem>>) -> (i32, i32) {
    %c0_i32 = arith.constant 0 : i32
    %c0_i32_0 = arith.constant 0 : i32
    %c0_i32_1 = arith.constant 0 : i32
    return %c0_i32, %c0_i32_0 : i32, i32
  }
  func.func @transform_9(%arg0: i32, %arg1: memref<24xi32, #tpu.memory_space<smem>>, %arg2: memref<24xi32, #tpu.memory_space<smem>>, %arg3: memref<96xi32, #tpu.memory_space<smem>>, %arg4: memref<2xi32, #tpu.memory_space<smem>>) -> (i32, i32) {
    %c0_i32 = arith.constant 0 : i32
    %c0_i32_0 = arith.constant 0 : i32
    %c0_i32_1 = arith.constant 0 : i32
    return %c0_i32, %c0_i32_0 : i32, i32
  }
  func.func @transform_10(%arg0: i32, %arg1: memref<24xi32, #tpu.memory_space<smem>>, %arg2: memref<24xi32, #tpu.memory_space<smem>>, %arg3: memref<96xi32, #tpu.memory_space<smem>>, %arg4: memref<2xi32, #tpu.memory_space<smem>>) -> (i32, i32) {
    %c0_i32 = arith.constant 0 : i32
    %c0_i32_0 = arith.constant 0 : i32
    %c0_i32_1 = arith.constant 0 : i32
    return %c0_i32, %c0_i32_0 : i32, i32
  }
  func.func @transform_11(%arg0: i32, %arg1: memref<24xi32, #tpu.memory_space<smem>>, %arg2: memref<24xi32, #tpu.memory_space<smem>>, %arg3: memref<96xi32, #tpu.memory_space<smem>>, %arg4: memref<2xi32, #tpu.memory_space<smem>>) -> (i32, i32) {
    %c0_i32 = arith.constant 0 : i32
    %c0_i32_0 = arith.constant 0 : i32
    %c0_i32_1 = arith.constant 0 : i32
    return %c0_i32, %c0_i32_0 : i32, i32
  }
}

</mosaic_0001>

<bundles_post_ra>
// kernel: tpu_custom_call.1
= control target key start
LH: loop header
LB: loop body
LE: loop exit
PB: predicated region body
PF: predicated region fallthrough
CT: control target
= control target key end

     0   :  { %s2119_s24 = smov [#allocation9]   ;;  %s2120_s25 = smov [#allocation10]   ;;  %s2891_s0 = inlined_call_operand.vmem [shape: s32[24], index: 0, kind: input, shape index: {}]   ;;  %s2892_s4 = inlined_call_operand.hbm [shape: f32[16,32], index: 4, kind: input, shape index: {}]   ;;  %s2893_s5 = inlined_call_operand.vmem [shape: f32[32,128], index: 5, kind: input, shape index: {}]   ;;  %s2894_s6 = inlined_call_operand.hbm [shape: f32[32,128], index: 6, kind: input, shape index: {}]   ;;  %s2895_s7 = inlined_call_operand.vmem [shape: f32[1,128], index: 7, kind: input, shape index: {}]   ;;  %s2896_s8 = inlined_call_operand.hbm [shape: f32[32,32], index: 8, kind: input, shape index: {}]   ;;  %s2897_s9 = inlined_call_operand.vmem [shape: f32[1,32], index: 9, kind: input, shape index: {}]   ;;  %s2898_s10 = inlined_call_operand.hbm [shape: f32[32,32], index: 10, kind: input, shape index: {}]   ;;  %s2899_s11 = inlined_call_operand.hbm [shape: f32[32,32], index: 11, kind: input, shape index: {}]   ;;  %s2900_s12 = inlined_call_operand.vmem [shape: f32[1,32], index: 12, kind: input, shape index: {}]   ;;  %s2901_s13 = inlined_call_operand.vmem [shape: f32[32,5], index: 13, kind: input, shape index: {}]   ;;  %s2902_s14 = inlined_call_operand.vmem [shape: f32[1,5], index: 14, kind: input, shape index: {}]   ;;  %s2903_s15 = inlined_call_operand.hbm [shape: f32[1,5], index: 15, kind: output, shape index: {}]   ;;  %s2904_s1 = inlined_call_operand.vmem [shape: s32[24], index: 1, kind: input, shape index: {}]   ;;  %s2905_s2 = inlined_call_operand.vmem [shape: s32[96], index: 2, kind: input, shape index: {}]   ;;  %s2906_s3 = inlined_call_operand.vmem [shape: s32[2], index: 3, kind: input, shape index: {}]  }
   0x1   :  { %2923 = sst [smem:[#allocation35_spill]] %s2892_s4  ;;  %s21_s20 = sshll.u32 %s2891_s0, 4  ;;  %s22_s20 = int_to_ptr.vmem [resolvable:$true] %s21_s20 }
   0x2   :  { %2924 = sst [smem:[#allocation36_spill]] %s2893_s5  ;;  %s26_s23 = sshll.u32 %s2904_s1, 4  ;;  %s27_s23 = int_to_ptr.vmem [resolvable:$true] %s26_s23 }
   0x3   :  { %2925 = sst [smem:[#allocation37_spill]] %s2894_s6  ;;  %s31_s28 = sshll.u32 %s2905_s2, 4  ;;  %s32_s28 = int_to_ptr.vmem [resolvable:$true] %s31_s28 }
   0x4   :  { %2926 = sst [smem:[#allocation38_spill]] %s2896_s8  ;;  %s36_s16 = sshll.u32 %s2906_s3, 4  ;;  %s37_s16 = int_to_ptr.vmem [resolvable:$true] %s36_s16 }
   0x5   :  { %2927 = sst [smem:[#allocation39_spill]] %s2898_s10  ;;  %s2121_s0 = smov [#allocation11]  }
   0x6   :  { %2928 = sst [smem:[#allocation40_spill]] %s2899_s11  ;;  %s2122_s17 = smov [#allocation12]  }
   0x7   :  { %2929 = sst [smem:[#allocation41_spill]] %s2900_s12 }
   0x8   :  { %2930 = sst [smem:[#allocation42_spill]] %s2901_s13 }
   0x9   :  { %2931 = sst [smem:[#allocation43_spill]] %s2902_s14 }
   0xa   :  { %2932 = sst [smem:[#allocation44_spill]] %s2903_s15 }
   0xb   :  { %24 = dma.vmem_to_smem %s22_s20, 16, %s2119_s24, [#allocation8] }
   0xc   :  { %29 = dma.vmem_to_smem %s27_s23, 16, %s2120_s25, [#allocation8] }
   0xd   :  { %34 = dma.vmem_to_smem %s32_s28, 16, %s2121_s0, [#allocation8] }
   0xe   :  { %39 = dma.vmem_to_smem %s37_s16, 16, %s2122_s17, [#allocation8] }
   0xf   :  { %2097 = dma.done.wait [#allocation8], 64 }
  0x10   :  { %2098 = vsyncadd [#allocation8], 4294967232 }
  0x11   :  { %42 = sfence }
  0x12   :  { %43 = vsyncpa [#allocation14], 0 }
  0x13   :  { %44 = vsyncpa [#allocation17], 0 }
  0x14   :  { %45 = vsyncpa [#allocation20], 0 }
  0x15   :  { %46 = vsyncpa [#allocation15], 0  ;;  %s2227_s1 = smov 0  }
  0x16 LB: > { %2933 = sst [smem:[#allocation28_spill]] %s2117_s1  ;;  %s2233_s2 = sadd.s32 4294967295, %s2117_s1   ;;  %s2117_s1 = sphi %s2227_s1, %s52_s1  }
  0x17   : > { %2934 = sst [smem:[#allocation29_spill]] %s2233_s2  ;;  %p1683_p0 = scmp.ge.s32.totalorder %s2117_s1, 1 }
  0x18   : > { %p309_p1 = scmp.lt.s32.totalorder %s2117_s1, 4  ;;  %p1684_p2 = scmp.ne.s32.totalorder %s2233_s2, 0 }
  0x19   : > { %p1767_p3 = scmp.eq.s32.totalorder %s2233_s2, 0  ;;  %s2935_s6 = sld [smem:[#allocation37_spill]] }
  0x1a   : > { %p2242_p4 = pnand %p1683_p0, %p309_p1  ;;  %s2937_s10 = sld [smem:[#allocation39_spill]] }
  0x1b   : > { %s2123_s24 = smov [#allocation16]   ;;  %s2124_s27 = smov [#allocation19]  }
  0x1c   : > { %p1751_p5 = pneg %p2242_p4  ;;  %s339_s25 = sshll.u32 %s2123_s24, 4  ;;  %s340_s25 = int_to_ptr.vmem [resolvable:$true] %s339_s25 }
  0x1d   : > { %s373_s28 = sshll.u32 %s2124_s27, 4  ;;  %s2939_s4 = sld [smem:[#allocation35_spill]]  ;;  %s374_s28 = int_to_ptr.vmem [resolvable:$true] %s373_s28 }
  0x1e   : > { %p2253_p6 = pnand %p1767_p3, %p1751_p5  ;;  %s2125_s0 = smov 128  }
  0x1f   : > { %s337_s19 = sshll.u32 %s2935_s6, 4  ;;  %s2126_s17 = smov 8   ;;  %s338_s19 = int_to_ptr.hbm [resolvable:$true] %s337_s19 }
  0x20   : > { %s371_s23 = sshll.u32 %s2937_s10, 4  ;;  %s2127_s3 = smov [#allocation13]   ;;  %s372_s23 = int_to_ptr.hbm [resolvable:$true] %s371_s23 }
  0x21   : > { %1757 = dma.hbm_to_vmem [thread:$0]  (!%p2253_p6), %s338_s19, 512, %s340_s25, [#allocation17], %s2125_s0, %s2125_s0, %s2126_s17  }
  0x22   : > { %1763 = dma.hbm_to_vmem [thread:$0]  (!%p2253_p6), %s372_s23, 512, %s374_s28, [#allocation20], %s2125_s0, %s2125_s0, %s2126_s17  }
  0x23   : > { %s320_s16 = sshll.u32 %s2939_s4, 4  ;;  %s322_s18 = sshll.u32 %s2127_s3, 4  ;;  %s321_s16 = int_to_ptr.hbm [resolvable:$true] %s320_s16  ;;  %s323_s18 = int_to_ptr.vmem [resolvable:$true] %s322_s18 }
  0x24   : > { %s2940_s8 = sld [smem:[#allocation38_spill]]  ;;  %s2128_s4 = smov [#allocation18]  }
  0x25   : > { %1754 = dma.hbm_to_vmem [thread:$0]  (!%p2253_p6), %s321_s16, 256, %s323_s18, [#allocation14], %s2125_s0, %s2125_s0, %s2126_s17  }
  0x26   : > { %s2941_s11 = sld [smem:[#allocation40_spill]]  ;;  %s356_s19 = sshll.u32 %s2128_s4, 4  ;;  %s357_s19 = int_to_ptr.vmem [resolvable:$true] %s356_s19 }
  0x27   : > { %s2129_s23 = smov [#allocation21]  }
  0x28   : > { %s387_s25 = sshll.u32 %s2129_s23, 4  ;;  %s388_s25 = int_to_ptr.vmem [resolvable:$true] %s387_s25 }
  0x29   : > { %412 = sbr.rel (%p2242_p4) target bundleno = 1214 (0x4be), region = 64 }
  0x2a   : > { %s354_s24 = sshll.u32 %s2940_s8, 4  ;;  %s355_s24 = int_to_ptr.hbm [resolvable:$true] %s354_s24 }
  0x2b   : > { %1760 = dma.hbm_to_vmem [thread:$0]  (!%p2253_p6), %s355_s24, 512, %s357_s19, [#allocation17], %s2125_s0, %s2125_s0, %s2126_s17  }
  0x2c   : > { %s385_s30 = sshll.u32 %s2941_s11, 4  ;;  %s386_s30 = int_to_ptr.hbm [resolvable:$true] %s385_s30 }
  0x2d   : > { %1766 = dma.hbm_to_vmem [thread:$0]  (!%p2253_p6), %s386_s30, 512, %s388_s25, [#allocation20], %s2125_s0, %s2125_s0, %s2126_s17  }
  0x2e   : > { %2100 = dma.done.wait (%p1767_p3), [#allocation14], 256  }
  0x2f   : > { %2102 = vsyncadd (%p1767_p3), [#allocation14], 4294967040 }
  0x30   : > { %2104 = dma.done.wait (%p1767_p3), [#allocation17], 1024  }
  0x31   : > { %2106 = vsyncadd (%p1767_p3), [#allocation17], 4294966272 }
  0x32   : > { %2108 = dma.done.wait (%p1767_p3), [#allocation20], 1024  }
  0x33   : > { %2110 = vsyncadd (%p1767_p3), [#allocation20], 4294966272  ;;  %466 = sbr.rel (%p1684_p2) target bundleno = 63 (0x3f), region = 88 }
  0x38   : > { %vm467_vm0 = vcmask 261120   ;;  %v2130_v0 = vmov 0.0  }
  0x39   : > { %468 = vst.msk [vmem:[#allocation2] sm:$0xff] %vm467_vm0, %v2130_v0 }
  0x3a   : > { %469 = vst.msk [vmem:[#allocation2 + $0x8] sm:$0xff] %vm467_vm0, %v2130_v0 }
  0x3b   : > { %470 = vst.msk [vmem:[#allocation2 + $0x10] sm:$0xff] %vm467_vm0, %v2130_v0 }
  0x3c   : > { %471 = vst.msk [vmem:[#allocation3] sm:$0xff] %vm467_vm0, %v2130_v0 }
  0x3d   : > { %472 = vst.msk [vmem:[#allocation3 + $0x8] sm:$0xff] %vm467_vm0, %v2130_v0 }
  0x3e   : > { %473 = vst.msk [vmem:[#allocation3 + $0x10] sm:$0xff] %vm467_vm0, %v2130_v0 }
  0x3f PF: > { %s2942_s5 = sld [smem:[#allocation36_spill]]  ;;  %s2299_s16 = sshll.u32 %s2233_s2, 3  ;;  %v844_v3 = vld [vmem:[#allocation16 + $0x18] sm:$0xff]  ;;  %v843_v4 = vld [vmem:[#allocation16 + $0x10] sm:$0xff]  ;;  %v842_v6 = vld [vmem:[#allocation16 + $0x8] sm:$0xff]  ;;  %vm479_vm1 = vcmask 253952  }
  0x40   : > { %2943 = sst [smem:[#allocation30_spill]] %s2299_s16  ;;  %s2913_s17 = sadd.s32 1, %s2299_s16  ;;  %860 = vmatpush.msra.mxu1 %v844_v3  ;;  %v841_v8 = vld [vmem:[#allocation16] sm:$0xff]  ;;  %vm816_vm2 = vcmask 261120   ;;  %v901_v57 = vld [vmem:[#allocation18 + $0x18] sm:$0xff]  ;;  %v900_v58 = vld [vmem:[#allocation18 + $0x10] sm:$0xff] }
  0x41   : > { %s476_s0 = sld [smem:[#allocation9 + %s2299_s16]]  ;;  %s2912_s22 = sadd.s32 2, %s2299_s16  ;;  %1723 = vmatpush.msra.mxu3 %v901_v57  ;;  %926 = vmatpush.msra.mxu2 %v901_v57  ;;  %v899_v61 = vld [vmem:[#allocation18 + $0x8] sm:$0xff]  ;;  %v898_v62 = vld [vmem:[#allocation18] sm:$0xff]  ;;  %vm978_vm10 = vcmask 257024  }
  0x42   : > { %s518_s21 = sld [smem:[#allocation9 + %s2913_s17]]  ;;  %s2911_s27 = sadd.s32 3, %s2299_s16  ;;  %861 = vmatpush.msra.mxu1 %v843_v4 }
  0x43   : > { %s560_s24 = sld [smem:[#allocation9 + %s2912_s22]]  ;;  %s2907_s23 = sadd.s32 4, %s2299_s16  ;;  %1724 = vmatpush.msra.mxu3 %v900_v58  ;;  %927 = vmatpush.msra.mxu2 %v900_v58 }
  0x44   : > { %s602_s19 = sld [smem:[#allocation9 + %s2911_s27]]  ;;  %s2908_s4 = sadd.s32 5, %s2299_s16  ;;  %862 = vmatpush.msra.mxu1 %v842_v6 }
  0x45   : > { %v815_v1 = vld [vmem:[%s2942_s5 + $0x18] sm:$0xff]  ;;  %v814_v2 = vld [vmem:[%s2942_s5 + $0x10] sm:$0xff]  ;;  %v813_v5 = vld [vmem:[%s2942_s5 + $0x8] sm:$0xff]  ;;  %s644_s25 = sld [smem:[#allocation9 + %s2907_s23]]  ;;  %s2910_s26 = sadd.s32 6, %s2299_s16  ;;  %1725 = vmatpush.msra.mxu3 %v899_v61  ;;  %928 = vmatpush.msra.mxu2 %v899_v61 }
  0x46   : > { %832 = vmatpush.msra.mxu0 %v815_v1  ;;  %v812_v7 = vld [vmem:[%s2942_s5] sm:$0xff]  ;;  %s686_s20 = sld [smem:[#allocation9 + %s2908_s4]]  ;;  %s2909_s18 = sadd.s32 7, %s2299_s16  ;;  %863 = vmatpush.msra.mxu1 %v841_v8 }
  0x47   : > { %s728_s28 = sld [smem:[#allocation9 + %s2910_s26]]  ;;  %s477_s3 = scalar_lea.vmem [#allocation13], %s476_s0  ;;  %1726 = vmatpush.msra.mxu3 %v898_v62  ;;  %929 = vmatpush.msra.mxu2 %v898_v62 }
  0x48   : > { %833 = vmatpush.msra.mxu0 %v814_v2  ;;  %v478_v9 = vld [vmem:[%s477_s3] sm:$0x1]  ;;  %s519_s29 = scalar_lea.vmem [#allocation13], %s518_s21  ;;  %s770_s30 = sld [smem:[#allocation9 + %s2909_s18]] }
  0x49   : > { %480 = vst.msk [vmem:[#allocation4] sm:$0x1] %vm479_vm1, %v478_v9  ;;  %v520_v10 = vld [vmem:[%s519_s29] sm:$0x1]  ;;  %s561_s23 = scalar_lea.vmem [#allocation13], %s560_s24 }
  0x4a   : > { %834 = vmatpush.msra.mxu0 %v813_v5  ;;  %521 = vst.msk [vmem:[#allocation4 + $0x1] sm:$0x1] %vm479_vm1, %v520_v10  ;;  %v562_v11 = vld [vmem:[%s561_s23] sm:$0x1]  ;;  %s603_s4 = scalar_lea.vmem [#allocation13], %s602_s19  ;;  %s2338_s19 = sshll.u32 %s2233_s2, 5 }
  0x4b   : > { %563 = vst.msk [vmem:[#allocation4 + $0x2] sm:$0x1] %vm479_vm1, %v562_v11  ;;  %v604_v12 = vld [vmem:[%s603_s4] sm:$0x1]  ;;  %s645_s0 = scalar_lea.vmem [#allocation13], %s644_s25  ;;  %s489_s23 = sadd.s32 1, %s2338_s19 }
  0x4c   : > { %835 = vmatpush.msra.mxu0 %v812_v7  ;;  %605 = vst.msk [vmem:[#allocation4 + $0x3] sm:$0x1] %vm479_vm1, %v604_v12  ;;  %v646_v13 = vld [vmem:[%s645_s0] sm:$0x1]  ;;  %s687_s3 = scalar_lea.vmem [#allocation13], %s686_s20  ;;  %s498_s25 = sadd.s32 2, %s2338_s19 }
  0x4d   : > { %647 = vst.msk [vmem:[#allocation4 + $0x4] sm:$0x1] %vm479_vm1, %v646_v13  ;;  %v688_v14 = vld [vmem:[%s687_s3] sm:$0x1]  ;;  %s729_s21 = scalar_lea.vmem [#allocation13], %s728_s28  ;;  %s2343_s4 = sld [smem:[#allocation11 + %s2338_s19]] }
  0x4e   : > { %689 = vst.msk [vmem:[#allocation4 + $0x5] sm:$0x1] %vm479_vm1, %v688_v14  ;;  %v730_v15 = vld [vmem:[%s729_s21] sm:$0x1]  ;;  %s771_s24 = scalar_lea.vmem [#allocation13], %s770_s30  ;;  %s507_s20 = sadd.s32 3, %s2338_s19 }
  0x4f   : > { %731 = vst.msk [vmem:[#allocation4 + $0x6] sm:$0x1] %vm479_vm1, %v730_v15  ;;  %v772_v16 = vld [vmem:[%s771_s24] sm:$0x1]  ;;  %s2347_s28 = sld [smem:[#allocation11 + %s489_s23]]  ;;  %s522_s0 = sadd.s32 4, %s2338_s19 }
  0x50   : > { %773 = vst.msk [vmem:[#allocation4 + $0x7] sm:$0x1] %vm479_vm1, %v772_v16  ;;  %s2349_s29 = sld [smem:[#allocation11 + %s498_s25]]  ;;  %s531_s3 = sadd.s32 5, %s2338_s19 }
  0x51   : > { %s508_s30 = sld [smem:[#allocation11 + %s507_s20]]  ;;  %s540_s21 = sadd.s32 6, %s2338_s19 }
  0x52   : > { %s2354_s24 = sld [smem:[#allocation11 + %s522_s0]]  ;;  %s591_s17 = sadd.s32 11, %s2338_s19 }
  0x53   : > { %s482_s18 = scalar_lea.vmem [#allocation3], %s2343_s4  ;;  %s2357_s26 = sld [smem:[#allocation11 + %s531_s3]] }
  0x54   : > { %v483_v18 = vld [vmem:[%s482_s18] sm:$0x1]  ;;  %s2360_s23 = sld [smem:[#allocation11 + %s540_s21]]  ;;  %s549_s18 = sadd.s32 7, %s2338_s19 }
  0x55   : > { %s491_s27 = scalar_lea.vmem [#allocation3], %s2347_s28  ;;  %486 = vst.msk [vmem:[#allocation6] sm:$0x1] %vm479_vm1, %v483_v18  ;;  %s564_s3 = sadd.s32 8, %s2338_s19 }
  0x56   : > { %v492_v19 = vld [vmem:[%s491_s27] sm:$0x1]  ;;  %s500_s25 = scalar_lea.vmem [#allocation3], %s2349_s29  ;;  %s550_s27 = sld [smem:[#allocation11 + %s549_s18]] }
  0x57   : > { %v811_v17 = vld [vmem:[#allocation4] sm:$0xff]  ;;  %v497_v20 = vadd.f32 %v492_v19, %v483_v18  ;;  %v501_v21 = vld [vmem:[%s500_s25] sm:$0x1]  ;;  %495 = vst.msk [vmem:[#allocation6 + $0x1] sm:$0x1] %vm479_vm1, %v492_v19  ;;  %s509_s20 = scalar_lea.vmem [#allocation3], %s508_s30 }
  0x58   : > { %1698 = vmatmul.msk.f32.vlgmr.msra.gmra.mxu0 %vm816_vm2, %v811_v17  ;;  %v510_v22 = vld [vmem:[%s509_s20] sm:$0x1]  ;;  %s511_s0 = scalar_lea.vmem [#allocation2], %s508_s30  ;;  %s573_s21 = sadd.s32 9, %s2338_s19  ;;  %504 = vst.msk [vmem:[#allocation6 + $0x2] sm:$0x1] %vm479_vm1, %v501_v21 }
  0x59   : > { %2944 = sst [smem:[#allocation31_spill]] %s2357_s26  ;;  %v512_v23 = vld [vmem:[%s511_s0] sm:$0x1]  ;;  %v506_v24 = vadd.f32 %v501_v21, %v497_v20  ;;  %513 = vst.msk [vmem:[#allocation6 + $0x3] sm:$0x1] %vm479_vm1, %v510_v22  ;;  %s524_s25 = scalar_lea.vmem [#allocation3], %s2354_s24 }
  0x5a   : > { %2945 = sst [smem:[#allocation32_spill]] %s2360_s23  ;;  %v525_v26 = vld [vmem:[%s524_s25] sm:$0x1]  ;;  %514 = vst.msk [vmem:[#allocation7 + $0x3] sm:$0x1] %vm479_vm1, %v512_v23  ;;  %s533_s20 = scalar_lea.vmem [#allocation3], %s2357_s26 }
  0x5b   : > { %s2369_s22 = sld [smem:[#allocation11 + %s564_s3]]  ;;  %v515_v25 = vadd.f32 %v510_v22, %v506_v24  ;;  %v534_v27 = vld [vmem:[%s533_s20] sm:$0x1]  ;;  %s582_s0 = sadd.s32 10, %s2338_s19  ;;  %528 = vst.msk [vmem:[#allocation6 + $0x4] sm:$0x1] %vm479_vm1, %v525_v26 }
  0x5c   : > { %s2373_s30 = sld [smem:[#allocation11 + %s573_s21]]  ;;  %v539_v28 = vadd.f32 %v534_v27, %v525_v26  ;;  %s542_s18 = scalar_lea.vmem [#allocation3], %s2360_s23  ;;  %537 = vst.msk [vmem:[#allocation6 + $0x5] sm:$0x1] %vm479_vm1, %v534_v27 }
  0x5d   : > { %516 = vst.msk [vmem:[#allocation5] sm:$0x1] %vm479_vm1, %v515_v25  ;;  %v543_v29 = vld [vmem:[%s542_s18] sm:$0x1]  ;;  %s2381_s3 = sld [smem:[#allocation11 + %s582_s0]]  ;;  %s606_s25 = sadd.s32 12, %s2338_s19 }
  0x5e   : > { %s2384_s21 = sld [smem:[#allocation11 + %s591_s17]]  ;;  %v548_v30 = vadd.f32 %v543_v29, %v539_v28  ;;  %546 = vst.msk [vmem:[#allocation6 + $0x6] sm:$0x1] %vm479_vm1, %v543_v29  ;;  %s551_s20 = scalar_lea.vmem [#allocation3], %s550_s27 }
  0x5f   : > { %v552_v31 = vld [vmem:[%s551_s20] sm:$0x1]  ;;  %s553_s5 = scalar_lea.vmem [#allocation2], %s550_s27  ;;  %s2389_s18 = sld [smem:[#allocation11 + %s606_s25]] }
  0x60   : > { %v554_v32 = vld [vmem:[%s553_s5] sm:$0x1]  ;;  %v557_v33 = vadd.f32 %v552_v31, %v548_v30  ;;  %s615_s17 = sadd.s32 13, %s2338_s19  ;;  %555 = vst.msk [vmem:[#allocation6 + $0x7] sm:$0x1] %vm479_vm1, %v552_v31  ;;  %s624_s20 = sadd.s32 14, %s2338_s19 }
  0x61   : > { %s566_s0 = scalar_lea.vmem [#allocation3], %s2369_s22  ;;  %s2395_s8 = sld [smem:[#allocation11 + %s615_s17]]  ;;  %556 = vst.msk [vmem:[#allocation7 + $0x7] sm:$0x1] %vm479_vm1, %v554_v32 }
  0x62   : > { %v567_v34 = vld [vmem:[%s566_s0] sm:$0x1]  ;;  %s575_s6 = scalar_lea.vmem [#allocation3], %s2373_s30  ;;  %558 = vst.msk [vmem:[#allocation5 + $0x1] sm:$0x1] %vm479_vm1, %v557_v33  ;;  %s2400_s5 = sld [smem:[#allocation11 + %s624_s20]] }
  0x63   : > { %v576_v35 = vld [vmem:[%s575_s6] sm:$0x1]  ;;  %s584_s27 = scalar_lea.vmem [#allocation3], %s2381_s3  ;;  %570 = vst.msk [vmem:[#allocation6 + $0x8] sm:$0x1] %vm479_vm1, %v567_v34  ;;  %s633_s6 = sadd.s32 15, %s2338_s19 }
  0x64   : > { %v581_v36 = vadd.f32 %v576_v35, %v567_v34  ;;  %v585_v37 = vld [vmem:[%s584_s27] sm:$0x1]  ;;  %s593_s25 = scalar_lea.vmem [#allocation3], %s2384_s21  ;;  %s648_s0 = sadd.s32 16, %s2338_s19  ;;  %579 = vst.msk [vmem:[#allocation6 + $0x9] sm:$0x1] %vm479_vm1, %v576_v35 }
  0x65   : > { %v594_v39 = vld [vmem:[%s593_s25] sm:$0x1]  ;;  %s595_s17 = scalar_lea.vmem [#allocation2], %s2384_s21  ;;  %s634_s10 = sld [smem:[#allocation11 + %s633_s6]]  ;;  %588 = vst.msk [vmem:[#allocation6 + $0xa] sm:$0x1] %vm479_vm1, %v585_v37 }
  0x66   : > { %v590_v38 = vadd.f32 %v585_v37, %v581_v36  ;;  %v596_v40 = vld [vmem:[%s595_s17] sm:$0x1]  ;;  %s608_s20 = scalar_lea.vmem [#allocation3], %s2389_s18  ;;  %s2410_s27 = sld [smem:[#allocation11 + %s648_s0]]  ;;  %597 = vst.msk [vmem:[#allocation6 + $0xb] sm:$0x1] %vm479_vm1, %v594_v39 }
  0x67   : > { %v609_v42 = vld [vmem:[%s608_s20] sm:$0x1]  ;;  %s657_s11 = sadd.s32 17, %s2338_s19  ;;  %s617_s21 = scalar_lea.vmem [#allocation3], %s2395_s8  ;;  %598 = vst.msk [vmem:[#allocation7 + $0xb] sm:$0x1] %vm479_vm1, %v596_v40 }
  0x68   : > { %v599_v41 = vadd.f32 %v594_v39, %v590_v38  ;;  %s2414_s25 = sld [smem:[#allocation11 + %s657_s11]]  ;;  %v618_v43 = vld [vmem:[%s617_s21] sm:$0x1]  ;;  %s666_s6 = sadd.s32 18, %s2338_s19  ;;  %612 = vst.msk [vmem:[#allocation6 + $0xc] sm:$0x1] %vm479_vm1, %v609_v42 }
  0x69   : > { %v623_v44 = vadd.f32 %v618_v43, %v609_v42  ;;  %s626_s17 = scalar_lea.vmem [#allocation3], %s2400_s5  ;;  %s2421_s20 = sld [smem:[#allocation11 + %s666_s6]]  ;;  %621 = vst.msk [vmem:[#allocation6 + $0xd] sm:$0x1] %vm479_vm1, %v618_v43  ;;  %v894_v2 = vld [vmem:[#allocation6] sm:$0xff] }
  0x6a   : > { %600 = vst.msk [vmem:[#allocation5 + $0x2] sm:$0x1] %vm479_vm1, %v599_v41  ;;  %v627_v45 = vld [vmem:[%s626_s17] sm:$0x1]  ;;  %s675_s0 = sadd.s32 19, %s2338_s19  ;;  %s690_s1 = sadd.s32 20, %s2338_s19  ;;  %1701 = vmatmul.msk.f32.vlgmr.msra.gmra.mxu2 %vm816_vm2, %v894_v2 }
  0x6b   : > { %s2425_s11 = sld [smem:[#allocation11 + %s675_s0]]  ;;  %v632_v46 = vadd.f32 %v627_v45, %v623_v44  ;;  %s635_s21 = scalar_lea.vmem [#allocation3], %s634_s10  ;;  %630 = vst.msk [vmem:[#allocation6 + $0xe] sm:$0x1] %vm479_vm1, %v627_v45  ;;  %v1803_v36 = vld [vmem:[%s2895_s7] ss:$0 sm:$0xff] }
  0x6c   : > { %v636_v47 = vld [vmem:[%s635_s21] sm:$0x1]  ;;  %s637_s15 = scalar_lea.vmem [#allocation2], %s634_s10  ;;  %s2430_s6 = sld [smem:[#allocation11 + %s690_s1]] }
  0x6d   : > { %v638_v48 = vld [vmem:[%s637_s15] sm:$0x1]  ;;  %v641_v49 = vadd.f32 %v636_v47, %v632_v46  ;;  %s650_s17 = scalar_lea.vmem [#allocation3], %s2410_s27  ;;  %s699_s0 = sadd.s32 21, %s2338_s19  ;;  %639 = vst.msk [vmem:[#allocation6 + $0xf] sm:$0x1] %vm479_vm1, %v636_v47 }
  0x6e   : > { %v651_v50 = vld [vmem:[%s650_s17] sm:$0x1]  ;;  %s659_s14 = scalar_lea.vmem [#allocation3], %s2414_s25  ;;  %s2436_s12 = sld [smem:[#allocation11 + %s699_s0]]  ;;  %640 = vst.msk [vmem:[#allocation7 + $0xf] sm:$0x1] %vm479_vm1, %v638_v48 }
  0x6f   : > { %v660_v51 = vld [vmem:[%s659_s14] sm:$0x1]  ;;  %s708_s21 = sadd.s32 22, %s2338_s19  ;;  %642 = vst.msk [vmem:[#allocation5 + $0x3] sm:$0x1] %vm479_vm1, %v641_v49  ;;  %s668_s15 = scalar_lea.vmem [#allocation3], %s2421_s20 }
  0x70   : > { %v665_v52 = vadd.f32 %v660_v51, %v651_v50  ;;  %s2441_s10 = sld [smem:[#allocation11 + %s708_s21]]  ;;  %v669_v53 = vld [vmem:[%s668_s15] sm:$0x1]  ;;  %s717_s14 = sadd.s32 23, %s2338_s19  ;;  %654 = vst.msk [vmem:[#allocation6 + $0x10] sm:$0x1] %vm479_vm1, %v651_v50 }
  0x71   : > { %s677_s1 = scalar_lea.vmem [#allocation3], %s2425_s11  ;;  %s732_s17 = sadd.s32 24, %s2338_s19  ;;  %663 = vst.msk [vmem:[#allocation6 + $0x11] sm:$0x1] %vm479_vm1, %v660_v51  ;;  %v2544_v49 = vld [vmem:[%s2897_s9] ss:$0 sm:$0xff] }
  0x72   : > { %v674_v54 = vadd.f32 %v669_v53, %v665_v52  ;;  %v678_v55 = vld [vmem:[%s677_s1] sm:$0x1]  ;;  %s679_s0 = scalar_lea.vmem [#allocation2], %s2425_s11  ;;  %s2449_s13 = sld [smem:[#allocation11 + %s717_s14]]  ;;  %672 = vst.msk [vmem:[#allocation6 + $0x12] sm:$0x1] %vm479_vm1, %v669_v53 }
  0x73   : > { %v680_v56 = vld [vmem:[%s679_s0] sm:$0x1]  ;;  %s692_s21 = scalar_lea.vmem [#allocation3], %s2430_s6  ;;  %s2453_s15 = sld [smem:[#allocation11 + %s732_s17]]  ;;  %681 = vst.msk [vmem:[#allocation6 + $0x13] sm:$0x1] %vm479_vm1, %v678_v55 }
  0x74   : > { %v683_v59 = vadd.f32 %v678_v55, %v674_v54  ;;  %v693_v60 = vld [vmem:[%s692_s21] sm:$0x1]  ;;  %s741_s2 = sadd.s32 25, %s2338_s19  ;;  %s701_s1 = scalar_lea.vmem [#allocation3], %s2436_s12  ;;  %682 = vst.msk [vmem:[#allocation7 + $0x13] sm:$0x1] %vm479_vm1, %v680_v56 }
  0x75   : > { %s2457_s11 = sld [smem:[#allocation11 + %s741_s2]]  ;;  %v702_v63 = vld [vmem:[%s701_s1] sm:$0x1]  ;;  %s750_s14 = sadd.s32 26, %s2338_s19  ;;  %696 = vst.msk [vmem:[#allocation6 + $0x14] sm:$0x1] %vm479_vm1, %v693_v60 }
  0x76   : > { %684 = vst.msk [vmem:[#allocation5 + $0x4] sm:$0x1] %vm479_vm1, %v683_v59  ;;  %v707_v0 = vadd.f32 %v702_v63, %v693_v60  ;;  %s710_s17 = scalar_lea.vmem [#allocation3], %s2441_s10  ;;  %s2464_s0 = sld [smem:[#allocation11 + %s750_s14]]  ;;  %v895_v13 = vld [vmem:[#allocation6 + $0x8] sm:$0xff] }
  0x77   : > { %v711_v1 = vld [vmem:[%s710_s17] sm:$0x1]  ;;  %s759_s2 = sadd.s32 27, %s2338_s19  ;;  %s774_s16 = sadd.s32 28, %s2338_s19  ;;  %705 = vst.msk [vmem:[#allocation6 + $0x15] sm:$0x1] %vm479_vm1, %v702_v63  ;;  %1702 = vmatmul.msk.f32.gmra.mxu2 %vm816_vm2, %v895_v13 }
  0x78   : > { %s2468_s21 = sld [smem:[#allocation11 + %s759_s2]]  ;;  %v716_v3 = vadd.f32 %v711_v1, %v707_v0  ;;  %s719_s1 = scalar_lea.vmem [#allocation3], %s2449_s13  ;;  %714 = vst.msk [vmem:[#allocation6 + $0x16] sm:$0x1] %vm479_vm1, %v711_v1 }
  0x79   : > { %2946 = sst [smem:[#allocation33_spill]] %s2453_s15  ;;  %v720_v4 = vld [vmem:[%s719_s1] sm:$0x1]  ;;  %s734_s17 = scalar_lea.vmem [#allocation3], %s2453_s15 }
  0x7a   : > { %s2474_s14 = sld [smem:[#allocation11 + %s774_s16]]  ;;  %v725_v5 = vadd.f32 %v720_v4, %v716_v3  ;;  %v735_v6 = vld [vmem:[%s734_s17] sm:$0x1]  ;;  %s783_s2 = sadd.s32 29, %s2338_s19  ;;  %723 = vst.msk [vmem:[#allocation6 + $0x17] sm:$0x1] %vm479_vm1, %v720_v4 }
  0x7b   : > { %2947 = sst [smem:[#allocation34_spill]] %s2457_s11  ;;  %s743_s23 = scalar_lea.vmem [#allocation3], %s2457_s11  ;;  %738 = vst.msk [vmem:[#allocation6 + $0x18] sm:$0x1] %vm479_vm1, %v735_v6 }
  0x7c   : > { %v744_v7 = vld [vmem:[%s743_s23] sm:$0x1]  ;;  %s2481_s26 = sld [smem:[#allocation11 + %s783_s2]]  ;;  %s792_s1 = sadd.s32 30, %s2338_s19  ;;  %726 = vst.msk [vmem:[#allocation5 + $0x5] sm:$0x1] %vm479_vm1, %v725_v5 }
  0x7d   : > { %s721_s16 = scalar_lea.vmem [#allocation2], %s2449_s13  ;;  %v749_v9 = vadd.f32 %v744_v7, %v735_v6  ;;  %s2487_s17 = sld [smem:[#allocation11 + %s792_s1]]  ;;  %747 = vst.msk [vmem:[#allocation6 + $0x19] sm:$0x1] %vm479_vm1, %v744_v7 }
  0x7e   : > { %v722_v8 = vld [vmem:[%s721_s16] sm:$0x1]  ;;  %s752_s15 = scalar_lea.vmem [#allocation3], %s2464_s0  ;;  %s761_s23 = scalar_lea.vmem [#allocation3], %s2468_s21 }
  0x7f   : > { %v753_v10 = vld [vmem:[%s752_s15] sm:$0x1]  ;;  %s801_s2 = sadd.s32 31, %s2338_s19  ;;  %724 = vst.msk [vmem:[#allocation7 + $0x17] sm:$0x1] %vm479_vm1, %v722_v8  ;;  %s763_s1 = scalar_lea.vmem [#allocation2], %s2468_s21 }
  0x80   : > { %v758_v11 = vadd.f32 %v753_v10, %v749_v9  ;;  %v762_v12 = vld [vmem:[%s761_s23] sm:$0x1]  ;;  %s2493_s11 = sld [smem:[#allocation11 + %s801_s2]]  ;;  %s776_s13 = scalar_lea.vmem [#allocation3], %s2474_s14  ;;  %756 = vst.msk [vmem:[#allocation6 + $0x1a] sm:$0x1] %vm479_vm1, %v753_v10 }
  0x81   : > { %v777_v15 = vld [vmem:[%s776_s13] sm:$0x1]  ;;  %765 = vst.msk [vmem:[#allocation6 + $0x1b] sm:$0x1] %vm479_vm1, %v762_v12  ;;  %v896_v20 = vld [vmem:[#allocation6 + $0x10] sm:$0xff]  ;;  %s652_s13 = scalar_lea.vmem [#allocation2], %s2410_s27 }
  0x82   : > { %v767_v14 = vadd.f32 %v762_v12, %v758_v11  ;;  %v764_v16 = vld [vmem:[%s763_s1] sm:$0x1]  ;;  %s785_s15 = scalar_lea.vmem [#allocation3], %s2481_s26  ;;  %1703 = vmatmul.msk.f32.vlgmr.msra.gmra.mxu3 %vm816_vm2, %v896_v20  ;;  %780 = vst.msk [vmem:[#allocation6 + $0x1c] sm:$0x1] %vm479_vm1, %v777_v15  ;;  %s661_s1 = scalar_lea.vmem [#allocation2], %s2414_s25 }
  0x83   : > { %v786_v17 = vld [vmem:[%s785_s15] sm:$0x1]  ;;  %s794_s19 = scalar_lea.vmem [#allocation3], %s2487_s17  ;;  %766 = vst.msk [vmem:[#allocation7 + $0x1b] sm:$0x1] %vm479_vm1, %v764_v16  ;;  %s670_s15 = scalar_lea.vmem [#allocation2], %s2421_s20 }
  0x84   : > { %768 = vst.msk [vmem:[#allocation5 + $0x6] sm:$0x1] %vm479_vm1, %v767_v14  ;;  %v791_v18 = vadd.f32 %v786_v17, %v777_v15  ;;  %v795_v19 = vld [vmem:[%s794_s19] sm:$0x1]  ;;  %s694_s19 = scalar_lea.vmem [#allocation2], %s2430_s6  ;;  %s2132_s27 = smov 64  }
  0x85   : > { %789 = vst.msk [vmem:[#allocation6 + $0x1d] sm:$0x1] %vm479_vm1, %v786_v17  ;;  %v653_v37 = vld [vmem:[%s652_s13] sm:$0x1]  ;;  %s568_s20 = scalar_lea.vmem [#allocation2], %s2369_s22  ;;  %s577_s6 = scalar_lea.vmem [#allocation2], %s2373_s30 }
  0x86   : > { %v800_v21 = vadd.f32 %v795_v19, %v791_v18  ;;  %s803_s21 = scalar_lea.vmem [#allocation3], %s2493_s11  ;;  %s805_s16 = scalar_lea.vmem [#allocation2], %s2493_s11  ;;  %798 = vst.msk [vmem:[#allocation6 + $0x1e] sm:$0x1] %vm479_vm1, %v795_v19  ;;  %v662_v38 = vld [vmem:[%s661_s1] sm:$0x1] }
  0x87   : > { %v804_v22 = vld [vmem:[%s803_s21] sm:$0x1]  ;;  %s2131_s11 = smov 32   ;;  %655 = vst.msk [vmem:[#allocation7 + $0x10] sm:$0x1] %vm479_vm1, %v653_v37  ;;  %s703_s21 = scalar_lea.vmem [#allocation2], %s2436_s12 }
  0x88   : > { %v809_v23 = vadd.f32 %v804_v22, %v800_v21  ;;  %v806_v24 = vld [vmem:[%s805_s16] sm:$0x1]  ;;  %807 = vst.msk [vmem:[#allocation6 + $0x1f] sm:$0x1] %vm479_vm1, %v804_v22  ;;  %s712_s16 = scalar_lea.vmem [#allocation2], %s2441_s10  ;;  %s586_s10 = scalar_lea.vmem [#allocation2], %s2381_s3 }
  0x89   : > { %808 = vst.msk [vmem:[#allocation7 + $0x1f] sm:$0x1] %vm479_vm1, %v806_v24  ;;  %v671_v39 = vld [vmem:[%s670_s15] sm:$0x1]  ;;  %s610_s23 = scalar_lea.vmem [#allocation2], %s2389_s18  ;;  %s619_s22 = scalar_lea.vmem [#allocation2], %s2395_s8 }
  0x8a   : > { %810 = vst.msk [vmem:[#allocation5 + $0x7] sm:$0x1] %vm479_vm1, %v809_v23  ;;  %v695_v41 = vld [vmem:[%s694_s19] sm:$0x1]  ;;  %s628_s2 = scalar_lea.vmem [#allocation2], %s2400_s5  ;;  %s484_s8 = scalar_lea.vmem [#allocation2], %s2343_s4 }
  0x8b   : > { %664 = vst.msk [vmem:[#allocation7 + $0x11] sm:$0x1] %vm479_vm1, %v662_v38  ;;  %v704_v43 = vld [vmem:[%s703_s21] sm:$0x1]  ;;  %s2950_s30 = sld [smem:[#allocation31_spill]]  ;;  %s493_s3 = scalar_lea.vmem [#allocation2], %s2347_s28 }
  0x8c   : > { %673 = vst.msk [vmem:[#allocation7 + $0x12] sm:$0x1] %vm479_vm1, %v671_v39  ;;  %v713_v44 = vld [vmem:[%s712_s16] sm:$0x1]  ;;  %s2951_s18 = sld [smem:[#allocation32_spill]]  ;;  %s502_s5 = scalar_lea.vmem [#allocation2], %s2349_s29 }
  0x8d   : > { %697 = vst.msk [vmem:[#allocation7 + $0x14] sm:$0x1] %vm479_vm1, %v695_v41  ;;  %v569_v7 = vld [vmem:[%s568_s20] sm:$0x1]  ;;  %s526_s13 = scalar_lea.vmem [#allocation2], %s2354_s24  ;;  %s2954_s29 = sld [smem:[#allocation33_spill]] }
  0x8e   : > { %706 = vst.msk [vmem:[#allocation7 + $0x15] sm:$0x1] %vm479_vm1, %v704_v43  ;;  %v578_v9 = vld [vmem:[%s577_s6] sm:$0x1]  ;;  %s2955_s24 = sld [smem:[#allocation34_spill]]  ;;  %s754_s19 = scalar_lea.vmem [#allocation2], %s2464_s0 }
  0x8f   : > { %v897_v26 = vld [vmem:[#allocation6 + $0x18] sm:$0xff]  ;;  %715 = vst.msk [vmem:[#allocation7 + $0x16] sm:$0x1] %vm479_vm1, %v713_v44  ;;  %v587_v10 = vld [vmem:[%s586_s10] sm:$0x1]  ;;  %s778_s0 = scalar_lea.vmem [#allocation2], %s2474_s14 }
  0x90   : > { %1704 = vmatmul.msk.f32.gmra.mxu3 %vm816_vm2, %v897_v26  ;;  %571 = vst.msk [vmem:[#allocation7 + $0x8] sm:$0x1] %vm479_vm1, %v569_v7  ;;  %v611_v13 = vld [vmem:[%s610_s23] sm:$0x1]  ;;  %s787_s21 = scalar_lea.vmem [#allocation2], %s2481_s26  ;;  %s796_s16 = scalar_lea.vmem [#allocation2], %s2487_s17 }
  0x91   : > { %v840_v25 = vld [vmem:[#allocation5] sm:$0xff]  ;;  %580 = vst.msk [vmem:[#allocation7 + $0x9] sm:$0x1] %vm479_vm1, %v578_v9  ;;  %v620_v14 = vld [vmem:[%s619_s22] sm:$0x1]  ;;  %s535_s4 = scalar_lea.vmem [#allocation2], %s2950_s30 }
  0x92   : > { %1699 = vmatmul.msk.f32.vlgmr.msra.gmra.mxu1 %vm816_vm2, %v840_v25  ;;  %589 = vst.msk [vmem:[#allocation7 + $0xa] sm:$0x1] %vm479_vm1, %v587_v10  ;;  %v629_v15 = vld [vmem:[%s628_s2] sm:$0x1]  ;;  %s544_s28 = scalar_lea.vmem [#allocation2], %s2951_s18  ;;  %s2968_s26 = sld [smem:[#allocation30_spill]] }
  0x93   : > { %613 = vst.msk [vmem:[#allocation7 + $0xc] sm:$0x1] %vm479_vm1, %v611_v13  ;;  %v485_v24 = vld [vmem:[%s484_s8] sm:$0x1]  ;;  %s736_s1 = scalar_lea.vmem [#allocation2], %s2954_s29 }
  0x94   : > { %622 = vst.msk [vmem:[#allocation7 + $0xd] sm:$0x1] %vm479_vm1, %v620_v14  ;;  %v494_v25 = vld [vmem:[%s493_s3] sm:$0x1]  ;;  %s745_s15 = scalar_lea.vmem [#allocation2], %s2955_s24 }
  0x95   : > { %631 = vst.msk [vmem:[#allocation7 + $0xe] sm:$0x1] %vm479_vm1, %v629_v15  ;;  %v755_v9 = vld [vmem:[%s754_s19] sm:$0x1]  ;;  %s2133_s19 = smov 96  }
  0x96   : > { %487 = vst.msk [vmem:[#allocation7] sm:$0x1] %vm479_vm1, %v485_v24  ;;  %v788_v19 = vld [vmem:[%s787_s21] sm:$0x1] }
  0x97   : > { %496 = vst.msk [vmem:[#allocation7 + $0x1] sm:$0x1] %vm479_vm1, %v494_v25 }
  0x98   : > { %757 = vst.msk [vmem:[#allocation7 + $0x1a] sm:$0x1] %vm479_vm1, %v755_v9  ;;  %s2769_s14 = sld [smem:[#allocation10 + %s2968_s26]]  ;;  %s2969_s17 = sadd.s32 1, %s2968_s26 }
  0x99   : > { %790 = vst.msk [vmem:[#allocation7 + $0x1d] sm:$0x1] %vm479_vm1, %v788_v19  ;;  %s2970_s25 = sadd.s32 2, %s2968_s26  ;;  %s2971_s20 = sadd.s32 3, %s2968_s26 }
  0x9a   : > { %s2778_s12 = sld [smem:[#allocation10 + %s2970_s25]]  ;;  %s2972_s10 = sadd.s32 4, %s2968_s26 }
  0x9b   : > { %s2784_s6 = sld [smem:[#allocation10 + %s2971_s20]]  ;;  %s2973_s22 = sadd.s32 5, %s2968_s26 }
  0x9c   : > { %s2788_s23 = sld [smem:[#allocation10 + %s2972_s10]]  ;;  %s2974_s8 = sadd.s32 6, %s2968_s26 }
  0x9d   : > { %s2793_s2 = sld [smem:[#allocation10 + %s2973_s22]]  ;;  %s2975_s3 = sadd.s32 7, %s2968_s26 }
  0x9e   : > { %s2798_s30 = sld [smem:[#allocation10 + %s2974_s8]] }
  0x9f   : > { %s2805_s18 = sld [smem:[#allocation10 + %s2975_s3]] }
  0xa0   : > { %s1110_s21 = scalar_lea.vmem [#allocation3], %s2778_s12  ;;  %s2976_s25 = sld [smem:[#allocation29_spill]] }
  0xa2   : > { %s1208_s29 = scalar_lea.vmem [#allocation2], %s2788_s23  ;;  %s1215_s26 = scalar_lea.vmem [#allocation3], %s2788_s23 }
  0xa3   : > { %s1262_s24 = scalar_lea.vmem [#allocation2], %s2793_s2 }
  0xa6   : > { %p1713_p7 = scmp.ne.s32.totalorder %s2976_s25, 2 }
  0xa7   : > { %s1714_s20 = sld [smem:[#allocation12 + $0x1]] (!%p1713_p7) }
  0xad   : > { %s1384_s10 = scalar_lea.vmem (!%p1713_p7), [#allocation3], %s1714_s20 }
  0xd5   : > { %v837_v27 = vpop.f32.mrf.mxu0 }
  0xd6   : > { %v1217_v28 = vperm.slane %v837_v27, 5  ;;  %v1112_v29 = vperm.slane %v837_v27, 3  ;;  %v1007_v30 = vperm.slane %v837_v27, 1  ;;  %v1166_v31 = vperm.slane %v837_v27, 4 }
  0xd7   : > { %v1061_v32 = vperm.slane %v837_v27, 2  ;;  %v948_v33 = vperm.slane %v837_v27, 0  ;;  %v1271_v34 = vperm.slane %v837_v27, 6  ;;  %v1322_v35 = vperm.slane %v837_v27, 7 }
  0xd8   : > { %1219 = vrot.lane.b32.xlu2 %v1217_v28, %s2131_s11  ;;  %1114 = vrot.lane.b32.xlu1 %v1112_v29, %s2131_s11  ;;  %v503_v29 = vld [vmem:[%s502_s5] sm:$0x1]  ;;  %s999_s5 = scalar_lea.vmem [#allocation2], %s2769_s14 }
  0xd9   : > { %1009 = vrot.lane.b32.xlu0 %v1007_v30, %s2131_s11  ;;  %v527_v30 = vld [vmem:[%s526_s13] sm:$0x1]  ;;  %505 = vst.msk [vmem:[#allocation7 + $0x2] sm:$0x1] %vm479_vm1, %v503_v29 }
  0xda   : > { %529 = vst.msk [vmem:[#allocation7 + $0x4] sm:$0x1] %vm479_vm1, %v527_v30 }
  0xe0   : > { %1168 = vrot.lane.b32.xlu2 %v1166_v31, %s2131_s11  ;;  %1063 = vrot.lane.b32.xlu1 %v1061_v32, %s2131_s11  ;;  %v536_v32 = vld [vmem:[%s535_s4] sm:$0x1]  ;;  %s1103_s4 = scalar_lea.vmem [#allocation2], %s2778_s12  ;;  %s1380_s12 = sld [smem:[#allocation12]] (!%p1713_p7) }
  0xe1   : > { %950 = vrot.lane.b32.xlu0 %v948_v33, %s2131_s11  ;;  %v945_v33 = vld [vmem:[#allocation7 + $0x10] sm:$0xff]  ;;  %538 = vst.msk [vmem:[#allocation7 + $0x5] sm:$0x1] %vm479_vm1, %v536_v32 }
  0xe8   : > { %1273 = vrot.lane.b32.xlu1 %v1271_v34, %s2131_s11 }
  0xe9   : > { %1324 = vrot.lane.b32.xlu0 %v1322_v35, %s2131_s11 }
  0xed   : > { %v2555_v62 = vpop.f32.mrf.mxu2 }
  0xfa   : > { %v2565_v6 = vpop.f32.mrf.mxu2 }
 0x105   : > { %v937_v47 = vpop.f32.mrf.mxu3 }
 0x10f   : > { %v865_v40 = vpop.f32.mrf.mxu1 }
 0x110   : > { %v868_v42 = vadd.f32 %v865_v40, %v837_v27 }
 0x112   : > { %v873_v45 = vadd.f32 %v1803_v36, %v868_v42  ;;  %v545_v36 = vld [vmem:[%s544_s28] sm:$0x1]  ;;  %s1157_s28 = scalar_lea.vmem [#allocation2], %s2784_s6 }
 0x113   : > { %547 = vst.msk [vmem:[#allocation7 + $0x6] sm:$0x1] %vm479_vm1, %v545_v36 }
 0x114   : > { %1805 = vtanh.f32 %v873_v45  ;;  %v1700_v55 = vmul.f32 -1.442695, %v873_v45 }
 0x11a   : > { %v1806_v46 = vpop.eup %1805 }
 0x11b   : > { %987 = vrot.lane.b32.xlu2 %v1806_v46, %s2132_s27  ;;  %s2774_s27 = sld [smem:[#allocation10 + %s2969_s17]]  ;;  %s1320_s17 = scalar_lea.vmem [#allocation3], %s2798_s30 }
 0x121   : > { %s1052_s13 = scalar_lea.vmem [#allocation2], %s2774_s27 }
 0x132   : > { %v1220_v48 = vpop.permute.xlu2 %1219 }
 0x133   : > { %v1222_v50 = vadd.f32 %v1220_v48, %v937_v47 }
 0x135   : > { %v1223_v51 = vadd.f32 %v2544_v49, %v1222_v50 }
 0x137   : > { %v1710_v52 = vmul.f32 -1.442695, %v1223_v51 }
 0x139   : > { %1807 = vpow2.f32 %v1710_v52 }
 0x13a   : > { %v1169_v56 = vpop.permute.xlu2 %1168 }
 0x13b   : > { %v1171_v57 = vadd.f32 %v1169_v56, %v937_v47 }
 0x13d   : > { %v1172_v59 = vadd.f32 %v2544_v49, %v1171_v57 }
 0x13f   : > { %v1808_v53 = vpop.eup %1807  ;;  %v1709_v60 = vmul.f32 -1.442695, %v1172_v59 }
 0x140   : > { %v2547_v54 = vadd.f32 1.0, %v1808_v53 }
 0x142   : > { %1809 = vrcp.f32 %v2547_v54  ;;  %v1239_v5 = vand.u32 2147483648, %v2547_v54  ;;  %vm1233_vm4 = vweird.f32 %v2547_v54  ;;  %v1237_v18 = vand.u32 2147483647, %v2547_v54 }
 0x143   : > { %1811 = vpow2.f32 %v1700_v55 }
 0x144   : > { %1813 = vpow2.f32 %v1709_v60  ;;  %v1240_v20 = vor.u32 1.1754944e-38, %v1239_v5  ;;  %vm1238_vm6 = vcmp.eq.f32.partialorder %v1237_v18, 8.507059e+37  ;;  %v737_v5 = vld [vmem:[%s736_s1] sm:$0x1]  ;;  %s1313_s1 = scalar_lea.vmem [#allocation2], %s2798_s30 }
 0x145   : > { %739 = vst.msk [vmem:[#allocation7 + $0x18] sm:$0x1] %vm479_vm1, %v737_v5  ;;  %v779_v18 = vld [vmem:[%s778_s0] sm:$0x1]  ;;  %s1059_s0 = scalar_lea.vmem [#allocation3], %s2774_s27  ;;  %s1374_s27 = scalar_lea.vmem [#allocation3], %s2805_s18 }
 0x146   : > { %781 = vst.msk [vmem:[#allocation7 + $0x1c] sm:$0x1] %vm479_vm1, %v779_v18  ;;  %v943_v5 = vld [vmem:[#allocation7] sm:$0xff] }
 0x148   : > { %v2550_v58 = vpop.eup %1809 }
 0x149   : > { %v1229_v61 = vmul.f32 %v2550_v58, %v2547_v54  ;;  %v1812_v63 = vpop.eup %1811  ;;  %vm1234_vm3 = vweird.f32 %v2550_v58 }
 0x14a   : > { %v2557_v0 = vadd.f32 1.0, %v1812_v63  ;;  %v1814_v2 = vpop.eup %1813  ;;  %v1115_v8 = vpop.permute.xlu1 %1114  ;;  %vm2585_vm5 = vmor %vm1233_vm4, %vm1234_vm3 }
 0x14b   : > { %v1230_v1 = vsub.f32 1.0, %v1229_v61  ;;  %v2561_v4 = vadd.f32 1.0, %v1814_v2  ;;  %v1117_v11 = vadd.f32 %v1115_v8, %v2565_v6  ;;  %v1010_v26 = vpop.permute.xlu0 %1009 }
 0x14c   : > { %1815 = vrcp.f32 %v2557_v0  ;;  %v1012_v31 = vadd.f32 %v1010_v26, %v2555_v62  ;;  %v887_v59 = vand.u32 2147483647, %v2557_v0  ;;  %v889_v60 = vand.u32 2147483648, %v2557_v0 }
 0x14d   : > { %v1231_v3 = vmul.f32 %v2550_v58, %v1230_v1  ;;  %1817 = vrcp.f32 %v2561_v4  ;;  %v1118_v16 = vadd.f32 %v2544_v49, %v1117_v11  ;;  %v1188_v45 = vand.u32 2147483648, %v2561_v4 }
 0x14e   : > { %v1013_v37 = vadd.f32 %v2544_v49, %v1012_v31  ;;  %vm1182_vm8 = vweird.f32 %v2561_v4  ;;  %v1186_v47 = vand.u32 2147483647, %v2561_v4  ;;  %vm883_vm13 = vweird.f32 %v2557_v0 }
 0x14f   : > { %v1232_v12 = vadd.f32 %v2550_v58, %v1231_v3  ;;  %v1708_v21 = vmul.f32 -1.442695, %v1118_v16  ;;  %v1189_v56 = vor.u32 1.1754944e-38, %v1188_v45  ;;  %v890_v13 = vor.u32 1.1754944e-38, %v889_v60 }
 0x150   : > { %v1706_v40 = vmul.f32 -1.442695, %v1013_v37  ;;  %vm1187_vm12 = vcmp.eq.f32.partialorder %v1186_v47, 8.507059e+37  ;;  %vm888_vm15 = vcmp.eq.f32.partialorder %v887_v59, 8.507059e+37 }
 0x151   : > { %v1236_v23 = vsel %vm2585_vm5, %v2550_v58, %v1232_v12  ;;  %1819 = vpow2.f32 %v1708_v21 }
 0x152   : > { %v2580_v17 = vpop.eup %1815  ;;  %v1241_v34 = vsel %vm1238_vm6, %v1240_v20, %v1236_v23  ;;  %v1064_v42 = vpop.permute.xlu1 %1063  ;;  %1821 = vpow2.f32 %v1706_v40  ;;  %v797_v23 = vld [vmem:[%s796_s16] sm:$0x1]  ;;  %s1164_s16 = scalar_lea.vmem [#allocation3], %s2784_s6  ;;  %s1381_s6 = scalar_lea.vmem (!%p1713_p7), [#allocation3], %s1380_s12 }
 0x153   : > { %v2590_v22 = vpop.eup %1817  ;;  %v879_v27 = vmul.f32 %v2580_v17, %v2557_v0  ;;  %v1243_v41 = vmul.f32 %v1241_v34, %v945_v33  ;;  %v1066_v46 = vadd.f32 %v1064_v42, %v2565_v6  ;;  %v951_v55 = vpop.permute.xlu0 %950  ;;  %vm884_vm11 = vweird.f32 %v2580_v17  ;;  %v746_v6 = vld [vmem:[%s745_s15] sm:$0x1]  ;;  %799 = vst.msk [vmem:[#allocation7 + $0x1e] sm:$0x1] %vm479_vm1, %v797_v23  ;;  %s1367_s15 = scalar_lea.vmem [#allocation2], %s2805_s18 }
 0x154   : > { %v1178_v28 = vmul.f32 %v2590_v22, %v2561_v4  ;;  %vm1183_vm7 = vweird.f32 %v2590_v22  ;;  %v953_v58 = vadd.f32 %v951_v55, %v2555_v62  ;;  %v940_v62 = vpop.f32.mrf.mxu3  ;;  %vm2649_vm14 = vmor %vm883_vm13, %vm884_vm11  ;;  %748 = vst.msk [vmem:[#allocation7 + $0x19] sm:$0x1] %vm479_vm1, %v746_v6 }
 0x155   : > { %v880_v38 = vsub.f32 1.0, %v879_v27  ;;  %vm2624_vm9 = vmor %vm1182_vm8, %vm1183_vm7  ;;  %v1067_v52 = vadd.f32 %v2544_v49, %v1066_v46  ;;  %v1245_v53 = vrot.slane %v1243_v41, 4 }
 0x156   : > { %v1179_v35 = vsub.f32 1.0, %v1178_v28  ;;  %v957_v2 = vadd.f32 %v2544_v49, %v953_v58 }
 0x157   : > { %v1820_v43 = vpop.eup %1819  ;;  %v881_v50 = vmul.f32 %v2580_v17, %v880_v38  ;;  %v1707_v57 = vmul.f32 -1.442695, %v1067_v52  ;;  %v1247_v3 = vsel %vm978_vm10, %v1245_v53, 0.0 }
 0x158   : > { %v1180_v39 = vmul.f32 %v2590_v22, %v1179_v35  ;;  %v2621_v48 = vadd.f32 1.0, %v1820_v43  ;;  %v1822_v61 = vpop.eup %1821  ;;  %v1705_v8 = vmul.f32 -1.442695, %v957_v2  ;;  %v1248_v21 = vrot.slane %v1247_v3, 4  ;;  %v2683_v43 = vld [vmem:[#allocation7 + $0x8] sm:$0xff] }
 0x159   : > { %v882_v63 = vadd.f32 %v2580_v17, %v881_v50  ;;  %v2640_v4 = vadd.f32 1.0, %v1822_v61 }
 0x15a   : > { %v1181_v44 = vadd.f32 %v2590_v22, %v1180_v39  ;;  %1823 = vrcp.f32 %v2621_v48  ;;  %v1274_v7 = vpop.permute.xlu1 %1273  ;;  %v1132_v0 = vand.u32 2147483647, %v2621_v48  ;;  %vm1128_vm0 = vweird.f32 %v2621_v48 }
 0x15b   : > { %1825 = vpow2.f32 %v1707_v57  ;;  %v1276_v10 = vadd.f32 %v1274_v7, %v940_v62  ;;  %v886_v15 = vsel %vm2649_vm14, %v2580_v17, %v882_v63  ;;  %v1325_v24 = vpop.permute.xlu0 %1324  ;;  %v1249_v36 = vadd.f32 %v1248_v21, %v1247_v3 }
 0x15c   : > { %v1185_v54 = vsel %vm2624_vm9, %v2590_v22, %v1181_v44  ;;  %1827 = vrcp.f32 %v2640_v4  ;;  %v1134_v22 = vand.u32 2147483648, %v2621_v48  ;;  %v1327_v27 = vadd.f32 %v1325_v24, %v940_v62 }
 0x15d   : > { %v1190_v1 = vsel %vm1187_vm12, %v1189_v56, %v1185_v54  ;;  %1829 = vpow2.f32 %v1705_v8  ;;  %v1277_v20 = vadd.f32 %v2544_v49, %v1276_v10  ;;  %v2669_v29 = vsel %vm888_vm15, %v890_v13, %v886_v15 }
 0x15e   : > { %v1192_v14 = vmul.f32 %v1190_v1, %v945_v33  ;;  %v1328_v32 = vadd.f32 %v2544_v49, %v1327_v27  ;;  %vm2676_vm4 = vcmp.eq.f32.partialorder %v1132_v0, 8.507059e+37  ;;  %v1135_v35 = vor.u32 1.1754944e-38, %v1134_v22 }
 0x15f   : > { %v1711_v26 = vmul.f32 -1.442695, %v1277_v20  ;;  %v1027_v40 = vand.u32 2147483647, %v2640_v4  ;;  %v1029_v49 = vand.u32 2147483648, %v2640_v4  ;;  %vm1023_vm6 = vweird.f32 %v2640_v4 }
 0x160   : > { %v1824_v11 = vpop.eup %1823  ;;  %v1193_v28 = vsel %vm978_vm10, %v1192_v14, 0.0  ;;  %v1712_v41 = vmul.f32 -1.442695, %v1328_v32 }
 0x161   : > { %v1124_v16 = vmul.f32 %v1824_v11, %v2621_v48  ;;  %v1826_v17 = vpop.eup %1825  ;;  %vm1129_vm3 = vweird.f32 %v1824_v11  ;;  %1831 = vpow2.f32 %v1711_v26  ;;  %v1194_v42 = vrot.slane %v1193_v28, 4 }
 0x162   : > { %v2672_v30 = vadd.f32 1.0, %v1826_v17  ;;  %v1828_v33 = vpop.eup %1827  ;;  %vm1130_vm5 = vmor %vm1128_vm0, %vm1129_vm3  ;;  %v1250_v48 = vrot.slane %v1249_v36, 2  ;;  %vm2698_vm8 = vcmp.eq.f32.partialorder %v1027_v40, 8.507059e+37  ;;  %v1030_v58 = vor.u32 1.1754944e-38, %v1029_v49 }
 0x163   : > { %v1125_v25 = vsub.f32 1.0, %v1124_v16  ;;  %v1830_v37 = vpop.eup %1829  ;;  %v1019_v39 = vmul.f32 %v1828_v33, %v2640_v4  ;;  %vm1024_vm7 = vweird.f32 %v1828_v33  ;;  %v1195_v60 = vadd.f32 %v1194_v42, %v1193_v28 }
 0x164   : > { %1833 = vrcp.f32 %v2672_v30  ;;  %v1081_v44 = vand.u32 2147483647, %v2672_v30  ;;  %v2690_v45 = vadd.f32 1.0, %v1830_v37  ;;  %v1083_v50 = vand.u32 2147483648, %v2672_v30  ;;  %vm1025_vm12 = vmor %vm1023_vm6, %vm1024_vm7 }
 0x165   : > { %v1126_v31 = vmul.f32 %v1824_v11, %v1125_v25  ;;  %v1020_v47 = vsub.f32 1.0, %v1019_v39  ;;  %1835 = vpow2.f32 %v1712_v41  ;;  %vm1077_vm9 = vweird.f32 %v2672_v30 }
 0x166   : > { %1837 = vrcp.f32 %v2690_v45  ;;  %vm2706_vm11 = vcmp.eq.f32.partialorder %v1081_v44, 8.507059e+37  ;;  %v1084_v3 = vor.u32 1.1754944e-38, %v1083_v50  ;;  %v971_v6 = vand.u32 2147483647, %v2690_v45 }
 0x167   : > { %v1127_v38 = vadd.f32 %v1824_v11, %v1126_v31  ;;  %v1832_v52 = vpop.eup %1831  ;;  %v1021_v55 = vmul.f32 %v1828_v33, %v1020_v47  ;;  %v2717_v7 = vadd.f32 %v1250_v48, %v1249_v36  ;;  %vm967_vm13 = vweird.f32 %v2690_v45 }
 0x168   : > { %v2703_v59 = vadd.f32 1.0, %v1832_v52  ;;  %v1196_v14 = vrot.slane %v1195_v60, 2  ;;  %vm2727_vm15 = vcmp.eq.f32.partialorder %v971_v6, 8.507059e+37 }
 0x169   : > { %v1131_v46 = vsel %vm1130_vm5, %v1824_v11, %v1127_v38  ;;  %v1022_v63 = vadd.f32 %v1828_v33, %v1021_v55  ;;  %v973_v11 = vand.u32 2147483648, %v2690_v45 }
 0x16a   : > { %v1136_v51 = vsel %vm2676_vm4, %v1135_v35, %v1131_v46  ;;  %v1834_v57 = vpop.eup %1833  ;;  %1839 = vrcp.f32 %v2703_v59  ;;  %v1291_v20 = vand.u32 2147483647, %v2703_v59  ;;  %v1293_v21 = vand.u32 2147483648, %v2703_v59 }
 0x16b   : > { %v1138_v54 = vmul.f32 %v1136_v51, %v2683_v43  ;;  %v1073_v1 = vmul.f32 %v1834_v57, %v2672_v30  ;;  %v1836_v8 = vpop.eup %1835  ;;  %v1026_v9 = vsel %vm1025_vm12, %v1828_v33, %v1022_v63  ;;  %vm1078_vm14 = vweird.f32 %v1834_v57 }
 0x16c   : > { %v1838_v12 = vpop.eup %1837  ;;  %v1031_v13 = vsel %vm2698_vm8, %v1030_v58, %v1026_v9  ;;  %v2723_v4 = vadd.f32 1.0, %v1836_v8  ;;  %v974_v17 = vor.u32 1.1754944e-38, %v973_v11  ;;  %vm1079_vm0 = vmor %vm1077_vm9, %vm1078_vm14  ;;  %vm1287_vm4 = vweird.f32 %v2703_v59 }
 0x16d   : > { %v1140_v61 = vrot.slane %v1138_v54, 4  ;;  %v1074_v10 = vsub.f32 1.0, %v1073_v1  ;;  %v1033_v15 = vmul.f32 %v1031_v13, %v943_v5  ;;  %v963_v18 = vmul.f32 %v1838_v12, %v2690_v45 }
 0x16e   : > { %1841 = vrcp.f32 %v2723_v4  ;;  %vm968_vm3 = vweird.f32 %v1838_v12  ;;  %v1197_v27 = vadd.f32 %v1196_v14, %v1195_v60  ;;  %vm2742_vm5 = vcmp.eq.f32.partialorder %v1291_v20, 8.507059e+37 }
 0x16f   : > { %v1142_v0 = vsel %vm978_vm10, %v1140_v61, 0.0  ;;  %v1075_v16 = vmul.f32 %v1834_v57, %v1074_v10  ;;  %v1035_v22 = vrot.slane %v1033_v15, 4  ;;  %v964_v24 = vsub.f32 1.0, %v963_v18  ;;  %vm969_vm6 = vmor %vm967_vm13, %vm968_vm3 }
 0x170   : > { %v1840_v25 = vpop.eup %1839  ;;  %v1143_v26 = vrot.slane %v1142_v0, 4  ;;  %v1294_v30 = vor.u32 1.1754944e-38, %v1293_v21  ;;  %v1342_v40 = vand.u32 2147483647, %v2723_v4  ;;  %v1198_v42 = vrot.slane %v1197_v27, 1 }
 0x171   : > { %v1076_v23 = vadd.f32 %v1834_v57, %v1075_v16  ;;  %v1037_v28 = vsel %vm978_vm10, %v1035_v22, 0.0  ;;  %v965_v32 = vmul.f32 %v1838_v12, %v964_v24  ;;  %v1283_v33 = vmul.f32 %v1840_v25, %v2703_v59 }
 0x172   : > { %v1038_v34 = vrot.slane %v1037_v28, 4  ;;  %vm1288_vm7 = vweird.f32 %v1840_v25  ;;  %v1144_v44 = vadd.f32 %v1143_v26, %v1142_v0  ;;  %v1344_v52 = vand.u32 2147483648, %v2723_v4 }
 0x173   : > { %v1080_v31 = vsel %vm1079_vm0, %v1834_v57, %v1076_v23  ;;  %v966_v38 = vadd.f32 %v1838_v12, %v965_v32  ;;  %v1284_v39 = vsub.f32 1.0, %v1283_v33  ;;  %v946_v57 = vld [vmem:[#allocation7 + $0x18] sm:$0xff]  ;;  %vm1289_vm8 = vmor %vm1287_vm4, %vm1288_vm7  ;;  %vm1343_vm13 = vcmp.eq.f32.partialorder %v1342_v40, 8.507059e+37 }
 0x174   : > { %v1085_v35 = vsel %vm2706_vm11, %v1084_v3, %v1080_v31  ;;  %v1842_v41 = vpop.eup %1841  ;;  %v1039_v49 = vadd.f32 %v1038_v34, %v1037_v28  ;;  %v1145_v61 = vrot.slane %v1144_v44, 2  ;;  %vm1338_vm11 = vweird.f32 %v2723_v4 }
 0x175   : > { %v988_v53 = vpop.permute.xlu2 %987  ;;  %v1087_v37 = vmul.f32 %v1085_v35, %v2683_v43  ;;  %v970_v47 = vsel %vm969_vm6, %v1838_v12, %v966_v38  ;;  %v1285_v50 = vmul.f32 %v1840_v25, %v1284_v39  ;;  %v1334_v51 = vmul.f32 %v1842_v41, %v2723_v4 }
 0x176   : > { %v2711_v62 = vmul.f32 %v988_v53, %v2669_v29  ;;  %v975_v48 = vsel %vm2727_vm15, %v974_v17, %v970_v47  ;;  %v1199_v53 = vadd.f32 %v1198_v42, %v1197_v27  ;;  %v1040_v56 = vrot.slane %v1039_v49, 2 }
 0x177   : > { %v1088_v46 = vsel %vm978_vm10, %v1087_v37, 0.0  ;;  %v977_v54 = vmul.f32 %v975_v48, %v943_v5  ;;  %v1286_v45 = vadd.f32 %v1840_v25, %v1285_v50  ;;  %v1335_v55 = vsub.f32 1.0, %v1334_v51 }
 0x178   : > { %v1089_v43 = vrot.slane %v1088_v46, 4  ;;  %vm1339_vm9 = vweird.f32 %v1842_v41  ;;  %v2760_v58 = vadd.f32 %v1199_v53, %v2711_v62  ;;  %v1041_v3 = vadd.f32 %v1040_v56, %v1039_v49 }
 0x179   : > { %v979_v63 = vsel %vm978_vm10, %v977_v54, 0.0  ;;  %v1290_v1 = vsel %vm1289_vm8, %v1840_v25, %v1286_v45  ;;  %v1336_v2 = vmul.f32 %v1842_v41, %v1335_v55  ;;  %vm1340_vm12 = vmor %vm1338_vm11, %vm1339_vm9  ;;  %v1345_v11 = vor.u32 1.1754944e-38, %v1344_v52 }
 0x17a   : > { %v1090_v60 = vadd.f32 %v1089_v43, %v1088_v46  ;;  %v980_v5 = vrot.slane %v979_v63, 4  ;;  %v1295_v6 = vsel %vm2742_vm5, %v1294_v30, %v1290_v1  ;;  %1843 = vtanh.f32 %v2760_v58 }
 0x17b   : > { %v1297_v8 = vmul.f32 %v1295_v6, %v946_v57  ;;  %v1337_v9 = vadd.f32 %v1842_v41, %v1336_v2  ;;  %v1042_v10 = vrot.slane %v1041_v3, 1  ;;  %v1146_v16 = vadd.f32 %v1145_v61, %v1144_v44 }
 0x17c   : > { %v1091_v59 = vrot.slane %v1090_v60, 2  ;;  %v981_v13 = vadd.f32 %v980_v5, %v979_v63  ;;  %v1252_v23 = vrot.slane %v2717_v7, 1  ;;  %vm1053_vm14 = vcmask 254977  }
 0x17d   : > { %v1298_v14 = vsel %vm978_vm10, %v1297_v8, 0.0  ;;  %v1341_v0 = vsel %vm1340_vm12, %v1842_v41, %v1337_v9  ;;  %v1043_v15 = vadd.f32 %v1042_v10, %v1041_v3  ;;  %v1147_v28 = vrot.slane %v1146_v16, 1 }
 0x17e   : > { %v1092_v12 = vadd.f32 %v1091_v59, %v1090_v60  ;;  %v1299_v4 = vrot.slane %v1298_v14, 4  ;;  %v1346_v18 = vsel %vm1343_vm13, %v1345_v11, %v1341_v0  ;;  %v982_v20 = vrot.slane %v981_v13, 2 }
 0x17f   : > { %v1348_v21 = vmul.f32 %v1346_v18, %v946_v57  ;;  %v1044_v22 = vadd.f32 %v1043_v15, %v2711_v62  ;;  %v1253_v35 = vadd.f32 %v1252_v23, %v2717_v7  ;;  %v1148_v38 = vadd.f32 %v1147_v28, %v1146_v16 }
 0x180   : > { %v1093_v19 = vrot.slane %v1092_v12, 1  ;;  %v1844_v24 = vpop.eup %1843  ;;  %v983_v25 = vadd.f32 %v982_v20, %v981_v13  ;;  %v1300_v26 = vadd.f32 %v1299_v4, %v1298_v14  ;;  %vm1158_vm15 = vcmask 257027  }
 0x181   : > { %v1350_v27 = vrot.slane %v1348_v21, 4  ;;  %1203 = vrot.lane.b32.xlu1 %v1844_v24, %s2131_s11  ;;  %1845 = vtanh.f32 %v1044_v22  ;;  %v1254_v49 = vadd.f32 %v1253_v35, %v2711_v62  ;;  %v1149_v46 = vadd.f32 %v1148_v38, %v2711_v62 }
 0x182   : > { %v1094_v17 = vadd.f32 %v1093_v19, %v1092_v12  ;;  %v984_v32 = vrot.slane %v983_v25, 1  ;;  %v1301_v33 = vrot.slane %v1300_v26, 2  ;;  %vm1209_vm0 = vcmask 258052  }
 0x183   : > { %v1352_v34 = vsel %vm978_vm10, %v1350_v27, 0.0  ;;  %vm1104_vm10 = vcmask 256002   ;;  %vm1263_vm3 = vcmask 259077   ;;  %vm1314_vm4 = vcmask 260102  }
 0x184   : > { %v1095_v31 = vadd.f32 %v1094_v17, %v2711_v62  ;;  %v1353_v36 = vrot.slane %v1352_v34, 4  ;;  %v985_v30 = vadd.f32 %v984_v32, %v983_v25  ;;  %v1302_v37 = vadd.f32 %v1301_v33, %v1300_v26 }
 0x185   : > { %vm1368_vm5 = vcmask 261127  }
 0x186   : > { %1847 = vtanh.f32 %v1095_v31  ;;  %v991_v39 = vadd.f32 %v2711_v62, %v985_v30  ;;  %v1354_v40 = vadd.f32 %v1353_v36, %v1352_v34  ;;  %v1303_v41 = vrot.slane %v1302_v37, 1 }
 0x187   : > { %v1846_v42 = vpop.eup %1845 }
 0x188   : > { %1849 = vtanh.f32 %v991_v39  ;;  %1000 = vst.msk [vmem:[%s999_s5] sm:$0x1] %vm479_vm1, %v991_v39  ;;  %v1355_v7 = vrot.slane %v1354_v40, 2  ;;  %v1304_v44 = vadd.f32 %v1303_v41, %v1302_v37 }
 0x189   : > { %1047 = vrot.lane.b32.xlu1 %v1846_v42, %s2131_s11  ;;  %1054 = vst.msk [vmem:[%s1052_s13 - $0x1] sm:$0x2] %vm1053_vm14, %v1044_v22  ;;  %1851 = vtanh.f32 %v1254_v49 }
 0x18a   : > { %1105 = vst.msk [vmem:[%s1103_s4 - $0x2] sm:$0x4] %vm1104_vm10, %v1095_v31  ;;  %v1356_v50 = vadd.f32 %v1355_v7, %v1354_v40  ;;  %v1305_v51 = vadd.f32 %v1304_v44, %v2711_v62  ;;  %1853 = vtanh.f32 %v1149_v46 }
 0x18b   : > { %1159 = vst.msk [vmem:[%s1157_s28 - $0x3] sm:$0x8] %vm1158_vm15, %v1149_v46 }
 0x18c   : > { %v1848_v47 = vpop.eup %1847  ;;  %1210 = vst.msk [vmem:[%s1208_s29 - $0x4] sm:$0x10] %vm1209_vm0, %v2760_v58  ;;  %v1357_v43 = vrot.slane %v1356_v50, 1  ;;  %s2978_s29 = sld [smem:[#allocation41_spill]] (!%p1713_p7) }
 0x18d   : > { %1098 = vrot.lane.b32.xlu2 %v1848_v47, %s2131_s11  ;;  %1264 = vst.msk [vmem:[%s1262_s24 - $0x5] sm:$0x20] %vm1263_vm3, %v1254_v49 }
 0x18e   : > { %v1850_v48 = vpop.eup %1849  ;;  %v1358_v52 = vadd.f32 %v1357_v43, %v1356_v50  ;;  %1315 = vst.msk [vmem:[%s1313_s1 - $0x6] sm:$0x40] %vm1314_vm4, %v1305_v51 }
 0x18f   : > { %994 = vrot.lane.b32.xlu0 %v1850_v48, %s2131_s11  ;;  %v1852_v54 = vpop.eup %1851 }
 0x190   : > { %v1359_v53 = vadd.f32 %v1358_v52, %v2711_v62  ;;  %v1854_v45 = vpop.eup %1853 }
 0x192   : > { %1855 = vtanh.f32 %v1359_v53  ;;  %1369 = vst.msk [vmem:[%s1367_s15 - $0x7] sm:$0x80] %vm1368_vm5, %v1359_v53  ;;  %s2979_s15 = sld [smem:[#allocation43_spill]] (!%p1713_p7) }
 0x193   : > { %1857 = vtanh.f32 %v1305_v51 }
 0x195   : > { %1257 = vrot.lane.b32.xlu2 %v1852_v54, %s2131_s11 }
 0x197   : > { %1152 = vrot.lane.b32.xlu0 %v1854_v45, %s2131_s11 }
 0x198   : > { %v1856_v55 = vpop.eup %1855 }
 0x199   : > { %1362 = vrot.lane.b32.xlu1 %v1856_v55, %s2131_s11  ;;  %v1858_v56 = vpop.eup %1857 }
 0x19f   : > { %1308 = vrot.lane.b32.xlu0 %v1858_v56, %s2131_s11  ;;  %s1005_s11 = scalar_lea.vmem [#allocation3], %s2769_s14  ;;  %s1269_s14 = scalar_lea.vmem [#allocation3], %s2793_s2 }
 0x1a0   : > { %s2977_s2 = sld [smem:[#allocation42_spill]] (!%p1713_p7) }
 0x1e7   : > { %v1099_v57 = vpop.permute.xlu2 %1098 }
 0x1e8   : > { %v1101_v62 = vmul.f32 %v1099_v57, %v2669_v29 }
 0x1ea   : > { %1107 = vrot.lane.b32.xlu1 %v1101_v62, %s2133_s19 }
 0x1ef   : > { %v1258_v58 = vpop.permute.xlu2 %1257 }
 0x1f0   : > { %v1260_v60 = vmul.f32 %v1258_v58, %v2669_v29 }
 0x1f2   : > { %1266 = vrot.lane.b32.xlu1 %v1260_v60, %s2133_s19 }
 0x1f3   : > { %v1204_v61 = vpop.permute.xlu1 %1203 }
 0x1f4   : > { %v1206_v63 = vmul.f32 %v1204_v61, %v2669_v29 }
 0x1f6   : > { %1212 = vrot.lane.b32.xlu0 %v1206_v63, %s2133_s19 }
 0x1fb   : > { %v1048_v1 = vpop.permute.xlu1 %1047 }
 0x1fc   : > { %v1050_v2 = vmul.f32 %v1048_v1, %v2669_v29 }
 0x1fe   : > { %1056 = vrot.lane.b32.xlu0 %v1050_v2, %s2133_s19 }
 0x201   : > { %v995_v3 = vpop.permute.xlu0 %994 }
 0x202   : > { %v997_v5 = vmul.f32 %v995_v3, %v2669_v29 }
 0x204   : > { %1002 = vrot.lane.b32.xlu2 %v997_v5, %s2133_s19 }
 0x209   : > { %v1153_v6 = vpop.permute.xlu0 %1152 }
 0x20a   : > { %v1155_v59 = vmul.f32 %v1153_v6, %v2669_v29 }
 0x20b   : > { %v1363_v8 = vpop.permute.xlu1 %1362 }
 0x20c   : > { %v1365_v9 = vmul.f32 %v1363_v8, %v2669_v29  ;;  %1161 = vrot.lane.b32.xlu2 %v1155_v59, %s2133_s19 }
 0x20e   : > { %1371 = vrot.lane.b32.xlu0 %v1365_v9, %s2133_s19 }
 0x211   : > { %v1309_v10 = vpop.permute.xlu0 %1308 }
 0x212   : > { %v1311_v11 = vmul.f32 %v1309_v10, %v2669_v29 }
 0x214   : > { %1317 = vrot.lane.b32.xlu2 %v1311_v11, %s2133_s19 }
 0x25c   : > { %v1108_v14 = vpop.permute.xlu1 %1107 }
 0x25e   : > { %v1003_v12 = vpop.permute.xlu2 %1002 }
 0x25f   : > { %1006 = vst.msk [vmem:[%s1005_s11] sm:$0x1] %vm479_vm1, %v1003_v12 }
 0x264   : > { %v1267_v29 = vpop.permute.xlu1 %1266 }
 0x266   : > { %v1162_v0 = vpop.permute.xlu2 %1161 }
 0x268   : > { %v1213_v13 = vpop.permute.xlu0 %1212 }
 0x26e   : > { %v1318_v16 = vpop.permute.xlu2 %1317 }
 0x270   : > { %v1057_v15 = vpop.permute.xlu0 %1056 }
 0x271   : > { %1060 = vst.msk [vmem:[%s1059_s0 - $0x1] sm:$0x2] %vm1053_vm14, %v1057_v15 }
 0x272   : > { %1111 = vst.msk [vmem:[%s1110_s21 - $0x2] sm:$0x4] %vm1104_vm10, %v1108_v14 }
 0x273   : > { %1165 = vst.msk [vmem:[%s1164_s16 - $0x3] sm:$0x8] %vm1158_vm15, %v1162_v0 }
 0x274   : > { %1216 = vst.msk [vmem:[%s1215_s26 - $0x4] sm:$0x10] %vm1209_vm0, %v1213_v13 }
 0x275   : > { %1270 = vst.msk [vmem:[%s1269_s14 - $0x5] sm:$0x20] %vm1263_vm3, %v1267_v29 }
 0x276   : > { %1321 = vst.msk [vmem:[%s1320_s17 - $0x6] sm:$0x40] %vm1314_vm4, %v1318_v16 }
 0x27d   : > { %1379 = sbr.rel (%p1713_p7) target bundleno = 1203 (0x4b3), region = 92 }
 0x280   : > { %v1372_v4 = vpop.permute.xlu0 %1371 }
 0x281   : > { %1375 = vst.msk [vmem:[%s1374_s27 - $0x7] sm:$0x80] %vm1368_vm5, %v1372_v4 }
 0x282   : > { %v1396_v18 = vld [vmem:[#allocation21 + $0x18] sm:$0xff]  ;;  %v1395_v20 = vld [vmem:[#allocation21 + $0x10] sm:$0xff]  ;;  %v1394_v22 = vld [vmem:[#allocation21 + $0x8] sm:$0xff]  ;;  %vm1492_vm9 = vcmask 32768  }
 0x283   : > { %v1392_v19 = vld [vmem:[#allocation19 + $0x18] sm:$0xff]  ;;  %1412 = vmatpush.msra.mxu0 %v1396_v18  ;;  %v1391_v21 = vld [vmem:[#allocation19 + $0x10] sm:$0xff]  ;;  %v1390_v23 = vld [vmem:[#allocation19 + $0x8] sm:$0xff] }
 0x284   : > { %1435 = vmatpush.msra.mxu1 %v1392_v19  ;;  %v1393_v24 = vld [vmem:[#allocation21] sm:$0xff]  ;;  %v1467_v32 = vld [vmem:[%s2977_s2 + $0x18] sm:$0xff]  ;;  %v1465_v34 = vld [vmem:[%s2977_s2 + $0x8] sm:$0xff] }
 0x285   : > { %1413 = vmatpush.msra.mxu0 %v1395_v20  ;;  %v1389_v17 = vld [vmem:[#allocation19] sm:$0xff]  ;;  %1484 = vmatpush.msra.mxu2 %v1467_v32  ;;  %v1464_v35 = vld [vmem:[%s2977_s2] sm:$0xff] }
 0x286   : > { %1436 = vmatpush.msra.mxu1 %v1391_v21  ;;  %v1466_v33 = vld [vmem:[%s2977_s2 + $0x10] sm:$0xff]  ;;  %v1443_v37 = vld [vmem:[%s2978_s29] sm:$0x1] }
 0x287   : > { %1414 = vmatpush.msra.mxu0 %v1394_v22  ;;  %1485 = vmatpush.msra.mxu2 %v1466_v33  ;;  %v1468_v53 = vld [vmem:[%s2979_s15] sm:$0x1] }
 0x288   : > { %1437 = vmatpush.msra.mxu1 %v1390_v23  ;;  %v1382_v25 = vld [vmem:[%s1381_s6] sm:$0x1] }
 0x289   : > { %1415 = vmatpush.msra.mxu0 %v1393_v24  ;;  %v1385_v26 = vld [vmem:[%s1384_s10] sm:$0x1]  ;;  %1486 = vmatpush.msra.mxu2 %v1465_v34 }
 0x28a   : > { %1438 = vmatpush.msra.mxu1 %v1389_v17  ;;  %v1387_v27 = vsub.f32 %v1382_v25, %v1385_v26  ;;  %v1386_v28 = vmul.f32 %v1385_v26, %v1382_v25 }
 0x28b   : > { %1487 = vmatpush.msra.mxu2 %v1464_v35 }
 0x28c   : > { %v1388_v31 = vand.u32 2147483647, %v1387_v27  ;;  %1716 = vmatmul.msk.f32.vlgmr.msra.gmra.mxu1 %vm816_vm2, %v1386_v28 }
 0x28e   : > { %1715 = vmatmul.msk.f32.vlgmr.msra.gmra.mxu0 %vm816_vm2, %v1388_v31 }
 0x309   : > { %v1440_v36 = vpop.f32.mrf.mxu1 }
 0x30b   : > { %v1417_v30 = vpop.f32.mrf.mxu0 }
 0x30c   : > { %v1441_v38 = vadd.f32 %v1440_v36, %v1417_v30 }
 0x30e   : > { %v1444_v39 = vadd.f32 %v1443_v37, %v1441_v38 }
 0x310   : > { %v1717_v40 = vmul.f32 -1.442695, %v1444_v39 }
 0x312   : > { %1859 = vpow2.f32 %v1717_v40 }
 0x318   : > { %v1860_v41 = vpop.eup %1859 }
 0x319   : > { %v1448_v42 = vadd.f32 1.0, %v1860_v41 }
 0x31b   : > { %1861 = vrcp.f32 %v1448_v42  ;;  %v1460_v46 = vand.u32 2147483648, %v1448_v42  ;;  %v1458_v50 = vand.u32 2147483647, %v1448_v42  ;;  %vm1454_vm6 = vweird.f32 %v1448_v42 }
 0x31d   : > { %v1461_v43 = vor.u32 1.1754944e-38, %v1460_v46  ;;  %vm1459_vm8 = vcmp.eq.f32.partialorder %v1458_v50, 8.507059e+37 }
 0x321   : > { %v1862_v49 = vpop.eup %1861 }
 0x322   : > { %v1450_v7 = vmul.f32 %v1862_v49, %v1448_v42  ;;  %vm1455_vm1 = vweird.f32 %v1862_v49 }
 0x323   : > { %vm1456_vm7 = vmor %vm1454_vm6, %vm1455_vm1 }
 0x324   : > { %v1451_v44 = vsub.f32 1.0, %v1450_v7 }
 0x326   : > { %v1452_v47 = vmul.f32 %v1862_v49, %v1451_v44 }
 0x328   : > { %v1453_v51 = vadd.f32 %v1862_v49, %v1452_v47 }
 0x32a   : > { %v1457_v48 = vsel %vm1456_vm7, %v1862_v49, %v1453_v51 }
 0x32b   : > { %v1462_v52 = vsel %vm1459_vm8, %v1461_v43, %v1457_v48 }
 0x32c   : > { %1718 = vmatmul.msk.f32.vlgmr.msra.gmra.mxu2 %vm816_vm2, %v1462_v52 }
 0x3af   : > { %v1489_v54 = vpop.f32.mrf.mxu2 }
 0x3b0   : > { %v1490_v45 = vadd.f32 %v1489_v54, %v1468_v53 }
 0x3b2   : > { %v1493_v55 = vsel %vm1492_vm9, %v1490_v45, -inf }
 0x3b3   : > { %1494 = vmax.xlane.f32.xlu0 %v1493_v55 }
 0x426   : > { %v1495_v56 = vpop.xlane.xlu0 %1494 }
 0x427   : > { %v1496_v57 = vsub.f32 %v1490_v45, %v1495_v56 }
 0x429   : > { %v1497_v62 = vmul.f32 1.442695, %v1496_v57 }
 0x42b   : > { %1863 = vpow2.f32 %v1497_v62 }
 0x431   : > { %v1864_v58 = vpop.eup %1863 }
 0x432   : > { %v1499_v60 = vsel %vm1492_vm9, %v1864_v58, 0.0 }
 0x433   : > { %1500 = vadd.xlane.f32.xlu0 %v1499_v60 }
 0x4a6   : > { %v1501_v61 = vpop.xlane.xlu0 %1500 }
 0x4a7   : > { %1865 = vlog2.f32 %v1501_v61 }
 0x4ad   : > { %v1866_v63 = vpop.eup %1865 }
 0x4ae   : > { %v1503_v1 = vmul.f32 0.6931472, %v1866_v63 }
 0x4b0   : > { %v1504_v2 = vsub.f32 %v1496_v57, %v1503_v1 }
 0x4b2   : > { %1505 = vst.msk [vmem:[#allocation22] sm:$0x1] %vm1492_vm9, %v1504_v2 }
 0x4b3 PF: > { %s2980_s19 = sld [smem:[#allocation29_spill]]  ;;  %s2134_s11 = smov [#allocation22]  }
 0x4b4   : > { %s1512_s0 = sshll.u32 %s2134_s11, 4  ;;  %s2981_s26 = sld [smem:[#allocation44_spill]]  ;;  %s1513_s0 = int_to_ptr.vmem [resolvable:$true] %s1512_s0 }
 0x4b9   : > { %p1777_p8 = scmp.eq.s32.totalorder %s2980_s19, 2 }
 0x4ba   : > { %s1514_s14 = sshll.u32 %s2981_s26, 4  ;;  %s1515_s14 = int_to_ptr.hbm [resolvable:$true] %s1514_s14 }
 0x4bb   : > { %1748 = dma.vmem_to_hbm [thread:$0]  (%p1777_p8), %s1513_s0, 16, %s1515_s14, [#allocation15]  }
 0x4bc   : > { %2112 = dma.done.wait (%p1777_p8), [#allocation15], 16  }
 0x4bd   : > { %2114 = vsyncadd (%p1777_p8), [#allocation15], 4294967280 }
 0x4be PF: > { %s2982_s17 = sld [smem:[#allocation28_spill]] }
 0x4c4   : > { %s52_s1 = sadd.s32 1, %s2982_s17  }
 0x4c5   : > { %p49_p9 = scmp.ge.s32.totalorder %s52_s1, 5  }
 0x4c7   :  { %51 = sbr.rel (!%p49_p9) target bundleno = 22 (0x16), region = 207 }
 0x4cc   :  { %1528 = vsyncpa [#allocation14], 1 }
 0x4cd   :  { %1530 = vsyncpa [#allocation14 + $0x1], 1 }
 0x4ce   :  { %1531 = vsyncpa [#allocation17], 1 }
 0x4cf   :  { %1532 = vsyncpa [#allocation20], 1 }
 0x4d0   :  { %1533 = vsyncpa [#allocation15], 1 }
 0x4d1   :  { %1535 = vsyncpa [#allocation15 + $0x1], 1 }

</bundles_post_ra>
